<compile_context>
chip_gen: v5e
topology: v5e:2x2
jax: 0.10.0
libtpu: 0.0.40
codegen_flags: <defaults>
</compile_context>

<pallas_src>
import functools
import math
from types import SimpleNamespace

import jax
import jax.numpy as jnp
from jax.experimental import pallas as pl
from jax.experimental.pallas import tpu as pltpu


# ---------------------------------------------------------------------------
# Fused Pallas kernel: the whole STSGCN forward in one invocation
# ---------------------------------------------------------------------------

def _fused_forward_kernel(*refs, layer_cfg, BN):
    """Whole STSGCN forward, fully VMEM resident.

    Ref order (all whole-array VMEM blocks):
      x_ref   : (T*B*N, F)          encoder input, rows ordered (t, b, n)
      fw_ref  : (F, d_model)        first FC weight
      fb_ref  : (1, d_model)        first FC bias
      bd_ref  : (W0, 3*B*N, 3*B*N)  per-window block-diag adjacency (t, b)
      per layer l:
        emb_ref : (T_l*B*N, C_l)    temporal + spatial embedding (pre-broadcast)
        per GCN stage: w (W_l, Cin, 2*Cout), b (W_l, 1, 2*Cout)
      w1_ref  : (Tf*C, H*hid)       all heads' FC1, concatenated on out dim
      b1_ref  : (1, H*hid)
      w2_ref  : (H*hid, H*F)        all heads' FC2, block-diagonal
      b2_ref  : (1, H*F)
      o_ref   : (B*N, H*F)          output, rows (b, n), cols (head, feature)
    """
    it = iter(refs)
    x_ref, fw_ref, fb_ref, bd_ref = next(it), next(it), next(it), next(it)
    layer_refs = []
    for _, couts in layer_cfg:
        emb_ref = next(it)
        stage_refs = tuple((next(it), next(it)) for _ in couts)
        layer_refs.append((emb_ref, stage_refs))
    w1_ref, b1_ref, w2_ref, b2_ref = next(it), next(it), next(it), next(it)
    o_ref = next(it)

    f32 = jnp.float32

    # First FC + ReLU: one MXU push covering every (t, b, n) row.
    x = jnp.dot(x_ref[...], fw_ref[...], preferred_element_type=f32) + fb_ref[...]
    x = jnp.maximum(x, 0.0)                                  # (T*BN, d_model)

    for (T_l, couts), (emb_ref, stage_refs) in zip(layer_cfg, layer_refs):
        x = x + emb_ref[...]                                 # temporal + spatial emb
        n_win = T_l - 2
        outs = []
        for w in range(n_win):                               # small, unrolled
            h = x[w * BN:(w + 3) * BN, :]                    # (3*BN, Cin) window
            bd_w = bd_ref[w]                                 # (3*BN, 3*BN) block-diag
            acc = None
            for (ws_ref, bs_ref), cout in zip(stage_refs, couts):
                blk0 = h[0 * BN:1 * BN, :]
                blk1 = h[1 * BN:2 * BN, :]
                blk2 = h[2 * BN:3 * BN, :]
                # Block-tridiagonal local adjacency:
                #   diagonal A_t blocks  -> one block-diag matmul (batch fused)
                #   identity off-diags   -> VPU adds
                ax = jnp.dot(bd_w, h, preferred_element_type=f32)
                ax = ax + jnp.concatenate([blk1, blk0 + blk2, blk1], axis=0)
                # GLU FC: one matmul over all B*3N rows of this window.
                z = jnp.dot(ax, ws_ref[w], preferred_element_type=f32) + bs_ref[w]
                h = z[:, :cout] * jax.nn.sigmoid(z[:, cout:])
                crop = h[BN:2 * BN, :]                       # middle-N block
                acc = crop if acc is None else jnp.maximum(acc, crop)
            outs.append(acc)
        x = jnp.concatenate(outs, axis=0)                    # (n_win*BN, Cout)

    # Output heads: rows (b, n), features ordered (t, c) t-major.
    t_final = layer_cfg[-1][0] - 2
    xr = jnp.concatenate([x[t * BN:(t + 1) * BN, :] for t in range(t_final)],
                         axis=1)                             # (BN, Tf*C)
    hid = jnp.dot(xr, w1_ref[...], preferred_element_type=f32) + b1_ref[...]
    hid = jnp.maximum(hid, 0.0)
    o_ref[...] = jnp.dot(hid, w2_ref[...], preferred_element_type=f32) + b2_ref[...]


# ---------------------------------------------------------------------------
# Wrapper: layout plumbing + single pallas_call
# ---------------------------------------------------------------------------

def stsgcn_fwd(params, x_enc, adj_in):
    """x_enc: (B, T, N, F); adj_in: (B, T, N, N) -> (B, horizon, N, F)."""
    strides = 3
    B, T, N, F = x_enc.shape
    BN = B * N

    # ---- XLA-side layout plumbing only (no compute) -----------------------
    # Rows ordered (t, b, n): window slices and middle-N crops become
    # contiguous, sublane-tile-aligned row ranges inside the kernel.
    x_flat = jnp.transpose(x_enc, (1, 0, 2, 3)).reshape(T * BN, F)

    # Per-window block-diagonal adjacency over (time-step, batch).  The
    # identity cross-time blocks of the local graph are added on the VPU
    # inside the kernel, so the (3N)^2 local adjacency is never materialized.
    # TODO(synk): construct_adj_optimized source was not provided; the
    # standard STSGCN local graph (per-step adjacency on the diagonal,
    # identity between adjacent steps) is assumed here.
    A = jnp.transpose(adj_in, (1, 0, 2, 3))                  # (T, B, N, N)
    n_win0 = T - strides + 1
    bd = jnp.stack([
        jax.scipy.linalg.block_diag(
            *[A[w + k, b] for k in range(strides) for b in range(B)])
        for w in range(n_win0)])                             # (W0, 3*BN, 3*BN)

    args = [x_flat, params["first_fc"][0], params["first_fc"][1], bd]
    layer_cfg = []
    T_l = T
    for lp in params["stsgcls"]:
        c_in = lp["temporal_emb"].shape[-1]
        emb = (lp["temporal_emb"] + lp["spatial_emb"])[0]    # (T_l, N, C)
        emb2d = jnp.broadcast_to(emb[:, None, :, :],
                                 (T_l, B, N, c_in)).reshape(T_l * BN, c_in)
        args.append(emb2d)
        couts = []
        for ws, bs in zip(lp["stage_w"], lp["stage_b"]):
            args += [ws, bs]
            couts.append(ws.shape[-1] // 2)
        layer_cfg.append((T_l, tuple(couts)))
        T_l -= strides - 1

    # Fold the H prediction heads into two matmuls.
    w1, b1, w2, b2 = params["predict"]                       # (H,Din,hid), ...
    H = w1.shape[0]
    Fo = w2.shape[-1]
    w1_cat = jnp.concatenate([w1[h] for h in range(H)], axis=-1)   # (Din, H*hid)
    b1_cat = jnp.concatenate([b1[h] for h in range(H)], axis=-1)   # (1, H*hid)
    w2_bd = jax.scipy.linalg.block_diag(*[w2[h] for h in range(H)])  # (H*hid, H*Fo)
    b2_cat = jnp.concatenate([b2[h] for h in range(H)], axis=-1)   # (1, H*Fo)
    args += [w1_cat, b1_cat, w2_bd, b2_cat]

    vmem_spec = pl.BlockSpec(memory_space=pltpu.MemorySpace.VMEM)
    out2d = pl.pallas_call(
        functools.partial(_fused_forward_kernel,
                          layer_cfg=tuple(layer_cfg), BN=BN),
        out_shape=jax.ShapeDtypeStruct((BN, H * Fo), jnp.float32),
        in_specs=[vmem_spec] * len(args),
        out_specs=vmem_spec,
    )(*args)

    # rows (b, n), cols (head, feature) -> (B, horizon, N, F)
    return jnp.transpose(out2d.reshape(B, N, H, Fo), (0, 2, 1, 3))


# ---------------------------------------------------------------------------
# Deterministic parameter initialization (mirrors the PyTorch module layout)
# ---------------------------------------------------------------------------

def _linear_init(key, in_dim, out_dim, prefix=()):
    k1, k2 = jax.random.split(key)
    scale = 1.0 / math.sqrt(in_dim)
    w = jax.random.uniform(k1, prefix + (in_dim, out_dim), jnp.float32, -scale, scale)
    b = jax.random.uniform(k2, prefix + (1, out_dim), jnp.float32, -scale, scale)
    return w, b


def init_params(key, settings):
    N = settings.num_instances
    strides = 3
    keys = iter(jax.random.split(key, 256))
    params = {}

    w, b = _linear_init(next(keys), settings.num_features, settings.d_model)
    params["first_fc"] = (w, b)

    stsgcls = []
    in_dim = settings.d_model
    history = settings.history_steps
    for hidden_list in settings.hidden_dims:
        layer = {}
        # xavier_normal_ with gain=0.0003 (PyTorch fan convention, approx).
        t_std = 0.0003 * math.sqrt(2.0 / (history * in_dim + in_dim))
        s_std = 0.0003 * math.sqrt(2.0 / (2 * N * in_dim))
        layer["temporal_emb"] = t_std * jax.random.normal(
            next(keys), (1, history, 1, in_dim), jnp.float32)
        layer["spatial_emb"] = s_std * jax.random.normal(
            next(keys), (1, 1, N, in_dim), jnp.float32)

        W = history - strides + 1
        stage_w, stage_b = [], []
        c = in_dim
        for out_dim in hidden_list:
            # Per-window independent Linear(c, 2*out_dim), stacked on a leading
            # window axis; value|gate halves stay concatenated (GLU split).
            gw, gb = _linear_init(next(keys), c, 2 * out_dim, prefix=(W,))
            stage_w.append(gw)                      # (W, c, 2*out_dim)
            stage_b.append(gb)                      # (W, 1, 2*out_dim)
            c = out_dim
        layer["stage_w"] = stage_w
        layer["stage_b"] = stage_b
        stsgcls.append(layer)

        history -= strides - 1
        in_dim = hidden_list[-1]
    params["stsgcls"] = stsgcls

    H = settings.predict_steps
    w1, b1 = _linear_init(next(keys), in_dim * history, settings.hidden_dim,
                          prefix=(H,))
    w2, b2 = _linear_init(next(keys), settings.hidden_dim,
                          1 * settings.num_features, prefix=(H,))
    params["predict"] = (w1, b1, w2, b2)
    return params


# ---------------------------------------------------------------------------

if __name__ == "__main__":
    settings = SimpleNamespace(
        num_instances=4,          # N
        num_features=3,           # F
        d_model=16,
        hidden_dims=[[16, 16], [16, 16]],
        hidden_dim=32,
        activation="GLU",
        use_mask=False,
        temporal_emb=True,
        spatial_emb=True,
        history_steps=8,          # Tin
        predict_steps=2,          # Tout
    )

    key = jax.random.PRNGKey(0)
    kp, kx, ka = jax.random.split(key, 3)

    params = init_params(kp, settings)

    B = 2
    T, N, F = settings.history_steps, settings.num_instances, settings.num_features
    x_enc = jax.random.normal(kx, (B, T, N, F), jnp.float32)
    adj_in = jax.random.uniform(ka, (B, T, N, N), jnp.float32)

    fwd = jax.jit(stsgcn_fwd)
    out = jax.block_until_ready(fwd(params, x_enc, adj_in))

    assert out.shape == (B, settings.predict_steps, N, F), out.shape
    assert jnp.all(jnp.isfinite(out))
    print("KERNEL_OK")
</pallas_src>

<mosaic_0001>
module attributes {stable_mosaic.version = 11 : i64} {
  func.func @_fused_forward_kernel(%arg0: memref<64x3xf32, #tpu.memory_space<vmem>>, %arg1: memref<3x16xf32, #tpu.memory_space<vmem>>, %arg2: memref<1x16xf32, #tpu.memory_space<vmem>>, %arg3: memref<6x24x24xf32, #tpu.memory_space<vmem>>, %arg4: memref<64x16xf32, #tpu.memory_space<vmem>>, %arg5: memref<6x16x32xf32, #tpu.memory_space<vmem>>, %arg6: memref<6x1x32xf32, #tpu.memory_space<vmem>>, %arg7: memref<6x16x32xf32, #tpu.memory_space<vmem>>, %arg8: memref<6x1x32xf32, #tpu.memory_space<vmem>>, %arg9: memref<48x16xf32, #tpu.memory_space<vmem>>, %arg10: memref<4x16x32xf32, #tpu.memory_space<vmem>>, %arg11: memref<4x1x32xf32, #tpu.memory_space<vmem>>, %arg12: memref<4x16x32xf32, #tpu.memory_space<vmem>>, %arg13: memref<4x1x32xf32, #tpu.memory_space<vmem>>, %arg14: memref<64x64xf32, #tpu.memory_space<vmem>>, %arg15: memref<1x64xf32, #tpu.memory_space<vmem>>, %arg16: memref<64x6xf32, #tpu.memory_space<vmem>>, %arg17: memref<1x6xf32, #tpu.memory_space<vmem>>, %arg18: memref<8x6xf32, #tpu.memory_space<vmem>>) attributes {dimension_semantics = [], scalar_prefetch = 0 : i64, scratch_operands = 0 : i64, tpu.core_type = #tpu.core_type<tc>} {
    %c0 = arith.constant 0 : index
    %c0_0 = arith.constant 0 : index
    %0 = vector.load %arg0[%c0, %c0_0] : memref<64x3xf32, #tpu.memory_space<vmem>>, vector<64x3xf32>
    %c0_1 = arith.constant 0 : index
    %c0_2 = arith.constant 0 : index
    %1 = vector.load %arg1[%c0_1, %c0_2] : memref<3x16xf32, #tpu.memory_space<vmem>>, vector<3x16xf32>
    %cst = arith.constant dense<0.000000e+00> : vector<64x16xf32>
    %2 = tpu.matmul %0, %1, %cst {dimension_numbers = #tpu.dot_dimension_numbers<[1], [0], [0], [1], [0, 0, 1, 1], [], []>} : vector<64x3xf32>, vector<3x16xf32>, vector<64x16xf32> -> vector<64x16xf32>
    %c0_3 = arith.constant 0 : index
    %c0_4 = arith.constant 0 : index
    %3 = vector.load %arg2[%c0_3, %c0_4] : memref<1x16xf32, #tpu.memory_space<vmem>>, vector<1x16xf32>
    %4 = vector.broadcast %3 : vector<1x16xf32> to vector<64x16xf32>
    %5 = arith.addf %2, %4 : vector<64x16xf32>
    %cst_5 = arith.constant 0.000000e+00 : f32
    %6 = vector.broadcast %cst_5 : f32 to vector<64x16xf32>
    %7 = arith.maximumf %5, %6 : vector<64x16xf32>
    %c0_6 = arith.constant 0 : index
    %c0_7 = arith.constant 0 : index
    %8 = vector.load %arg4[%c0_6, %c0_7] : memref<64x16xf32, #tpu.memory_space<vmem>>, vector<64x16xf32>
    %9 = arith.addf %7, %8 : vector<64x16xf32>
    %10 = vector.extract_strided_slice %9 {offsets = [0, 0], sizes = [24, 16], strides = [1, 1]} : vector<64x16xf32> to vector<24x16xf32>
    %c0_8 = arith.constant 0 : index
    %c0_9 = arith.constant 0 : index
    %c0_10 = arith.constant 0 : index
    %11 = vector.load %arg3[%c0_8, %c0_9, %c0_10] : memref<6x24x24xf32, #tpu.memory_space<vmem>>, vector<1x24x24xf32>
    %12 = vector.shape_cast %11 : vector<1x24x24xf32> to vector<24x24xf32>
    %13 = vector.extract_strided_slice %10 {offsets = [0, 0], sizes = [8, 16], strides = [1, 1]} : vector<24x16xf32> to vector<8x16xf32>
    %14 = vector.extract_strided_slice %10 {offsets = [8, 0], sizes = [8, 16], strides = [1, 1]} : vector<24x16xf32> to vector<8x16xf32>
    %15 = vector.extract_strided_slice %10 {offsets = [16, 0], sizes = [8, 16], strides = [1, 1]} : vector<24x16xf32> to vector<8x16xf32>
    %cst_11 = arith.constant dense<0.000000e+00> : vector<24x16xf32>
    %16 = tpu.matmul %12, %10, %cst_11 {dimension_numbers = #tpu.dot_dimension_numbers<[1], [0], [0], [1], [0, 0, 1, 1], [], []>} : vector<24x24xf32>, vector<24x16xf32>, vector<24x16xf32> -> vector<24x16xf32>
    %17 = arith.addf %13, %15 : vector<8x16xf32>
    %18 = tpu.concatenate %14, %17, %14 in 0 : vector<8x16xf32>, vector<8x16xf32>, vector<8x16xf32> -> vector<24x16xf32>
    %19 = arith.addf %16, %18 : vector<24x16xf32>
    %c0_12 = arith.constant 0 : index
    %c0_13 = arith.constant 0 : index
    %c0_14 = arith.constant 0 : index
    %20 = vector.load %arg5[%c0_12, %c0_13, %c0_14] : memref<6x16x32xf32, #tpu.memory_space<vmem>>, vector<1x16x32xf32>
    %21 = vector.shape_cast %20 : vector<1x16x32xf32> to vector<16x32xf32>
    %cst_15 = arith.constant dense<0.000000e+00> : vector<24x32xf32>
    %22 = tpu.matmul %19, %21, %cst_15 {dimension_numbers = #tpu.dot_dimension_numbers<[1], [0], [0], [1], [0, 0, 1, 1], [], []>} : vector<24x16xf32>, vector<16x32xf32>, vector<24x32xf32> -> vector<24x32xf32>
    %c0_16 = arith.constant 0 : index
    %c0_17 = arith.constant 0 : index
    %c0_18 = arith.constant 0 : index
    %23 = vector.load %arg6[%c0_16, %c0_17, %c0_18] : memref<6x1x32xf32, #tpu.memory_space<vmem>>, vector<1x1x32xf32>
    %24 = vector.shape_cast %23 : vector<1x1x32xf32> to vector<1x32xf32>
    %25 = vector.broadcast %24 : vector<1x32xf32> to vector<24x32xf32>
    %26 = arith.addf %22, %25 : vector<24x32xf32>
    %27 = vector.extract_strided_slice %26 {offsets = [0, 0], sizes = [24, 16], strides = [1, 1]} : vector<24x32xf32> to vector<24x16xf32>
    %28 = vector.extract_strided_slice %26 {offsets = [0, 16], sizes = [24, 16], strides = [1, 1]} : vector<24x32xf32> to vector<24x16xf32>
    %29 = arith.negf %28 : vector<24x16xf32>
    %30 = math.exp %29 : vector<24x16xf32>
    %cst_19 = arith.constant 1.000000e+00 : f32
    %31 = vector.broadcast %cst_19 : f32 to vector<24x16xf32>
    %32 = arith.addf %31, %30 : vector<24x16xf32>
    %33 = arith.divf %31, %32 : vector<24x16xf32>
    %34 = arith.mulf %27, %33 : vector<24x16xf32>
    %35 = vector.extract_strided_slice %34 {offsets = [8, 0], sizes = [8, 16], strides = [1, 1]} : vector<24x16xf32> to vector<8x16xf32>
    %36 = vector.extract_strided_slice %34 {offsets = [0, 0], sizes = [8, 16], strides = [1, 1]} : vector<24x16xf32> to vector<8x16xf32>
    %37 = vector.extract_strided_slice %34 {offsets = [8, 0], sizes = [8, 16], strides = [1, 1]} : vector<24x16xf32> to vector<8x16xf32>
    %38 = vector.extract_strided_slice %34 {offsets = [16, 0], sizes = [8, 16], strides = [1, 1]} : vector<24x16xf32> to vector<8x16xf32>
    %cst_20 = arith.constant dense<0.000000e+00> : vector<24x16xf32>
    %39 = tpu.matmul %12, %34, %cst_20 {dimension_numbers = #tpu.dot_dimension_numbers<[1], [0], [0], [1], [0, 0, 1, 1], [], []>} : vector<24x24xf32>, vector<24x16xf32>, vector<24x16xf32> -> vector<24x16xf32>
    %40 = arith.addf %36, %38 : vector<8x16xf32>
    %41 = tpu.concatenate %37, %40, %37 in 0 : vector<8x16xf32>, vector<8x16xf32>, vector<8x16xf32> -> vector<24x16xf32>
    %42 = arith.addf %39, %41 : vector<24x16xf32>
    %c0_21 = arith.constant 0 : index
    %c0_22 = arith.constant 0 : index
    %c0_23 = arith.constant 0 : index
    %43 = vector.load %arg7[%c0_21, %c0_22, %c0_23] : memref<6x16x32xf32, #tpu.memory_space<vmem>>, vector<1x16x32xf32>
    %44 = vector.shape_cast %43 : vector<1x16x32xf32> to vector<16x32xf32>
    %cst_24 = arith.constant dense<0.000000e+00> : vector<24x32xf32>
    %45 = tpu.matmul %42, %44, %cst_24 {dimension_numbers = #tpu.dot_dimension_numbers<[1], [0], [0], [1], [0, 0, 1, 1], [], []>} : vector<24x16xf32>, vector<16x32xf32>, vector<24x32xf32> -> vector<24x32xf32>
    %c0_25 = arith.constant 0 : index
    %c0_26 = arith.constant 0 : index
    %c0_27 = arith.constant 0 : index
    %46 = vector.load %arg8[%c0_25, %c0_26, %c0_27] : memref<6x1x32xf32, #tpu.memory_space<vmem>>, vector<1x1x32xf32>
    %47 = vector.shape_cast %46 : vector<1x1x32xf32> to vector<1x32xf32>
    %48 = vector.broadcast %47 : vector<1x32xf32> to vector<24x32xf32>
    %49 = arith.addf %45, %48 : vector<24x32xf32>
    %50 = vector.extract_strided_slice %49 {offsets = [0, 0], sizes = [24, 16], strides = [1, 1]} : vector<24x32xf32> to vector<24x16xf32>
    %51 = vector.extract_strided_slice %49 {offsets = [0, 16], sizes = [24, 16], strides = [1, 1]} : vector<24x32xf32> to vector<24x16xf32>
    %52 = arith.negf %51 : vector<24x16xf32>
    %53 = math.exp %52 : vector<24x16xf32>
    %cst_28 = arith.constant 1.000000e+00 : f32
    %54 = vector.broadcast %cst_28 : f32 to vector<24x16xf32>
    %55 = arith.addf %54, %53 : vector<24x16xf32>
    %56 = arith.divf %54, %55 : vector<24x16xf32>
    %57 = arith.mulf %50, %56 : vector<24x16xf32>
    %58 = vector.extract_strided_slice %57 {offsets = [8, 0], sizes = [8, 16], strides = [1, 1]} : vector<24x16xf32> to vector<8x16xf32>
    %59 = arith.maximumf %35, %58 : vector<8x16xf32>
    %60 = vector.extract_strided_slice %9 {offsets = [8, 0], sizes = [24, 16], strides = [1, 1]} : vector<64x16xf32> to vector<24x16xf32>
    %c1 = arith.constant 1 : index
    %c0_29 = arith.constant 0 : index
    %c0_30 = arith.constant 0 : index
    %61 = vector.load %arg3[%c1, %c0_29, %c0_30] : memref<6x24x24xf32, #tpu.memory_space<vmem>>, vector<1x24x24xf32>
    %62 = vector.shape_cast %61 : vector<1x24x24xf32> to vector<24x24xf32>
    %63 = vector.extract_strided_slice %60 {offsets = [0, 0], sizes = [8, 16], strides = [1, 1]} : vector<24x16xf32> to vector<8x16xf32>
    %64 = vector.extract_strided_slice %60 {offsets = [8, 0], sizes = [8, 16], strides = [1, 1]} : vector<24x16xf32> to vector<8x16xf32>
    %65 = vector.extract_strided_slice %60 {offsets = [16, 0], sizes = [8, 16], strides = [1, 1]} : vector<24x16xf32> to vector<8x16xf32>
    %cst_31 = arith.constant dense<0.000000e+00> : vector<24x16xf32>
    %66 = tpu.matmul %62, %60, %cst_31 {dimension_numbers = #tpu.dot_dimension_numbers<[1], [0], [0], [1], [0, 0, 1, 1], [], []>} : vector<24x24xf32>, vector<24x16xf32>, vector<24x16xf32> -> vector<24x16xf32>
    %67 = arith.addf %63, %65 : vector<8x16xf32>
    %68 = tpu.concatenate %64, %67, %64 in 0 : vector<8x16xf32>, vector<8x16xf32>, vector<8x16xf32> -> vector<24x16xf32>
    %69 = arith.addf %66, %68 : vector<24x16xf32>
    %c1_32 = arith.constant 1 : index
    %c0_33 = arith.constant 0 : index
    %c0_34 = arith.constant 0 : index
    %70 = vector.load %arg5[%c1_32, %c0_33, %c0_34] : memref<6x16x32xf32, #tpu.memory_space<vmem>>, vector<1x16x32xf32>
    %71 = vector.shape_cast %70 : vector<1x16x32xf32> to vector<16x32xf32>
    %cst_35 = arith.constant dense<0.000000e+00> : vector<24x32xf32>
    %72 = tpu.matmul %69, %71, %cst_35 {dimension_numbers = #tpu.dot_dimension_numbers<[1], [0], [0], [1], [0, 0, 1, 1], [], []>} : vector<24x16xf32>, vector<16x32xf32>, vector<24x32xf32> -> vector<24x32xf32>
    %c1_36 = arith.constant 1 : index
    %c0_37 = arith.constant 0 : index
    %c0_38 = arith.constant 0 : index
    %73 = vector.load %arg6[%c1_36, %c0_37, %c0_38] : memref<6x1x32xf32, #tpu.memory_space<vmem>>, vector<1x1x32xf32>
    %74 = vector.shape_cast %73 : vector<1x1x32xf32> to vector<1x32xf32>
    %75 = vector.broadcast %74 : vector<1x32xf32> to vector<24x32xf32>
    %76 = arith.addf %72, %75 : vector<24x32xf32>
    %77 = vector.extract_strided_slice %76 {offsets = [0, 0], sizes = [24, 16], strides = [1, 1]} : vector<24x32xf32> to vector<24x16xf32>
    %78 = vector.extract_strided_slice %76 {offsets = [0, 16], sizes = [24, 16], strides = [1, 1]} : vector<24x32xf32> to vector<24x16xf32>
    %79 = arith.negf %78 : vector<24x16xf32>
    %80 = math.exp %79 : vector<24x16xf32>
    %cst_39 = arith.constant 1.000000e+00 : f32
    %81 = vector.broadcast %cst_39 : f32 to vector<24x16xf32>
    %82 = arith.addf %81, %80 : vector<24x16xf32>
    %83 = arith.divf %81, %82 : vector<24x16xf32>
    %84 = arith.mulf %77, %83 : vector<24x16xf32>
    %85 = vector.extract_strided_slice %84 {offsets = [8, 0], sizes = [8, 16], strides = [1, 1]} : vector<24x16xf32> to vector<8x16xf32>
    %86 = vector.extract_strided_slice %84 {offsets = [0, 0], sizes = [8, 16], strides = [1, 1]} : vector<24x16xf32> to vector<8x16xf32>
    %87 = vector.extract_strided_slice %84 {offsets = [8, 0], sizes = [8, 16], strides = [1, 1]} : vector<24x16xf32> to vector<8x16xf32>
    %88 = vector.extract_strided_slice %84 {offsets = [16, 0], sizes = [8, 16], strides = [1, 1]} : vector<24x16xf32> to vector<8x16xf32>
    %cst_40 = arith.constant dense<0.000000e+00> : vector<24x16xf32>
    %89 = tpu.matmul %62, %84, %cst_40 {dimension_numbers = #tpu.dot_dimension_numbers<[1], [0], [0], [1], [0, 0, 1, 1], [], []>} : vector<24x24xf32>, vector<24x16xf32>, vector<24x16xf32> -> vector<24x16xf32>
    %90 = arith.addf %86, %88 : vector<8x16xf32>
    %91 = tpu.concatenate %87, %90, %87 in 0 : vector<8x16xf32>, vector<8x16xf32>, vector<8x16xf32> -> vector<24x16xf32>
    %92 = arith.addf %89, %91 : vector<24x16xf32>
    %c1_41 = arith.constant 1 : index
    %c0_42 = arith.constant 0 : index
    %c0_43 = arith.constant 0 : index
    %93 = vector.load %arg7[%c1_41, %c0_42, %c0_43] : memref<6x16x32xf32, #tpu.memory_space<vmem>>, vector<1x16x32xf32>
    %94 = vector.shape_cast %93 : vector<1x16x32xf32> to vector<16x32xf32>
    %cst_44 = arith.constant dense<0.000000e+00> : vector<24x32xf32>
    %95 = tpu.matmul %92, %94, %cst_44 {dimension_numbers = #tpu.dot_dimension_numbers<[1], [0], [0], [1], [0, 0, 1, 1], [], []>} : vector<24x16xf32>, vector<16x32xf32>, vector<24x32xf32> -> vector<24x32xf32>
    %c1_45 = arith.constant 1 : index
    %c0_46 = arith.constant 0 : index
    %c0_47 = arith.constant 0 : index
    %96 = vector.load %arg8[%c1_45, %c0_46, %c0_47] : memref<6x1x32xf32, #tpu.memory_space<vmem>>, vector<1x1x32xf32>
    %97 = vector.shape_cast %96 : vector<1x1x32xf32> to vector<1x32xf32>
    %98 = vector.broadcast %97 : vector<1x32xf32> to vector<24x32xf32>
    %99 = arith.addf %95, %98 : vector<24x32xf32>
    %100 = vector.extract_strided_slice %99 {offsets = [0, 0], sizes = [24, 16], strides = [1, 1]} : vector<24x32xf32> to vector<24x16xf32>
    %101 = vector.extract_strided_slice %99 {offsets = [0, 16], sizes = [24, 16], strides = [1, 1]} : vector<24x32xf32> to vector<24x16xf32>
    %102 = arith.negf %101 : vector<24x16xf32>
    %103 = math.exp %102 : vector<24x16xf32>
    %cst_48 = arith.constant 1.000000e+00 : f32
    %104 = vector.broadcast %cst_48 : f32 to vector<24x16xf32>
    %105 = arith.addf %104, %103 : vector<24x16xf32>
    %106 = arith.divf %104, %105 : vector<24x16xf32>
    %107 = arith.mulf %100, %106 : vector<24x16xf32>
    %108 = vector.extract_strided_slice %107 {offsets = [8, 0], sizes = [8, 16], strides = [1, 1]} : vector<24x16xf32> to vector<8x16xf32>
    %109 = arith.maximumf %85, %108 : vector<8x16xf32>
    %110 = vector.extract_strided_slice %9 {offsets = [16, 0], sizes = [24, 16], strides = [1, 1]} : vector<64x16xf32> to vector<24x16xf32>
    %c2 = arith.constant 2 : index
    %c0_49 = arith.constant 0 : index
    %c0_50 = arith.constant 0 : index
    %111 = vector.load %arg3[%c2, %c0_49, %c0_50] : memref<6x24x24xf32, #tpu.memory_space<vmem>>, vector<1x24x24xf32>
    %112 = vector.shape_cast %111 : vector<1x24x24xf32> to vector<24x24xf32>
    %113 = vector.extract_strided_slice %110 {offsets = [0, 0], sizes = [8, 16], strides = [1, 1]} : vector<24x16xf32> to vector<8x16xf32>
    %114 = vector.extract_strided_slice %110 {offsets = [8, 0], sizes = [8, 16], strides = [1, 1]} : vector<24x16xf32> to vector<8x16xf32>
    %115 = vector.extract_strided_slice %110 {offsets = [16, 0], sizes = [8, 16], strides = [1, 1]} : vector<24x16xf32> to vector<8x16xf32>
    %cst_51 = arith.constant dense<0.000000e+00> : vector<24x16xf32>
    %116 = tpu.matmul %112, %110, %cst_51 {dimension_numbers = #tpu.dot_dimension_numbers<[1], [0], [0], [1], [0, 0, 1, 1], [], []>} : vector<24x24xf32>, vector<24x16xf32>, vector<24x16xf32> -> vector<24x16xf32>
    %117 = arith.addf %113, %115 : vector<8x16xf32>
    %118 = tpu.concatenate %114, %117, %114 in 0 : vector<8x16xf32>, vector<8x16xf32>, vector<8x16xf32> -> vector<24x16xf32>
    %119 = arith.addf %116, %118 : vector<24x16xf32>
    %c2_52 = arith.constant 2 : index
    %c0_53 = arith.constant 0 : index
    %c0_54 = arith.constant 0 : index
    %120 = vector.load %arg5[%c2_52, %c0_53, %c0_54] : memref<6x16x32xf32, #tpu.memory_space<vmem>>, vector<1x16x32xf32>
    %121 = vector.shape_cast %120 : vector<1x16x32xf32> to vector<16x32xf32>
    %cst_55 = arith.constant dense<0.000000e+00> : vector<24x32xf32>
    %122 = tpu.matmul %119, %121, %cst_55 {dimension_numbers = #tpu.dot_dimension_numbers<[1], [0], [0], [1], [0, 0, 1, 1], [], []>} : vector<24x16xf32>, vector<16x32xf32>, vector<24x32xf32> -> vector<24x32xf32>
    %c2_56 = arith.constant 2 : index
    %c0_57 = arith.constant 0 : index
    %c0_58 = arith.constant 0 : index
    %123 = vector.load %arg6[%c2_56, %c0_57, %c0_58] : memref<6x1x32xf32, #tpu.memory_space<vmem>>, vector<1x1x32xf32>
    %124 = vector.shape_cast %123 : vector<1x1x32xf32> to vector<1x32xf32>
    %125 = vector.broadcast %124 : vector<1x32xf32> to vector<24x32xf32>
    %126 = arith.addf %122, %125 : vector<24x32xf32>
    %127 = vector.extract_strided_slice %126 {offsets = [0, 0], sizes = [24, 16], strides = [1, 1]} : vector<24x32xf32> to vector<24x16xf32>
    %128 = vector.extract_strided_slice %126 {offsets = [0, 16], sizes = [24, 16], strides = [1, 1]} : vector<24x32xf32> to vector<24x16xf32>
    %129 = arith.negf %128 : vector<24x16xf32>
    %130 = math.exp %129 : vector<24x16xf32>
    %cst_59 = arith.constant 1.000000e+00 : f32
    %131 = vector.broadcast %cst_59 : f32 to vector<24x16xf32>
    %132 = arith.addf %131, %130 : vector<24x16xf32>
    %133 = arith.divf %131, %132 : vector<24x16xf32>
    %134 = arith.mulf %127, %133 : vector<24x16xf32>
    %135 = vector.extract_strided_slice %134 {offsets = [8, 0], sizes = [8, 16], strides = [1, 1]} : vector<24x16xf32> to vector<8x16xf32>
    %136 = vector.extract_strided_slice %134 {offsets = [0, 0], sizes = [8, 16], strides = [1, 1]} : vector<24x16xf32> to vector<8x16xf32>
    %137 = vector.extract_strided_slice %134 {offsets = [8, 0], sizes = [8, 16], strides = [1, 1]} : vector<24x16xf32> to vector<8x16xf32>
    %138 = vector.extract_strided_slice %134 {offsets = [16, 0], sizes = [8, 16], strides = [1, 1]} : vector<24x16xf32> to vector<8x16xf32>
    %cst_60 = arith.constant dense<0.000000e+00> : vector<24x16xf32>
    %139 = tpu.matmul %112, %134, %cst_60 {dimension_numbers = #tpu.dot_dimension_numbers<[1], [0], [0], [1], [0, 0, 1, 1], [], []>} : vector<24x24xf32>, vector<24x16xf32>, vector<24x16xf32> -> vector<24x16xf32>
    %140 = arith.addf %136, %138 : vector<8x16xf32>
    %141 = tpu.concatenate %137, %140, %137 in 0 : vector<8x16xf32>, vector<8x16xf32>, vector<8x16xf32> -> vector<24x16xf32>
    %142 = arith.addf %139, %141 : vector<24x16xf32>
    %c2_61 = arith.constant 2 : index
    %c0_62 = arith.constant 0 : index
    %c0_63 = arith.constant 0 : index
    %143 = vector.load %arg7[%c2_61, %c0_62, %c0_63] : memref<6x16x32xf32, #tpu.memory_space<vmem>>, vector<1x16x32xf32>
    %144 = vector.shape_cast %143 : vector<1x16x32xf32> to vector<16x32xf32>
    %cst_64 = arith.constant dense<0.000000e+00> : vector<24x32xf32>
    %145 = tpu.matmul %142, %144, %cst_64 {dimension_numbers = #tpu.dot_dimension_numbers<[1], [0], [0], [1], [0, 0, 1, 1], [], []>} : vector<24x16xf32>, vector<16x32xf32>, vector<24x32xf32> -> vector<24x32xf32>
    %c2_65 = arith.constant 2 : index
    %c0_66 = arith.constant 0 : index
    %c0_67 = arith.constant 0 : index
    %146 = vector.load %arg8[%c2_65, %c0_66, %c0_67] : memref<6x1x32xf32, #tpu.memory_space<vmem>>, vector<1x1x32xf32>
    %147 = vector.shape_cast %146 : vector<1x1x32xf32> to vector<1x32xf32>
    %148 = vector.broadcast %147 : vector<1x32xf32> to vector<24x32xf32>
    %149 = arith.addf %145, %148 : vector<24x32xf32>
    %150 = vector.extract_strided_slice %149 {offsets = [0, 0], sizes = [24, 16], strides = [1, 1]} : vector<24x32xf32> to vector<24x16xf32>
    %151 = vector.extract_strided_slice %149 {offsets = [0, 16], sizes = [24, 16], strides = [1, 1]} : vector<24x32xf32> to vector<24x16xf32>
    %152 = arith.negf %151 : vector<24x16xf32>
    %153 = math.exp %152 : vector<24x16xf32>
    %cst_68 = arith.constant 1.000000e+00 : f32
    %154 = vector.broadcast %cst_68 : f32 to vector<24x16xf32>
    %155 = arith.addf %154, %153 : vector<24x16xf32>
    %156 = arith.divf %154, %155 : vector<24x16xf32>
    %157 = arith.mulf %150, %156 : vector<24x16xf32>
    %158 = vector.extract_strided_slice %157 {offsets = [8, 0], sizes = [8, 16], strides = [1, 1]} : vector<24x16xf32> to vector<8x16xf32>
    %159 = arith.maximumf %135, %158 : vector<8x16xf32>
    %160 = vector.extract_strided_slice %9 {offsets = [24, 0], sizes = [24, 16], strides = [1, 1]} : vector<64x16xf32> to vector<24x16xf32>
    %c3 = arith.constant 3 : index
    %c0_69 = arith.constant 0 : index
    %c0_70 = arith.constant 0 : index
    %161 = vector.load %arg3[%c3, %c0_69, %c0_70] : memref<6x24x24xf32, #tpu.memory_space<vmem>>, vector<1x24x24xf32>
    %162 = vector.shape_cast %161 : vector<1x24x24xf32> to vector<24x24xf32>
    %163 = vector.extract_strided_slice %160 {offsets = [0, 0], sizes = [8, 16], strides = [1, 1]} : vector<24x16xf32> to vector<8x16xf32>
    %164 = vector.extract_strided_slice %160 {offsets = [8, 0], sizes = [8, 16], strides = [1, 1]} : vector<24x16xf32> to vector<8x16xf32>
    %165 = vector.extract_strided_slice %160 {offsets = [16, 0], sizes = [8, 16], strides = [1, 1]} : vector<24x16xf32> to vector<8x16xf32>
    %cst_71 = arith.constant dense<0.000000e+00> : vector<24x16xf32>
    %166 = tpu.matmul %162, %160, %cst_71 {dimension_numbers = #tpu.dot_dimension_numbers<[1], [0], [0], [1], [0, 0, 1, 1], [], []>} : vector<24x24xf32>, vector<24x16xf32>, vector<24x16xf32> -> vector<24x16xf32>
    %167 = arith.addf %163, %165 : vector<8x16xf32>
    %168 = tpu.concatenate %164, %167, %164 in 0 : vector<8x16xf32>, vector<8x16xf32>, vector<8x16xf32> -> vector<24x16xf32>
    %169 = arith.addf %166, %168 : vector<24x16xf32>
    %c3_72 = arith.constant 3 : index
    %c0_73 = arith.constant 0 : index
    %c0_74 = arith.constant 0 : index
    %170 = vector.load %arg5[%c3_72, %c0_73, %c0_74] : memref<6x16x32xf32, #tpu.memory_space<vmem>>, vector<1x16x32xf32>
    %171 = vector.shape_cast %170 : vector<1x16x32xf32> to vector<16x32xf32>
    %cst_75 = arith.constant dense<0.000000e+00> : vector<24x32xf32>
    %172 = tpu.matmul %169, %171, %cst_75 {dimension_numbers = #tpu.dot_dimension_numbers<[1], [0], [0], [1], [0, 0, 1, 1], [], []>} : vector<24x16xf32>, vector<16x32xf32>, vector<24x32xf32> -> vector<24x32xf32>
    %c3_76 = arith.constant 3 : index
    %c0_77 = arith.constant 0 : index
    %c0_78 = arith.constant 0 : index
    %173 = vector.load %arg6[%c3_76, %c0_77, %c0_78] : memref<6x1x32xf32, #tpu.memory_space<vmem>>, vector<1x1x32xf32>
    %174 = vector.shape_cast %173 : vector<1x1x32xf32> to vector<1x32xf32>
    %175 = vector.broadcast %174 : vector<1x32xf32> to vector<24x32xf32>
    %176 = arith.addf %172, %175 : vector<24x32xf32>
    %177 = vector.extract_strided_slice %176 {offsets = [0, 0], sizes = [24, 16], strides = [1, 1]} : vector<24x32xf32> to vector<24x16xf32>
    %178 = vector.extract_strided_slice %176 {offsets = [0, 16], sizes = [24, 16], strides = [1, 1]} : vector<24x32xf32> to vector<24x16xf32>
    %179 = arith.negf %178 : vector<24x16xf32>
    %180 = math.exp %179 : vector<24x16xf32>
    %cst_79 = arith.constant 1.000000e+00 : f32
    %181 = vector.broadcast %cst_79 : f32 to vector<24x16xf32>
    %182 = arith.addf %181, %180 : vector<24x16xf32>
    %183 = arith.divf %181, %182 : vector<24x16xf32>
    %184 = arith.mulf %177, %183 : vector<24x16xf32>
    %185 = vector.extract_strided_slice %184 {offsets = [8, 0], sizes = [8, 16], strides = [1, 1]} : vector<24x16xf32> to vector<8x16xf32>
    %186 = vector.extract_strided_slice %184 {offsets = [0, 0], sizes = [8, 16], strides = [1, 1]} : vector<24x16xf32> to vector<8x16xf32>
    %187 = vector.extract_strided_slice %184 {offsets = [8, 0], sizes = [8, 16], strides = [1, 1]} : vector<24x16xf32> to vector<8x16xf32>
    %188 = vector.extract_strided_slice %184 {offsets = [16, 0], sizes = [8, 16], strides = [1, 1]} : vector<24x16xf32> to vector<8x16xf32>
    %cst_80 = arith.constant dense<0.000000e+00> : vector<24x16xf32>
    %189 = tpu.matmul %162, %184, %cst_80 {dimension_numbers = #tpu.dot_dimension_numbers<[1], [0], [0], [1], [0, 0, 1, 1], [], []>} : vector<24x24xf32>, vector<24x16xf32>, vector<24x16xf32> -> vector<24x16xf32>
    %190 = arith.addf %186, %188 : vector<8x16xf32>
    %191 = tpu.concatenate %187, %190, %187 in 0 : vector<8x16xf32>, vector<8x16xf32>, vector<8x16xf32> -> vector<24x16xf32>
    %192 = arith.addf %189, %191 : vector<24x16xf32>
    %c3_81 = arith.constant 3 : index
    %c0_82 = arith.constant 0 : index
    %c0_83 = arith.constant 0 : index
    %193 = vector.load %arg7[%c3_81, %c0_82, %c0_83] : memref<6x16x32xf32, #tpu.memory_space<vmem>>, vector<1x16x32xf32>
    %194 = vector.shape_cast %193 : vector<1x16x32xf32> to vector<16x32xf32>
    %cst_84 = arith.constant dense<0.000000e+00> : vector<24x32xf32>
    %195 = tpu.matmul %192, %194, %cst_84 {dimension_numbers = #tpu.dot_dimension_numbers<[1], [0], [0], [1], [0, 0, 1, 1], [], []>} : vector<24x16xf32>, vector<16x32xf32>, vector<24x32xf32> -> vector<24x32xf32>
    %c3_85 = arith.constant 3 : index
    %c0_86 = arith.constant 0 : index
    %c0_87 = arith.constant 0 : index
    %196 = vector.load %arg8[%c3_85, %c0_86, %c0_87] : memref<6x1x32xf32, #tpu.memory_space<vmem>>, vector<1x1x32xf32>
    %197 = vector.shape_cast %196 : vector<1x1x32xf32> to vector<1x32xf32>
    %198 = vector.broadcast %197 : vector<1x32xf32> to vector<24x32xf32>
    %199 = arith.addf %195, %198 : vector<24x32xf32>
    %200 = vector.extract_strided_slice %199 {offsets = [0, 0], sizes = [24, 16], strides = [1, 1]} : vector<24x32xf32> to vector<24x16xf32>
    %201 = vector.extract_strided_slice %199 {offsets = [0, 16], sizes = [24, 16], strides = [1, 1]} : vector<24x32xf32> to vector<24x16xf32>
    %202 = arith.negf %201 : vector<24x16xf32>
    %203 = math.exp %202 : vector<24x16xf32>
    %cst_88 = arith.constant 1.000000e+00 : f32
    %204 = vector.broadcast %cst_88 : f32 to vector<24x16xf32>
    %205 = arith.addf %204, %203 : vector<24x16xf32>
    %206 = arith.divf %204, %205 : vector<24x16xf32>
    %207 = arith.mulf %200, %206 : vector<24x16xf32>
    %208 = vector.extract_strided_slice %207 {offsets = [8, 0], sizes = [8, 16], strides = [1, 1]} : vector<24x16xf32> to vector<8x16xf32>
    %209 = arith.maximumf %185, %208 : vector<8x16xf32>
    %210 = vector.extract_strided_slice %9 {offsets = [32, 0], sizes = [24, 16], strides = [1, 1]} : vector<64x16xf32> to vector<24x16xf32>
    %c4 = arith.constant 4 : index
    %c0_89 = arith.constant 0 : index
    %c0_90 = arith.constant 0 : index
    %211 = vector.load %arg3[%c4, %c0_89, %c0_90] : memref<6x24x24xf32, #tpu.memory_space<vmem>>, vector<1x24x24xf32>
    %212 = vector.shape_cast %211 : vector<1x24x24xf32> to vector<24x24xf32>
    %213 = vector.extract_strided_slice %210 {offsets = [0, 0], sizes = [8, 16], strides = [1, 1]} : vector<24x16xf32> to vector<8x16xf32>
    %214 = vector.extract_strided_slice %210 {offsets = [8, 0], sizes = [8, 16], strides = [1, 1]} : vector<24x16xf32> to vector<8x16xf32>
    %215 = vector.extract_strided_slice %210 {offsets = [16, 0], sizes = [8, 16], strides = [1, 1]} : vector<24x16xf32> to vector<8x16xf32>
    %cst_91 = arith.constant dense<0.000000e+00> : vector<24x16xf32>
    %216 = tpu.matmul %212, %210, %cst_91 {dimension_numbers = #tpu.dot_dimension_numbers<[1], [0], [0], [1], [0, 0, 1, 1], [], []>} : vector<24x24xf32>, vector<24x16xf32>, vector<24x16xf32> -> vector<24x16xf32>
    %217 = arith.addf %213, %215 : vector<8x16xf32>
    %218 = tpu.concatenate %214, %217, %214 in 0 : vector<8x16xf32>, vector<8x16xf32>, vector<8x16xf32> -> vector<24x16xf32>
    %219 = arith.addf %216, %218 : vector<24x16xf32>
    %c4_92 = arith.constant 4 : index
    %c0_93 = arith.constant 0 : index
    %c0_94 = arith.constant 0 : index
    %220 = vector.load %arg5[%c4_92, %c0_93, %c0_94] : memref<6x16x32xf32, #tpu.memory_space<vmem>>, vector<1x16x32xf32>
    %221 = vector.shape_cast %220 : vector<1x16x32xf32> to vector<16x32xf32>
    %cst_95 = arith.constant dense<0.000000e+00> : vector<24x32xf32>
    %222 = tpu.matmul %219, %221, %cst_95 {dimension_numbers = #tpu.dot_dimension_numbers<[1], [0], [0], [1], [0, 0, 1, 1], [], []>} : vector<24x16xf32>, vector<16x32xf32>, vector<24x32xf32> -> vector<24x32xf32>
    %c4_96 = arith.constant 4 : index
    %c0_97 = arith.constant 0 : index
    %c0_98 = arith.constant 0 : index
    %223 = vector.load %arg6[%c4_96, %c0_97, %c0_98] : memref<6x1x32xf32, #tpu.memory_space<vmem>>, vector<1x1x32xf32>
    %224 = vector.shape_cast %223 : vector<1x1x32xf32> to vector<1x32xf32>
    %225 = vector.broadcast %224 : vector<1x32xf32> to vector<24x32xf32>
    %226 = arith.addf %222, %225 : vector<24x32xf32>
    %227 = vector.extract_strided_slice %226 {offsets = [0, 0], sizes = [24, 16], strides = [1, 1]} : vector<24x32xf32> to vector<24x16xf32>
    %228 = vector.extract_strided_slice %226 {offsets = [0, 16], sizes = [24, 16], strides = [1, 1]} : vector<24x32xf32> to vector<24x16xf32>
    %229 = arith.negf %228 : vector<24x16xf32>
    %230 = math.exp %229 : vector<24x16xf32>
    %cst_99 = arith.constant 1.000000e+00 : f32
    %231 = vector.broadcast %cst_99 : f32 to vector<24x16xf32>
    %232 = arith.addf %231, %230 : vector<24x16xf32>
    %233 = arith.divf %231, %232 : vector<24x16xf32>
    %234 = arith.mulf %227, %233 : vector<24x16xf32>
    %235 = vector.extract_strided_slice %234 {offsets = [8, 0], sizes = [8, 16], strides = [1, 1]} : vector<24x16xf32> to vector<8x16xf32>
    %236 = vector.extract_strided_slice %234 {offsets = [0, 0], sizes = [8, 16], strides = [1, 1]} : vector<24x16xf32> to vector<8x16xf32>
    %237 = vector.extract_strided_slice %234 {offsets = [8, 0], sizes = [8, 16], strides = [1, 1]} : vector<24x16xf32> to vector<8x16xf32>
    %238 = vector.extract_strided_slice %234 {offsets = [16, 0], sizes = [8, 16], strides = [1, 1]} : vector<24x16xf32> to vector<8x16xf32>
    %cst_100 = arith.constant dense<0.000000e+00> : vector<24x16xf32>
    %239 = tpu.matmul %212, %234, %cst_100 {dimension_numbers = #tpu.dot_dimension_numbers<[1], [0], [0], [1], [0, 0, 1, 1], [], []>} : vector<24x24xf32>, vector<24x16xf32>, vector<24x16xf32> -> vector<24x16xf32>
    %240 = arith.addf %236, %238 : vector<8x16xf32>
    %241 = tpu.concatenate %237, %240, %237 in 0 : vector<8x16xf32>, vector<8x16xf32>, vector<8x16xf32> -> vector<24x16xf32>
    %242 = arith.addf %239, %241 : vector<24x16xf32>
    %c4_101 = arith.constant 4 : index
    %c0_102 = arith.constant 0 : index
    %c0_103 = arith.constant 0 : index
    %243 = vector.load %arg7[%c4_101, %c0_102, %c0_103] : memref<6x16x32xf32, #tpu.memory_space<vmem>>, vector<1x16x32xf32>
    %244 = vector.shape_cast %243 : vector<1x16x32xf32> to vector<16x32xf32>
    %cst_104 = arith.constant dense<0.000000e+00> : vector<24x32xf32>
    %245 = tpu.matmul %242, %244, %cst_104 {dimension_numbers = #tpu.dot_dimension_numbers<[1], [0], [0], [1], [0, 0, 1, 1], [], []>} : vector<24x16xf32>, vector<16x32xf32>, vector<24x32xf32> -> vector<24x32xf32>
    %c4_105 = arith.constant 4 : index
    %c0_106 = arith.constant 0 : index
    %c0_107 = arith.constant 0 : index
    %246 = vector.load %arg8[%c4_105, %c0_106, %c0_107] : memref<6x1x32xf32, #tpu.memory_space<vmem>>, vector<1x1x32xf32>
    %247 = vector.shape_cast %246 : vector<1x1x32xf32> to vector<1x32xf32>
    %248 = vector.broadcast %247 : vector<1x32xf32> to vector<24x32xf32>
    %249 = arith.addf %245, %248 : vector<24x32xf32>
    %250 = vector.extract_strided_slice %249 {offsets = [0, 0], sizes = [24, 16], strides = [1, 1]} : vector<24x32xf32> to vector<24x16xf32>
    %251 = vector.extract_strided_slice %249 {offsets = [0, 16], sizes = [24, 16], strides = [1, 1]} : vector<24x32xf32> to vector<24x16xf32>
    %252 = arith.negf %251 : vector<24x16xf32>
    %253 = math.exp %252 : vector<24x16xf32>
    %cst_108 = arith.constant 1.000000e+00 : f32
    %254 = vector.broadcast %cst_108 : f32 to vector<24x16xf32>
    %255 = arith.addf %254, %253 : vector<24x16xf32>
    %256 = arith.divf %254, %255 : vector<24x16xf32>
    %257 = arith.mulf %250, %256 : vector<24x16xf32>
    %258 = vector.extract_strided_slice %257 {offsets = [8, 0], sizes = [8, 16], strides = [1, 1]} : vector<24x16xf32> to vector<8x16xf32>
    %259 = arith.maximumf %235, %258 : vector<8x16xf32>
    %260 = vector.extract_strided_slice %9 {offsets = [40, 0], sizes = [24, 16], strides = [1, 1]} : vector<64x16xf32> to vector<24x16xf32>
    %c5 = arith.constant 5 : index
    %c0_109 = arith.constant 0 : index
    %c0_110 = arith.constant 0 : index
    %261 = vector.load %arg3[%c5, %c0_109, %c0_110] : memref<6x24x24xf32, #tpu.memory_space<vmem>>, vector<1x24x24xf32>
    %262 = vector.shape_cast %261 : vector<1x24x24xf32> to vector<24x24xf32>
    %263 = vector.extract_strided_slice %260 {offsets = [0, 0], sizes = [8, 16], strides = [1, 1]} : vector<24x16xf32> to vector<8x16xf32>
    %264 = vector.extract_strided_slice %260 {offsets = [8, 0], sizes = [8, 16], strides = [1, 1]} : vector<24x16xf32> to vector<8x16xf32>
    %265 = vector.extract_strided_slice %260 {offsets = [16, 0], sizes = [8, 16], strides = [1, 1]} : vector<24x16xf32> to vector<8x16xf32>
    %cst_111 = arith.constant dense<0.000000e+00> : vector<24x16xf32>
    %266 = tpu.matmul %262, %260, %cst_111 {dimension_numbers = #tpu.dot_dimension_numbers<[1], [0], [0], [1], [0, 0, 1, 1], [], []>} : vector<24x24xf32>, vector<24x16xf32>, vector<24x16xf32> -> vector<24x16xf32>
    %267 = arith.addf %263, %265 : vector<8x16xf32>
    %268 = tpu.concatenate %264, %267, %264 in 0 : vector<8x16xf32>, vector<8x16xf32>, vector<8x16xf32> -> vector<24x16xf32>
    %269 = arith.addf %266, %268 : vector<24x16xf32>
    %c5_112 = arith.constant 5 : index
    %c0_113 = arith.constant 0 : index
    %c0_114 = arith.constant 0 : index
    %270 = vector.load %arg5[%c5_112, %c0_113, %c0_114] : memref<6x16x32xf32, #tpu.memory_space<vmem>>, vector<1x16x32xf32>
    %271 = vector.shape_cast %270 : vector<1x16x32xf32> to vector<16x32xf32>
    %cst_115 = arith.constant dense<0.000000e+00> : vector<24x32xf32>
    %272 = tpu.matmul %269, %271, %cst_115 {dimension_numbers = #tpu.dot_dimension_numbers<[1], [0], [0], [1], [0, 0, 1, 1], [], []>} : vector<24x16xf32>, vector<16x32xf32>, vector<24x32xf32> -> vector<24x32xf32>
    %c5_116 = arith.constant 5 : index
    %c0_117 = arith.constant 0 : index
    %c0_118 = arith.constant 0 : index
    %273 = vector.load %arg6[%c5_116, %c0_117, %c0_118] : memref<6x1x32xf32, #tpu.memory_space<vmem>>, vector<1x1x32xf32>
    %274 = vector.shape_cast %273 : vector<1x1x32xf32> to vector<1x32xf32>
    %275 = vector.broadcast %274 : vector<1x32xf32> to vector<24x32xf32>
    %276 = arith.addf %272, %275 : vector<24x32xf32>
    %277 = vector.extract_strided_slice %276 {offsets = [0, 0], sizes = [24, 16], strides = [1, 1]} : vector<24x32xf32> to vector<24x16xf32>
    %278 = vector.extract_strided_slice %276 {offsets = [0, 16], sizes = [24, 16], strides = [1, 1]} : vector<24x32xf32> to vector<24x16xf32>
    %279 = arith.negf %278 : vector<24x16xf32>
    %280 = math.exp %279 : vector<24x16xf32>
    %cst_119 = arith.constant 1.000000e+00 : f32
    %281 = vector.broadcast %cst_119 : f32 to vector<24x16xf32>
    %282 = arith.addf %281, %280 : vector<24x16xf32>
    %283 = arith.divf %281, %282 : vector<24x16xf32>
    %284 = arith.mulf %277, %283 : vector<24x16xf32>
    %285 = vector.extract_strided_slice %284 {offsets = [8, 0], sizes = [8, 16], strides = [1, 1]} : vector<24x16xf32> to vector<8x16xf32>
    %286 = vector.extract_strided_slice %284 {offsets = [0, 0], sizes = [8, 16], strides = [1, 1]} : vector<24x16xf32> to vector<8x16xf32>
    %287 = vector.extract_strided_slice %284 {offsets = [8, 0], sizes = [8, 16], strides = [1, 1]} : vector<24x16xf32> to vector<8x16xf32>
    %288 = vector.extract_strided_slice %284 {offsets = [16, 0], sizes = [8, 16], strides = [1, 1]} : vector<24x16xf32> to vector<8x16xf32>
    %cst_120 = arith.constant dense<0.000000e+00> : vector<24x16xf32>
    %289 = tpu.matmul %262, %284, %cst_120 {dimension_numbers = #tpu.dot_dimension_numbers<[1], [0], [0], [1], [0, 0, 1, 1], [], []>} : vector<24x24xf32>, vector<24x16xf32>, vector<24x16xf32> -> vector<24x16xf32>
    %290 = arith.addf %286, %288 : vector<8x16xf32>
    %291 = tpu.concatenate %287, %290, %287 in 0 : vector<8x16xf32>, vector<8x16xf32>, vector<8x16xf32> -> vector<24x16xf32>
    %292 = arith.addf %289, %291 : vector<24x16xf32>
    %c5_121 = arith.constant 5 : index
    %c0_122 = arith.constant 0 : index
    %c0_123 = arith.constant 0 : index
    %293 = vector.load %arg7[%c5_121, %c0_122, %c0_123] : memref<6x16x32xf32, #tpu.memory_space<vmem>>, vector<1x16x32xf32>
    %294 = vector.shape_cast %293 : vector<1x16x32xf32> to vector<16x32xf32>
    %cst_124 = arith.constant dense<0.000000e+00> : vector<24x32xf32>
    %295 = tpu.matmul %292, %294, %cst_124 {dimension_numbers = #tpu.dot_dimension_numbers<[1], [0], [0], [1], [0, 0, 1, 1], [], []>} : vector<24x16xf32>, vector<16x32xf32>, vector<24x32xf32> -> vector<24x32xf32>
    %c5_125 = arith.constant 5 : index
    %c0_126 = arith.constant 0 : index
    %c0_127 = arith.constant 0 : index
    %296 = vector.load %arg8[%c5_125, %c0_126, %c0_127] : memref<6x1x32xf32, #tpu.memory_space<vmem>>, vector<1x1x32xf32>
    %297 = vector.shape_cast %296 : vector<1x1x32xf32> to vector<1x32xf32>
    %298 = vector.broadcast %297 : vector<1x32xf32> to vector<24x32xf32>
    %299 = arith.addf %295, %298 : vector<24x32xf32>
    %300 = vector.extract_strided_slice %299 {offsets = [0, 0], sizes = [24, 16], strides = [1, 1]} : vector<24x32xf32> to vector<24x16xf32>
    %301 = vector.extract_strided_slice %299 {offsets = [0, 16], sizes = [24, 16], strides = [1, 1]} : vector<24x32xf32> to vector<24x16xf32>
    %302 = arith.negf %301 : vector<24x16xf32>
    %303 = math.exp %302 : vector<24x16xf32>
    %cst_128 = arith.constant 1.000000e+00 : f32
    %304 = vector.broadcast %cst_128 : f32 to vector<24x16xf32>
    %305 = arith.addf %304, %303 : vector<24x16xf32>
    %306 = arith.divf %304, %305 : vector<24x16xf32>
    %307 = arith.mulf %300, %306 : vector<24x16xf32>
    %308 = vector.extract_strided_slice %307 {offsets = [8, 0], sizes = [8, 16], strides = [1, 1]} : vector<24x16xf32> to vector<8x16xf32>
    %309 = arith.maximumf %285, %308 : vector<8x16xf32>
    %310 = tpu.concatenate %59, %109, %159, %209, %259, %309 in 0 : vector<8x16xf32>, vector<8x16xf32>, vector<8x16xf32>, vector<8x16xf32>, vector<8x16xf32>, vector<8x16xf32> -> vector<48x16xf32>
    %c0_129 = arith.constant 0 : index
    %c0_130 = arith.constant 0 : index
    %311 = vector.load %arg9[%c0_129, %c0_130] : memref<48x16xf32, #tpu.memory_space<vmem>>, vector<48x16xf32>
    %312 = arith.addf %310, %311 : vector<48x16xf32>
    %313 = vector.extract_strided_slice %312 {offsets = [0, 0], sizes = [24, 16], strides = [1, 1]} : vector<48x16xf32> to vector<24x16xf32>
    %c0_131 = arith.constant 0 : index
    %c0_132 = arith.constant 0 : index
    %c0_133 = arith.constant 0 : index
    %314 = vector.load %arg3[%c0_131, %c0_132, %c0_133] : memref<6x24x24xf32, #tpu.memory_space<vmem>>, vector<1x24x24xf32>
    %315 = vector.shape_cast %314 : vector<1x24x24xf32> to vector<24x24xf32>
    %316 = vector.extract_strided_slice %313 {offsets = [0, 0], sizes = [8, 16], strides = [1, 1]} : vector<24x16xf32> to vector<8x16xf32>
    %317 = vector.extract_strided_slice %313 {offsets = [8, 0], sizes = [8, 16], strides = [1, 1]} : vector<24x16xf32> to vector<8x16xf32>
    %318 = vector.extract_strided_slice %313 {offsets = [16, 0], sizes = [8, 16], strides = [1, 1]} : vector<24x16xf32> to vector<8x16xf32>
    %cst_134 = arith.constant dense<0.000000e+00> : vector<24x16xf32>
    %319 = tpu.matmul %315, %313, %cst_134 {dimension_numbers = #tpu.dot_dimension_numbers<[1], [0], [0], [1], [0, 0, 1, 1], [], []>} : vector<24x24xf32>, vector<24x16xf32>, vector<24x16xf32> -> vector<24x16xf32>
    %320 = arith.addf %316, %318 : vector<8x16xf32>
    %321 = tpu.concatenate %317, %320, %317 in 0 : vector<8x16xf32>, vector<8x16xf32>, vector<8x16xf32> -> vector<24x16xf32>
    %322 = arith.addf %319, %321 : vector<24x16xf32>
    %c0_135 = arith.constant 0 : index
    %c0_136 = arith.constant 0 : index
    %c0_137 = arith.constant 0 : index
    %323 = vector.load %arg10[%c0_135, %c0_136, %c0_137] : memref<4x16x32xf32, #tpu.memory_space<vmem>>, vector<1x16x32xf32>
    %324 = vector.shape_cast %323 : vector<1x16x32xf32> to vector<16x32xf32>
    %cst_138 = arith.constant dense<0.000000e+00> : vector<24x32xf32>
    %325 = tpu.matmul %322, %324, %cst_138 {dimension_numbers = #tpu.dot_dimension_numbers<[1], [0], [0], [1], [0, 0, 1, 1], [], []>} : vector<24x16xf32>, vector<16x32xf32>, vector<24x32xf32> -> vector<24x32xf32>
    %c0_139 = arith.constant 0 : index
    %c0_140 = arith.constant 0 : index
    %c0_141 = arith.constant 0 : index
    %326 = vector.load %arg11[%c0_139, %c0_140, %c0_141] : memref<4x1x32xf32, #tpu.memory_space<vmem>>, vector<1x1x32xf32>
    %327 = vector.shape_cast %326 : vector<1x1x32xf32> to vector<1x32xf32>
    %328 = vector.broadcast %327 : vector<1x32xf32> to vector<24x32xf32>
    %329 = arith.addf %325, %328 : vector<24x32xf32>
    %330 = vector.extract_strided_slice %329 {offsets = [0, 0], sizes = [24, 16], strides = [1, 1]} : vector<24x32xf32> to vector<24x16xf32>
    %331 = vector.extract_strided_slice %329 {offsets = [0, 16], sizes = [24, 16], strides = [1, 1]} : vector<24x32xf32> to vector<24x16xf32>
    %332 = arith.negf %331 : vector<24x16xf32>
    %333 = math.exp %332 : vector<24x16xf32>
    %cst_142 = arith.constant 1.000000e+00 : f32
    %334 = vector.broadcast %cst_142 : f32 to vector<24x16xf32>
    %335 = arith.addf %334, %333 : vector<24x16xf32>
    %336 = arith.divf %334, %335 : vector<24x16xf32>
    %337 = arith.mulf %330, %336 : vector<24x16xf32>
    %338 = vector.extract_strided_slice %337 {offsets = [8, 0], sizes = [8, 16], strides = [1, 1]} : vector<24x16xf32> to vector<8x16xf32>
    %339 = vector.extract_strided_slice %337 {offsets = [0, 0], sizes = [8, 16], strides = [1, 1]} : vector<24x16xf32> to vector<8x16xf32>
    %340 = vector.extract_strided_slice %337 {offsets = [8, 0], sizes = [8, 16], strides = [1, 1]} : vector<24x16xf32> to vector<8x16xf32>
    %341 = vector.extract_strided_slice %337 {offsets = [16, 0], sizes = [8, 16], strides = [1, 1]} : vector<24x16xf32> to vector<8x16xf32>
    %cst_143 = arith.constant dense<0.000000e+00> : vector<24x16xf32>
    %342 = tpu.matmul %315, %337, %cst_143 {dimension_numbers = #tpu.dot_dimension_numbers<[1], [0], [0], [1], [0, 0, 1, 1], [], []>} : vector<24x24xf32>, vector<24x16xf32>, vector<24x16xf32> -> vector<24x16xf32>
    %343 = arith.addf %339, %341 : vector<8x16xf32>
    %344 = tpu.concatenate %340, %343, %340 in 0 : vector<8x16xf32>, vector<8x16xf32>, vector<8x16xf32> -> vector<24x16xf32>
    %345 = arith.addf %342, %344 : vector<24x16xf32>
    %c0_144 = arith.constant 0 : index
    %c0_145 = arith.constant 0 : index
    %c0_146 = arith.constant 0 : index
    %346 = vector.load %arg12[%c0_144, %c0_145, %c0_146] : memref<4x16x32xf32, #tpu.memory_space<vmem>>, vector<1x16x32xf32>
    %347 = vector.shape_cast %346 : vector<1x16x32xf32> to vector<16x32xf32>
    %cst_147 = arith.constant dense<0.000000e+00> : vector<24x32xf32>
    %348 = tpu.matmul %345, %347, %cst_147 {dimension_numbers = #tpu.dot_dimension_numbers<[1], [0], [0], [1], [0, 0, 1, 1], [], []>} : vector<24x16xf32>, vector<16x32xf32>, vector<24x32xf32> -> vector<24x32xf32>
    %c0_148 = arith.constant 0 : index
    %c0_149 = arith.constant 0 : index
    %c0_150 = arith.constant 0 : index
    %349 = vector.load %arg13[%c0_148, %c0_149, %c0_150] : memref<4x1x32xf32, #tpu.memory_space<vmem>>, vector<1x1x32xf32>
    %350 = vector.shape_cast %349 : vector<1x1x32xf32> to vector<1x32xf32>
    %351 = vector.broadcast %350 : vector<1x32xf32> to vector<24x32xf32>
    %352 = arith.addf %348, %351 : vector<24x32xf32>
    %353 = vector.extract_strided_slice %352 {offsets = [0, 0], sizes = [24, 16], strides = [1, 1]} : vector<24x32xf32> to vector<24x16xf32>
    %354 = vector.extract_strided_slice %352 {offsets = [0, 16], sizes = [24, 16], strides = [1, 1]} : vector<24x32xf32> to vector<24x16xf32>
    %355 = arith.negf %354 : vector<24x16xf32>
    %356 = math.exp %355 : vector<24x16xf32>
    %cst_151 = arith.constant 1.000000e+00 : f32
    %357 = vector.broadcast %cst_151 : f32 to vector<24x16xf32>
    %358 = arith.addf %357, %356 : vector<24x16xf32>
    %359 = arith.divf %357, %358 : vector<24x16xf32>
    %360 = arith.mulf %353, %359 : vector<24x16xf32>
    %361 = vector.extract_strided_slice %360 {offsets = [8, 0], sizes = [8, 16], strides = [1, 1]} : vector<24x16xf32> to vector<8x16xf32>
    %362 = arith.maximumf %338, %361 : vector<8x16xf32>
    %363 = vector.extract_strided_slice %312 {offsets = [8, 0], sizes = [24, 16], strides = [1, 1]} : vector<48x16xf32> to vector<24x16xf32>
    %c1_152 = arith.constant 1 : index
    %c0_153 = arith.constant 0 : index
    %c0_154 = arith.constant 0 : index
    %364 = vector.load %arg3[%c1_152, %c0_153, %c0_154] : memref<6x24x24xf32, #tpu.memory_space<vmem>>, vector<1x24x24xf32>
    %365 = vector.shape_cast %364 : vector<1x24x24xf32> to vector<24x24xf32>
    %366 = vector.extract_strided_slice %363 {offsets = [0, 0], sizes = [8, 16], strides = [1, 1]} : vector<24x16xf32> to vector<8x16xf32>
    %367 = vector.extract_strided_slice %363 {offsets = [8, 0], sizes = [8, 16], strides = [1, 1]} : vector<24x16xf32> to vector<8x16xf32>
    %368 = vector.extract_strided_slice %363 {offsets = [16, 0], sizes = [8, 16], strides = [1, 1]} : vector<24x16xf32> to vector<8x16xf32>
    %cst_155 = arith.constant dense<0.000000e+00> : vector<24x16xf32>
    %369 = tpu.matmul %365, %363, %cst_155 {dimension_numbers = #tpu.dot_dimension_numbers<[1], [0], [0], [1], [0, 0, 1, 1], [], []>} : vector<24x24xf32>, vector<24x16xf32>, vector<24x16xf32> -> vector<24x16xf32>
    %370 = arith.addf %366, %368 : vector<8x16xf32>
    %371 = tpu.concatenate %367, %370, %367 in 0 : vector<8x16xf32>, vector<8x16xf32>, vector<8x16xf32> -> vector<24x16xf32>
    %372 = arith.addf %369, %371 : vector<24x16xf32>
    %c1_156 = arith.constant 1 : index
    %c0_157 = arith.constant 0 : index
    %c0_158 = arith.constant 0 : index
    %373 = vector.load %arg10[%c1_156, %c0_157, %c0_158] : memref<4x16x32xf32, #tpu.memory_space<vmem>>, vector<1x16x32xf32>
    %374 = vector.shape_cast %373 : vector<1x16x32xf32> to vector<16x32xf32>
    %cst_159 = arith.constant dense<0.000000e+00> : vector<24x32xf32>
    %375 = tpu.matmul %372, %374, %cst_159 {dimension_numbers = #tpu.dot_dimension_numbers<[1], [0], [0], [1], [0, 0, 1, 1], [], []>} : vector<24x16xf32>, vector<16x32xf32>, vector<24x32xf32> -> vector<24x32xf32>
    %c1_160 = arith.constant 1 : index
    %c0_161 = arith.constant 0 : index
    %c0_162 = arith.constant 0 : index
    %376 = vector.load %arg11[%c1_160, %c0_161, %c0_162] : memref<4x1x32xf32, #tpu.memory_space<vmem>>, vector<1x1x32xf32>
    %377 = vector.shape_cast %376 : vector<1x1x32xf32> to vector<1x32xf32>
    %378 = vector.broadcast %377 : vector<1x32xf32> to vector<24x32xf32>
    %379 = arith.addf %375, %378 : vector<24x32xf32>
    %380 = vector.extract_strided_slice %379 {offsets = [0, 0], sizes = [24, 16], strides = [1, 1]} : vector<24x32xf32> to vector<24x16xf32>
    %381 = vector.extract_strided_slice %379 {offsets = [0, 16], sizes = [24, 16], strides = [1, 1]} : vector<24x32xf32> to vector<24x16xf32>
    %382 = arith.negf %381 : vector<24x16xf32>
    %383 = math.exp %382 : vector<24x16xf32>
    %cst_163 = arith.constant 1.000000e+00 : f32
    %384 = vector.broadcast %cst_163 : f32 to vector<24x16xf32>
    %385 = arith.addf %384, %383 : vector<24x16xf32>
    %386 = arith.divf %384, %385 : vector<24x16xf32>
    %387 = arith.mulf %380, %386 : vector<24x16xf32>
    %388 = vector.extract_strided_slice %387 {offsets = [8, 0], sizes = [8, 16], strides = [1, 1]} : vector<24x16xf32> to vector<8x16xf32>
    %389 = vector.extract_strided_slice %387 {offsets = [0, 0], sizes = [8, 16], strides = [1, 1]} : vector<24x16xf32> to vector<8x16xf32>
    %390 = vector.extract_strided_slice %387 {offsets = [8, 0], sizes = [8, 16], strides = [1, 1]} : vector<24x16xf32> to vector<8x16xf32>
    %391 = vector.extract_strided_slice %387 {offsets = [16, 0], sizes = [8, 16], strides = [1, 1]} : vector<24x16xf32> to vector<8x16xf32>
    %cst_164 = arith.constant dense<0.000000e+00> : vector<24x16xf32>
    %392 = tpu.matmul %365, %387, %cst_164 {dimension_numbers = #tpu.dot_dimension_numbers<[1], [0], [0], [1], [0, 0, 1, 1], [], []>} : vector<24x24xf32>, vector<24x16xf32>, vector<24x16xf32> -> vector<24x16xf32>
    %393 = arith.addf %389, %391 : vector<8x16xf32>
    %394 = tpu.concatenate %390, %393, %390 in 0 : vector<8x16xf32>, vector<8x16xf32>, vector<8x16xf32> -> vector<24x16xf32>
    %395 = arith.addf %392, %394 : vector<24x16xf32>
    %c1_165 = arith.constant 1 : index
    %c0_166 = arith.constant 0 : index
    %c0_167 = arith.constant 0 : index
    %396 = vector.load %arg12[%c1_165, %c0_166, %c0_167] : memref<4x16x32xf32, #tpu.memory_space<vmem>>, vector<1x16x32xf32>
    %397 = vector.shape_cast %396 : vector<1x16x32xf32> to vector<16x32xf32>
    %cst_168 = arith.constant dense<0.000000e+00> : vector<24x32xf32>
    %398 = tpu.matmul %395, %397, %cst_168 {dimension_numbers = #tpu.dot_dimension_numbers<[1], [0], [0], [1], [0, 0, 1, 1], [], []>} : vector<24x16xf32>, vector<16x32xf32>, vector<24x32xf32> -> vector<24x32xf32>
    %c1_169 = arith.constant 1 : index
    %c0_170 = arith.constant 0 : index
    %c0_171 = arith.constant 0 : index
    %399 = vector.load %arg13[%c1_169, %c0_170, %c0_171] : memref<4x1x32xf32, #tpu.memory_space<vmem>>, vector<1x1x32xf32>
    %400 = vector.shape_cast %399 : vector<1x1x32xf32> to vector<1x32xf32>
    %401 = vector.broadcast %400 : vector<1x32xf32> to vector<24x32xf32>
    %402 = arith.addf %398, %401 : vector<24x32xf32>
    %403 = vector.extract_strided_slice %402 {offsets = [0, 0], sizes = [24, 16], strides = [1, 1]} : vector<24x32xf32> to vector<24x16xf32>
    %404 = vector.extract_strided_slice %402 {offsets = [0, 16], sizes = [24, 16], strides = [1, 1]} : vector<24x32xf32> to vector<24x16xf32>
    %405 = arith.negf %404 : vector<24x16xf32>
    %406 = math.exp %405 : vector<24x16xf32>
    %cst_172 = arith.constant 1.000000e+00 : f32
    %407 = vector.broadcast %cst_172 : f32 to vector<24x16xf32>
    %408 = arith.addf %407, %406 : vector<24x16xf32>
    %409 = arith.divf %407, %408 : vector<24x16xf32>
    %410 = arith.mulf %403, %409 : vector<24x16xf32>
    %411 = vector.extract_strided_slice %410 {offsets = [8, 0], sizes = [8, 16], strides = [1, 1]} : vector<24x16xf32> to vector<8x16xf32>
    %412 = arith.maximumf %388, %411 : vector<8x16xf32>
    %413 = vector.extract_strided_slice %312 {offsets = [16, 0], sizes = [24, 16], strides = [1, 1]} : vector<48x16xf32> to vector<24x16xf32>
    %c2_173 = arith.constant 2 : index
    %c0_174 = arith.constant 0 : index
    %c0_175 = arith.constant 0 : index
    %414 = vector.load %arg3[%c2_173, %c0_174, %c0_175] : memref<6x24x24xf32, #tpu.memory_space<vmem>>, vector<1x24x24xf32>
    %415 = vector.shape_cast %414 : vector<1x24x24xf32> to vector<24x24xf32>
    %416 = vector.extract_strided_slice %413 {offsets = [0, 0], sizes = [8, 16], strides = [1, 1]} : vector<24x16xf32> to vector<8x16xf32>
    %417 = vector.extract_strided_slice %413 {offsets = [8, 0], sizes = [8, 16], strides = [1, 1]} : vector<24x16xf32> to vector<8x16xf32>
    %418 = vector.extract_strided_slice %413 {offsets = [16, 0], sizes = [8, 16], strides = [1, 1]} : vector<24x16xf32> to vector<8x16xf32>
    %cst_176 = arith.constant dense<0.000000e+00> : vector<24x16xf32>
    %419 = tpu.matmul %415, %413, %cst_176 {dimension_numbers = #tpu.dot_dimension_numbers<[1], [0], [0], [1], [0, 0, 1, 1], [], []>} : vector<24x24xf32>, vector<24x16xf32>, vector<24x16xf32> -> vector<24x16xf32>
    %420 = arith.addf %416, %418 : vector<8x16xf32>
    %421 = tpu.concatenate %417, %420, %417 in 0 : vector<8x16xf32>, vector<8x16xf32>, vector<8x16xf32> -> vector<24x16xf32>
    %422 = arith.addf %419, %421 : vector<24x16xf32>
    %c2_177 = arith.constant 2 : index
    %c0_178 = arith.constant 0 : index
    %c0_179 = arith.constant 0 : index
    %423 = vector.load %arg10[%c2_177, %c0_178, %c0_179] : memref<4x16x32xf32, #tpu.memory_space<vmem>>, vector<1x16x32xf32>
    %424 = vector.shape_cast %423 : vector<1x16x32xf32> to vector<16x32xf32>
    %cst_180 = arith.constant dense<0.000000e+00> : vector<24x32xf32>
    %425 = tpu.matmul %422, %424, %cst_180 {dimension_numbers = #tpu.dot_dimension_numbers<[1], [0], [0], [1], [0, 0, 1, 1], [], []>} : vector<24x16xf32>, vector<16x32xf32>, vector<24x32xf32> -> vector<24x32xf32>
    %c2_181 = arith.constant 2 : index
    %c0_182 = arith.constant 0 : index
    %c0_183 = arith.constant 0 : index
    %426 = vector.load %arg11[%c2_181, %c0_182, %c0_183] : memref<4x1x32xf32, #tpu.memory_space<vmem>>, vector<1x1x32xf32>
    %427 = vector.shape_cast %426 : vector<1x1x32xf32> to vector<1x32xf32>
    %428 = vector.broadcast %427 : vector<1x32xf32> to vector<24x32xf32>
    %429 = arith.addf %425, %428 : vector<24x32xf32>
    %430 = vector.extract_strided_slice %429 {offsets = [0, 0], sizes = [24, 16], strides = [1, 1]} : vector<24x32xf32> to vector<24x16xf32>
    %431 = vector.extract_strided_slice %429 {offsets = [0, 16], sizes = [24, 16], strides = [1, 1]} : vector<24x32xf32> to vector<24x16xf32>
    %432 = arith.negf %431 : vector<24x16xf32>
    %433 = math.exp %432 : vector<24x16xf32>
    %cst_184 = arith.constant 1.000000e+00 : f32
    %434 = vector.broadcast %cst_184 : f32 to vector<24x16xf32>
    %435 = arith.addf %434, %433 : vector<24x16xf32>
    %436 = arith.divf %434, %435 : vector<24x16xf32>
    %437 = arith.mulf %430, %436 : vector<24x16xf32>
    %438 = vector.extract_strided_slice %437 {offsets = [8, 0], sizes = [8, 16], strides = [1, 1]} : vector<24x16xf32> to vector<8x16xf32>
    %439 = vector.extract_strided_slice %437 {offsets = [0, 0], sizes = [8, 16], strides = [1, 1]} : vector<24x16xf32> to vector<8x16xf32>
    %440 = vector.extract_strided_slice %437 {offsets = [8, 0], sizes = [8, 16], strides = [1, 1]} : vector<24x16xf32> to vector<8x16xf32>
    %441 = vector.extract_strided_slice %437 {offsets = [16, 0], sizes = [8, 16], strides = [1, 1]} : vector<24x16xf32> to vector<8x16xf32>
    %cst_185 = arith.constant dense<0.000000e+00> : vector<24x16xf32>
    %442 = tpu.matmul %415, %437, %cst_185 {dimension_numbers = #tpu.dot_dimension_numbers<[1], [0], [0], [1], [0, 0, 1, 1], [], []>} : vector<24x24xf32>, vector<24x16xf32>, vector<24x16xf32> -> vector<24x16xf32>
    %443 = arith.addf %439, %441 : vector<8x16xf32>
    %444 = tpu.concatenate %440, %443, %440 in 0 : vector<8x16xf32>, vector<8x16xf32>, vector<8x16xf32> -> vector<24x16xf32>
    %445 = arith.addf %442, %444 : vector<24x16xf32>
    %c2_186 = arith.constant 2 : index
    %c0_187 = arith.constant 0 : index
    %c0_188 = arith.constant 0 : index
    %446 = vector.load %arg12[%c2_186, %c0_187, %c0_188] : memref<4x16x32xf32, #tpu.memory_space<vmem>>, vector<1x16x32xf32>
    %447 = vector.shape_cast %446 : vector<1x16x32xf32> to vector<16x32xf32>
    %cst_189 = arith.constant dense<0.000000e+00> : vector<24x32xf32>
    %448 = tpu.matmul %445, %447, %cst_189 {dimension_numbers = #tpu.dot_dimension_numbers<[1], [0], [0], [1], [0, 0, 1, 1], [], []>} : vector<24x16xf32>, vector<16x32xf32>, vector<24x32xf32> -> vector<24x32xf32>
    %c2_190 = arith.constant 2 : index
    %c0_191 = arith.constant 0 : index
    %c0_192 = arith.constant 0 : index
    %449 = vector.load %arg13[%c2_190, %c0_191, %c0_192] : memref<4x1x32xf32, #tpu.memory_space<vmem>>, vector<1x1x32xf32>
    %450 = vector.shape_cast %449 : vector<1x1x32xf32> to vector<1x32xf32>
    %451 = vector.broadcast %450 : vector<1x32xf32> to vector<24x32xf32>
    %452 = arith.addf %448, %451 : vector<24x32xf32>
    %453 = vector.extract_strided_slice %452 {offsets = [0, 0], sizes = [24, 16], strides = [1, 1]} : vector<24x32xf32> to vector<24x16xf32>
    %454 = vector.extract_strided_slice %452 {offsets = [0, 16], sizes = [24, 16], strides = [1, 1]} : vector<24x32xf32> to vector<24x16xf32>
    %455 = arith.negf %454 : vector<24x16xf32>
    %456 = math.exp %455 : vector<24x16xf32>
    %cst_193 = arith.constant 1.000000e+00 : f32
    %457 = vector.broadcast %cst_193 : f32 to vector<24x16xf32>
    %458 = arith.addf %457, %456 : vector<24x16xf32>
    %459 = arith.divf %457, %458 : vector<24x16xf32>
    %460 = arith.mulf %453, %459 : vector<24x16xf32>
    %461 = vector.extract_strided_slice %460 {offsets = [8, 0], sizes = [8, 16], strides = [1, 1]} : vector<24x16xf32> to vector<8x16xf32>
    %462 = arith.maximumf %438, %461 : vector<8x16xf32>
    %463 = vector.extract_strided_slice %312 {offsets = [24, 0], sizes = [24, 16], strides = [1, 1]} : vector<48x16xf32> to vector<24x16xf32>
    %c3_194 = arith.constant 3 : index
    %c0_195 = arith.constant 0 : index
    %c0_196 = arith.constant 0 : index
    %464 = vector.load %arg3[%c3_194, %c0_195, %c0_196] : memref<6x24x24xf32, #tpu.memory_space<vmem>>, vector<1x24x24xf32>
    %465 = vector.shape_cast %464 : vector<1x24x24xf32> to vector<24x24xf32>
    %466 = vector.extract_strided_slice %463 {offsets = [0, 0], sizes = [8, 16], strides = [1, 1]} : vector<24x16xf32> to vector<8x16xf32>
    %467 = vector.extract_strided_slice %463 {offsets = [8, 0], sizes = [8, 16], strides = [1, 1]} : vector<24x16xf32> to vector<8x16xf32>
    %468 = vector.extract_strided_slice %463 {offsets = [16, 0], sizes = [8, 16], strides = [1, 1]} : vector<24x16xf32> to vector<8x16xf32>
    %cst_197 = arith.constant dense<0.000000e+00> : vector<24x16xf32>
    %469 = tpu.matmul %465, %463, %cst_197 {dimension_numbers = #tpu.dot_dimension_numbers<[1], [0], [0], [1], [0, 0, 1, 1], [], []>} : vector<24x24xf32>, vector<24x16xf32>, vector<24x16xf32> -> vector<24x16xf32>
    %470 = arith.addf %466, %468 : vector<8x16xf32>
    %471 = tpu.concatenate %467, %470, %467 in 0 : vector<8x16xf32>, vector<8x16xf32>, vector<8x16xf32> -> vector<24x16xf32>
    %472 = arith.addf %469, %471 : vector<24x16xf32>
    %c3_198 = arith.constant 3 : index
    %c0_199 = arith.constant 0 : index
    %c0_200 = arith.constant 0 : index
    %473 = vector.load %arg10[%c3_198, %c0_199, %c0_200] : memref<4x16x32xf32, #tpu.memory_space<vmem>>, vector<1x16x32xf32>
    %474 = vector.shape_cast %473 : vector<1x16x32xf32> to vector<16x32xf32>
    %cst_201 = arith.constant dense<0.000000e+00> : vector<24x32xf32>
    %475 = tpu.matmul %472, %474, %cst_201 {dimension_numbers = #tpu.dot_dimension_numbers<[1], [0], [0], [1], [0, 0, 1, 1], [], []>} : vector<24x16xf32>, vector<16x32xf32>, vector<24x32xf32> -> vector<24x32xf32>
    %c3_202 = arith.constant 3 : index
    %c0_203 = arith.constant 0 : index
    %c0_204 = arith.constant 0 : index
    %476 = vector.load %arg11[%c3_202, %c0_203, %c0_204] : memref<4x1x32xf32, #tpu.memory_space<vmem>>, vector<1x1x32xf32>
    %477 = vector.shape_cast %476 : vector<1x1x32xf32> to vector<1x32xf32>
    %478 = vector.broadcast %477 : vector<1x32xf32> to vector<24x32xf32>
    %479 = arith.addf %475, %478 : vector<24x32xf32>
    %480 = vector.extract_strided_slice %479 {offsets = [0, 0], sizes = [24, 16], strides = [1, 1]} : vector<24x32xf32> to vector<24x16xf32>
    %481 = vector.extract_strided_slice %479 {offsets = [0, 16], sizes = [24, 16], strides = [1, 1]} : vector<24x32xf32> to vector<24x16xf32>
    %482 = arith.negf %481 : vector<24x16xf32>
    %483 = math.exp %482 : vector<24x16xf32>
    %cst_205 = arith.constant 1.000000e+00 : f32
    %484 = vector.broadcast %cst_205 : f32 to vector<24x16xf32>
    %485 = arith.addf %484, %483 : vector<24x16xf32>
    %486 = arith.divf %484, %485 : vector<24x16xf32>
    %487 = arith.mulf %480, %486 : vector<24x16xf32>
    %488 = vector.extract_strided_slice %487 {offsets = [8, 0], sizes = [8, 16], strides = [1, 1]} : vector<24x16xf32> to vector<8x16xf32>
    %489 = vector.extract_strided_slice %487 {offsets = [0, 0], sizes = [8, 16], strides = [1, 1]} : vector<24x16xf32> to vector<8x16xf32>
    %490 = vector.extract_strided_slice %487 {offsets = [8, 0], sizes = [8, 16], strides = [1, 1]} : vector<24x16xf32> to vector<8x16xf32>
    %491 = vector.extract_strided_slice %487 {offsets = [16, 0], sizes = [8, 16], strides = [1, 1]} : vector<24x16xf32> to vector<8x16xf32>
    %cst_206 = arith.constant dense<0.000000e+00> : vector<24x16xf32>
    %492 = tpu.matmul %465, %487, %cst_206 {dimension_numbers = #tpu.dot_dimension_numbers<[1], [0], [0], [1], [0, 0, 1, 1], [], []>} : vector<24x24xf32>, vector<24x16xf32>, vector<24x16xf32> -> vector<24x16xf32>
    %493 = arith.addf %489, %491 : vector<8x16xf32>
    %494 = tpu.concatenate %490, %493, %490 in 0 : vector<8x16xf32>, vector<8x16xf32>, vector<8x16xf32> -> vector<24x16xf32>
    %495 = arith.addf %492, %494 : vector<24x16xf32>
    %c3_207 = arith.constant 3 : index
    %c0_208 = arith.constant 0 : index
    %c0_209 = arith.constant 0 : index
    %496 = vector.load %arg12[%c3_207, %c0_208, %c0_209] : memref<4x16x32xf32, #tpu.memory_space<vmem>>, vector<1x16x32xf32>
    %497 = vector.shape_cast %496 : vector<1x16x32xf32> to vector<16x32xf32>
    %cst_210 = arith.constant dense<0.000000e+00> : vector<24x32xf32>
    %498 = tpu.matmul %495, %497, %cst_210 {dimension_numbers = #tpu.dot_dimension_numbers<[1], [0], [0], [1], [0, 0, 1, 1], [], []>} : vector<24x16xf32>, vector<16x32xf32>, vector<24x32xf32> -> vector<24x32xf32>
    %c3_211 = arith.constant 3 : index
    %c0_212 = arith.constant 0 : index
    %c0_213 = arith.constant 0 : index
    %499 = vector.load %arg13[%c3_211, %c0_212, %c0_213] : memref<4x1x32xf32, #tpu.memory_space<vmem>>, vector<1x1x32xf32>
    %500 = vector.shape_cast %499 : vector<1x1x32xf32> to vector<1x32xf32>
    %501 = vector.broadcast %500 : vector<1x32xf32> to vector<24x32xf32>
    %502 = arith.addf %498, %501 : vector<24x32xf32>
    %503 = vector.extract_strided_slice %502 {offsets = [0, 0], sizes = [24, 16], strides = [1, 1]} : vector<24x32xf32> to vector<24x16xf32>
    %504 = vector.extract_strided_slice %502 {offsets = [0, 16], sizes = [24, 16], strides = [1, 1]} : vector<24x32xf32> to vector<24x16xf32>
    %505 = arith.negf %504 : vector<24x16xf32>
    %506 = math.exp %505 : vector<24x16xf32>
    %cst_214 = arith.constant 1.000000e+00 : f32
    %507 = vector.broadcast %cst_214 : f32 to vector<24x16xf32>
    %508 = arith.addf %507, %506 : vector<24x16xf32>
    %509 = arith.divf %507, %508 : vector<24x16xf32>
    %510 = arith.mulf %503, %509 : vector<24x16xf32>
    %511 = vector.extract_strided_slice %510 {offsets = [8, 0], sizes = [8, 16], strides = [1, 1]} : vector<24x16xf32> to vector<8x16xf32>
    %512 = arith.maximumf %488, %511 : vector<8x16xf32>
    %513 = tpu.concatenate %362, %412, %462, %512 in 0 : vector<8x16xf32>, vector<8x16xf32>, vector<8x16xf32>, vector<8x16xf32> -> vector<32x16xf32>
    %514 = vector.extract_strided_slice %513 {offsets = [0, 0], sizes = [8, 16], strides = [1, 1]} : vector<32x16xf32> to vector<8x16xf32>
    %515 = vector.extract_strided_slice %513 {offsets = [8, 0], sizes = [8, 16], strides = [1, 1]} : vector<32x16xf32> to vector<8x16xf32>
    %516 = vector.extract_strided_slice %513 {offsets = [16, 0], sizes = [8, 16], strides = [1, 1]} : vector<32x16xf32> to vector<8x16xf32>
    %517 = vector.extract_strided_slice %513 {offsets = [24, 0], sizes = [8, 16], strides = [1, 1]} : vector<32x16xf32> to vector<8x16xf32>
    %518 = tpu.concatenate %514, %515, %516, %517 in 1 : vector<8x16xf32>, vector<8x16xf32>, vector<8x16xf32>, vector<8x16xf32> -> vector<8x64xf32>
    %c0_215 = arith.constant 0 : index
    %c0_216 = arith.constant 0 : index
    %519 = vector.load %arg14[%c0_215, %c0_216] : memref<64x64xf32, #tpu.memory_space<vmem>>, vector<64x64xf32>
    %cst_217 = arith.constant dense<0.000000e+00> : vector<8x64xf32>
    %520 = tpu.matmul %518, %519, %cst_217 {dimension_numbers = #tpu.dot_dimension_numbers<[1], [0], [0], [1], [0, 0, 1, 1], [], []>} : vector<8x64xf32>, vector<64x64xf32>, vector<8x64xf32> -> vector<8x64xf32>
    %c0_218 = arith.constant 0 : index
    %c0_219 = arith.constant 0 : index
    %521 = vector.load %arg15[%c0_218, %c0_219] : memref<1x64xf32, #tpu.memory_space<vmem>>, vector<1x64xf32>
    %522 = vector.broadcast %521 : vector<1x64xf32> to vector<8x64xf32>
    %523 = arith.addf %520, %522 : vector<8x64xf32>
    %cst_220 = arith.constant 0.000000e+00 : f32
    %524 = vector.broadcast %cst_220 : f32 to vector<8x64xf32>
    %525 = arith.maximumf %523, %524 : vector<8x64xf32>
    %c0_221 = arith.constant 0 : index
    %c0_222 = arith.constant 0 : index
    %526 = vector.load %arg16[%c0_221, %c0_222] : memref<64x6xf32, #tpu.memory_space<vmem>>, vector<64x6xf32>
    %cst_223 = arith.constant dense<0.000000e+00> : vector<8x6xf32>
    %527 = tpu.matmul %525, %526, %cst_223 {dimension_numbers = #tpu.dot_dimension_numbers<[1], [0], [0], [1], [0, 0, 1, 1], [], []>} : vector<8x64xf32>, vector<64x6xf32>, vector<8x6xf32> -> vector<8x6xf32>
    %c0_224 = arith.constant 0 : index
    %c0_225 = arith.constant 0 : index
    %528 = vector.load %arg17[%c0_224, %c0_225] : memref<1x6xf32, #tpu.memory_space<vmem>>, vector<1x6xf32>
    %529 = vector.broadcast %528 : vector<1x6xf32> to vector<8x6xf32>
    %530 = arith.addf %527, %529 : vector<8x6xf32>
    %c0_226 = arith.constant 0 : index
    %c0_227 = arith.constant 0 : index
    %531 = vector.load %arg18[%c0_226, %c0_227] : memref<8x6xf32, #tpu.memory_space<vmem>>, vector<8x6xf32>
    tpu.vector_store %arg18[%c0_226, %c0_227], %530 {strides = array<i32>} : memref<8x6xf32, #tpu.memory_space<vmem>>, vector<8x6xf32>,
    return
  }
}

</mosaic_0001>

<bundles_post_ra>
// kernel: stsgcn_fwd.1
= control target key start
LH: loop header
LB: loop body
LE: loop exit
PB: predicated region body
PF: predicated region fallthrough
CT: control target
= control target key end

     0   :  { %vm97_vm0 = vcmask 1042432   ;;  %vm72_vm1 = vcmask 23552   ;;  %vm170_vm2 = vcmask 195584   ;;  %vm212_vm3 = vcmask 130048   ;;  %s3127_s20 = smov 112   ;;  %s3130_s22 = smov 48   ;;  %s4274_s1 = inlined_call_operand.vmem [shape: f32[3,16], index: 1, kind: input, shape index: {}]   ;;  %s4275_s0 = inlined_call_operand.vmem [shape: f32[64,3], index: 0, kind: input, shape index: {}]   ;;  %s4276_s2 = inlined_call_operand.vmem [shape: f32[1,16], index: 2, kind: input, shape index: {}]   ;;  %s4277_s4 = inlined_call_operand.vmem [shape: f32[64,16], index: 4, kind: input, shape index: {}]   ;;  %s4278_s3 = inlined_call_operand.vmem [shape: f32[6,24,24], index: 3, kind: input, shape index: {}]   ;;  %s4279_s6 = inlined_call_operand.vmem [shape: f32[6,1,32], index: 6, kind: input, shape index: {}]   ;;  %s4280_s5 = inlined_call_operand.vmem [shape: f32[6,16,32], index: 5, kind: input, shape index: {}]   ;;  %s4281_s7 = inlined_call_operand.vmem [shape: f32[6,16,32], index: 7, kind: input, shape index: {}]   ;;  %s4282_s8 = inlined_call_operand.vmem [shape: f32[6,1,32], index: 8, kind: input, shape index: {}]   ;;  %s4283_s9 = inlined_call_operand.vmem [shape: f32[48,16], index: 9, kind: input, shape index: {}]   ;;  %s4284_s10 = inlined_call_operand.vmem [shape: f32[4,16,32], index: 10, kind: input, shape index: {}]   ;;  %s4285_s11 = inlined_call_operand.vmem [shape: f32[4,1,32], index: 11, kind: input, shape index: {}]   ;;  %s4286_s12 = inlined_call_operand.vmem [shape: f32[4,16,32], index: 12, kind: input, shape index: {}]   ;;  %s4287_s13 = inlined_call_operand.vmem [shape: f32[4,1,32], index: 13, kind: input, shape index: {}]   ;;  %s4288_s15 = inlined_call_operand.vmem [shape: f32[1,64], index: 15, kind: input, shape index: {}]   ;;  %s4289_s14 = inlined_call_operand.vmem [shape: f32[64,64], index: 14, kind: input, shape index: {}]   ;;  %s4290_s16 = inlined_call_operand.vmem [shape: f32[64,6], index: 16, kind: input, shape index: {}]   ;;  %s4291_s17 = inlined_call_operand.vmem [shape: f32[1,6], index: 17, kind: input, shape index: {}]   ;;  %s4292_s18 = inlined_call_operand.vmem [shape: f32[8,6], index: 18, kind: output, shape index: {}]  }
   0x1   :  { %4294 = sst [smem:[#allocation2_spill]] %s4274_s1  ;;  %v152_v13 = vld [vmem:[%s4277_s4 + $0x10] sm:$0xff]  ;;  %v151_v16 = vld [vmem:[%s4277_s4 + $0x8] sm:$0xff]  ;;  %v150_v19 = vld [vmem:[%s4277_s4] sm:$0xff] }
   0x2   :  { %4295 = sst [smem:[#allocation3_spill]] %s4275_s0  ;;  %v3276_v24 = vld [vmem:[%s4278_s3] sm:$0xff]  ;;  %v153_v25 = vld [vmem:[%s4277_s4 + $0x18] sm:$0xff]  ;;  %v3290_v28 = vld [vmem:[%s4278_s3 + $0x8] sm:$0xff] }
   0x3   :  { %4296 = sst [smem:[#allocation4_spill]] %s4276_s2  ;;  %v3298_v29 = vld [vmem:[%s4278_s3 + $0x10] sm:$0xff]  ;;  %v3305_v30 = vld [vmem:[%s4278_s3 + $0x18] sm:$0xff]  ;;  %v3312_v31 = vld [vmem:[%s4278_s3 + $0x20] sm:$0xff] }
   0x4   :  { %s4297_s29 = sld [smem:[#allocation2_spill]]  ;;  %v3319_v32 = vld [vmem:[%s4278_s3 + $0x28] sm:$0xff]  ;;  %v206_v34 = vld [vmem:[%s4280_s5] sm:$0xff] }
   0x5   :  { %s4298_s19 = sld [smem:[#allocation3_spill]]  ;;  %v207_v33 = vld [vmem:[%s4280_s5 + $0x8] sm:$0xff]  ;;  %v2933_v43 = vld [vmem:[%s4279_s6] ss:$0 sm:$0xff] }
   0x6   :  { %s4299_s28 = sld [smem:[#allocation4_spill]]  ;;  %236 = vmatpush.msra.mxu2 %v207_v33 }
   0x8   :  { %237 = vmatpush.msra.mxu2 %v206_v34 }
   0xa   :  { %v67_v0 = vld [vmem:[%s4297_s29] sm:$0x7] }
   0xb   :  { %v59_v1 = vld [vmem:[%s4298_s19] sm:$0xff]  ;;  %2694 = vmatpush.msk.msra.mxu0 %vm97_vm0, %v67_v0  ;;  %v60_v2 = vld [vmem:[%s4298_s19 + $0x8] sm:$0xff]  ;;  %v61_v3 = vld [vmem:[%s4298_s19 + $0x10] sm:$0xff] }
   0xc   :  { %2695 = vmatmul.msk.f32.vlgmr.msra.gmra.mxu0 %vm72_vm1, %v59_v1  ;;  %v62_v4 = vld [vmem:[%s4298_s19 + $0x18] sm:$0xff]  ;;  %v63_v5 = vld [vmem:[%s4298_s19 + $0x20] sm:$0xff]  ;;  %v64_v40 = vld [vmem:[%s4298_s19 + $0x28] sm:$0xff] }
   0xd   :  { %v3252_v8 = vld [vmem:[%s4299_s28] ss:$0 sm:$0xff]  ;;  %v65_v60 = vld [vmem:[%s4298_s19 + $0x30] sm:$0xff] }
  0x14   :  { %2696 = vmatmul.msk.f32.gmra.mxu0 %vm72_vm1, %v60_v2 }
  0x1c   :  { %2697 = vmatmul.msk.f32.gmra.mxu0 %vm72_vm1, %v61_v3 }
  0x24   :  { %2698 = vmatmul.msk.f32.gmra.mxu0 %vm72_vm1, %v62_v4 }
  0x2c   :  { %2699 = vmatmul.msk.f32.gmra.mxu0 %vm72_vm1, %v63_v5  ;;  %v66_v5 = vld [vmem:[%s4298_s19 + $0x38] sm:$0xff] }
  0x34   :  { %2700 = vmatmul.msk.f32.gmra.mxu0 %vm72_vm1, %v64_v40 }
  0x3c   :  { %2701 = vmatmul.msk.f32.gmra.mxu0 %vm72_vm1, %v65_v60 }
  0x44   :  { %2702 = vmatmul.msk.f32.gmra.mxu0 %vm72_vm1, %v66_v5 }
  0x89   :  { %v118_v6 = vpop.f32.mrf.mxu0 }
  0x8a   :  { %v119_v11 = vadd.f32 %v3252_v8, %v118_v6 }
  0x8c   :  { %v142_v17 = vmax.f32 %v119_v11, 0.0 }
  0x8e   :  { %v158_v23 = vadd.f32 %v150_v19, %v142_v17 }
  0x91   :  { %v121_v7 = vpop.f32.mrf.mxu0 }
  0x92   :  { %v122_v9 = vadd.f32 %v3252_v8, %v121_v7 }
  0x94   :  { %v143_v14 = vmax.f32 %v122_v9, 0.0 }
  0x96   :  { %v3268_v20 = vadd.f32 %v151_v16, %v143_v14 }
  0x99   :  { %v124_v10 = vpop.f32.mrf.mxu0 }
  0x9a   :  { %v125_v12 = vadd.f32 %v3252_v8, %v124_v10 }
  0x9c   :  { %v144_v15 = vmax.f32 %v125_v12, 0.0 }
  0x9e   :  { %v3263_v18 = vadd.f32 %v152_v13, %v144_v15 }
  0xa0   :  { %193 = vmatpush.msra.mxu1 %v3263_v18  ;;  %v169_v37 = vadd.f32 %v3263_v18, %v158_v23 }
  0xa1   :  { %v127_v21 = vpop.f32.mrf.mxu0 }
  0xa2   :  { %v128_v22 = vadd.f32 %v3252_v8, %v127_v21  ;;  %194 = vmatpush.msra.mxu1 %v3268_v20 }
  0xa4   :  { %v145_v26 = vmax.f32 %v128_v22, 0.0  ;;  %195 = vmatpush.msra.mxu1 %v158_v23 }
  0xa5   :  { %2703 = vmatmul.msk.f32.vlgmr.msra.gmra.mxu1 %vm170_vm2, %v3276_v24 }
  0xa6   :  { %v3283_v27 = vadd.f32 %v153_v25, %v145_v26 }
  0xa8   :  { %438 = vmatpush.msrb.mxu1 %v3283_v27 }
  0xaa   :  { %439 = vmatpush.msrb.mxu1 %v3263_v18 }
  0xac   :  { %440 = vmatpush.msrb.mxu1 %v3268_v20 }
  0xad   :  { %2704 = vmatmul.msk.f32.gmra.mxu1 %vm170_vm2, %v3290_v28 }
  0xb5   :  { %2705 = vmatmul.msk.f32.gmra.mxu1 %vm170_vm2, %v3298_v29 }
  0xbd   :  { %2722 = vmatmul.msk.f32.vlgmr.msrb.gmra.mxu1 %vm170_vm2, %v3305_v30 }
  0xc5   :  { %2723 = vmatmul.msk.f32.gmra.mxu1 %vm170_vm2, %v3312_v31 }
  0xcd   :  { %2724 = vmatmul.msk.f32.gmra.mxu1 %vm170_vm2, %v3319_v32 }
 0x122   :  { %v197_v35 = vpop.f32.mrf.mxu1 }
 0x123   :  { %v198_v36 = vadd.f32 %v197_v35, %v3268_v20 }
 0x125   :  { %2706 = vmatmul.msk.f32.vlgmr.msra.gmra.mxu2 %vm212_vm3, %v198_v36 }
 0x12a   :  { %v200_v38 = vpop.f32.mrf.mxu1 }
 0x12b   :  { %v201_v39 = vadd.f32 %v200_v38, %v169_v37 }
 0x12d   :  { %2707 = vmatmul.msk.f32.gmra.mxu2 %vm212_vm3, %v201_v39 }
 0x132   :  { %v203_v41 = vpop.f32.mrf.mxu1 }
 0x133   :  { %v204_v42 = vadd.f32 %v203_v41, %v3268_v20 }
 0x135   :  { %2708 = vmatmul.msk.f32.gmra.mxu2 %vm212_vm3, %v204_v42  ;;  %v130_v42 = vpop.f32.mrf.mxu0 }
 0x1a8   :  { %v239_v44 = vpop.f32.mrf.mxu2 }
 0x1a9   :  { %v3342_v45 = vadd.f32 %v2933_v43, %v239_v44 }
 0x1ab   :  { %v2709_v46 = vmul.f32 -1.442695, %v3342_v45 }
 0x1ad   :  { %2955 = vpow2.f32 %v2709_v46 }
 0x1b0   :  { %v242_v47 = vpop.f32.mrf.mxu2 }
 0x1b1   :  { %v3345_v48 = vadd.f32 %v2933_v43, %v242_v47 }
 0x1b3   :  { %v2956_v49 = vpop.eup %2955  ;;  %v2710_v50 = vmul.f32 -1.442695, %v3345_v48 }
 0x1b4   :  { %v257_v51 = vadd.f32 1.0, %v2956_v49  ;;  %v2726_v49 = vld [vmem:[%s4280_s5 + $0x18] sm:$0xff] }
 0x1b5   :  { %2957 = vpow2.f32 %v2710_v50 }
 0x1b6   :  { %2959 = vrcp.f32 %v257_v51  ;;  %v271_v61 = vand.u32 2147483648, %v257_v51  ;;  %v269_v63 = vand.u32 2147483647, %v257_v51  ;;  %vm265_vm5 = vweird.f32 %v257_v51 }
 0x1b8   :  { %v245_v52 = vpop.f32.mrf.mxu2  ;;  %v272_v3 = vor.u32 1.1754944e-38, %v271_v61  ;;  %vm270_vm7 = vcmp.eq.f32.partialorder %v269_v63, 8.507059e+37  ;;  %v156_v63 = vld [vmem:[%s4277_s4 + $0x30] sm:$0xff] }
 0x1b9   :  { %v246_v53 = vadd.f32 %v2933_v43, %v245_v52  ;;  %v131_v43 = vadd.f32 %v3252_v8, %v130_v42  ;;  %v442_v52 = vpop.f32.mrf.mxu1 }
 0x1bb   :  { %v2958_v54 = vpop.eup %2957  ;;  %v2711_v55 = vmul.f32 -1.442695, %v246_v53  ;;  %v146_v47 = vmax.f32 %v131_v43, 0.0 }
 0x1bc   :  { %v2960_v56 = vpop.eup %2959  ;;  %v258_v58 = vadd.f32 1.0, %v2958_v54  ;;  %v155_v54 = vld [vmem:[%s4277_s4 + $0x28] sm:$0xff] }
 0x1bd   :  { %2961 = vpow2.f32 %v2711_v55  ;;  %v261_v57 = vmul.f32 %v2960_v56, %v257_v51  ;;  %vm266_vm4 = vweird.f32 %v2960_v56  ;;  %v133_v51 = vpop.f32.mrf.mxu0  ;;  %v443_v55 = vadd.f32 %v442_v52, %v3263_v18 }
 0x1be   :  { %2963 = vrcp.f32 %v258_v58  ;;  %vm267_vm6 = vmor %vm265_vm5, %vm266_vm4  ;;  %v286_v26 = vand.u32 2147483648, %v258_v58  ;;  %vm280_vm13 = vweird.f32 %v258_v58  ;;  %v284_v33 = vand.u32 2147483647, %v258_v58 }
 0x1bf   :  { %v262_v59 = vsub.f32 1.0, %v261_v57 }
 0x1c0   :  { %v287_v35 = vor.u32 1.1754944e-38, %v286_v26  ;;  %vm285_vm15 = vcmp.eq.f32.partialorder %v284_v33, 8.507059e+37  ;;  %v2750_v33 = vld [vmem:[%s4280_s5 + $0x20] sm:$0xff] }
 0x1c1   :  { %v263_v62 = vmul.f32 %v2960_v56, %v262_v59  ;;  %v445_v57 = vpop.f32.mrf.mxu1 }
 0x1c3   :  { %v2962_v0 = vpop.eup %2961  ;;  %v264_v1 = vadd.f32 %v2960_v56, %v263_v62 }
 0x1c4   :  { %v259_v2 = vadd.f32 1.0, %v2962_v0  ;;  %v2964_v7 = vpop.eup %2963 }
 0x1c5   :  { %v268_v4 = vsel %vm267_vm6, %v2960_v56, %v264_v1  ;;  %v276_v9 = vmul.f32 %v2964_v7, %v258_v58  ;;  %vm281_vm12 = vweird.f32 %v2964_v7  ;;  %v136_v59 = vpop.f32.mrf.mxu0  ;;  %v3422_v1 = vld [vmem:[%s4278_s3 + $0x38] sm:$0xff] }
 0x1c6   :  { %2965 = vrcp.f32 %v259_v2  ;;  %v273_v6 = vsel %vm270_vm7, %v272_v3, %v268_v4  ;;  %v301_v14 = vand.u32 2147483648, %v259_v2  ;;  %v299_v16 = vand.u32 2147483647, %v259_v2  ;;  %vm282_vm14 = vmor %vm280_vm13, %vm281_vm12  ;;  %v3429_v3 = vld [vmem:[%s4278_s3 + $0x40] sm:$0xff] }
 0x1c7   :  { %308 = vrot.lane.b32.xlu1 %v273_v6, %s3127_s20  ;;  %v277_v13 = vsub.f32 1.0, %v276_v9  ;;  %vm295_vm9 = vweird.f32 %v259_v2  ;;  %v137_v61 = vadd.f32 %v3252_v8, %v136_v59  ;;  %v157_v6 = vld [vmem:[%s4277_s4 + $0x38] sm:$0xff] }
 0x1c8   :  { %v302_v21 = vor.u32 1.1754944e-38, %v301_v14  ;;  %vm300_vm11 = vcmp.eq.f32.partialorder %v299_v16, 8.507059e+37  ;;  %v3479_v14 = vld [vmem:[%s4278_s3 + $0x68] sm:$0xff]  ;;  %v3489_v16 = vld [vmem:[%s4278_s3 + $0x70] sm:$0xff] }
 0x1c9   :  { %v278_v19 = vmul.f32 %v2964_v7, %v277_v13  ;;  %v448_v58 = vpop.f32.mrf.mxu1  ;;  %v148_v62 = vmax.f32 %v137_v61, 0.0  ;;  %v347_v13 = vld [vmem:[%s4281_s7] sm:$0xff] }
 0x1ca   :  { %v449_v60 = vadd.f32 %v448_v58, %v3263_v18 }
 0x1cb   :  { %v279_v25 = vadd.f32 %v2964_v7, %v278_v19  ;;  %v3412_v0 = vadd.f32 %v156_v63, %v148_v62  ;;  %v3503_v19 = vld [vmem:[%s4278_s3 + $0x80] sm:$0xff] }
 0x1cc   :  { %v2966_v10 = vpop.eup %2965 }
 0x1cd   :  { %v291_v11 = vmul.f32 %v2966_v10, %v259_v2  ;;  %vm296_vm8 = vweird.f32 %v2966_v10  ;;  %v283_v34 = vsel %vm282_vm14, %v2964_v7, %v279_v25  ;;  %v139_v2 = vpop.f32.mrf.mxu0  ;;  %v3440_v7 = vld [vmem:[%s4278_s3 + $0x48] sm:$0xff] }
 0x1ce   :  { %vm297_vm10 = vmor %vm295_vm9, %vm296_vm8  ;;  %v288_v36 = vsel %vm285_vm15, %v287_v35, %v283_v34  ;;  %v140_v4 = vadd.f32 %v3252_v8, %v139_v2 }
 0x1cf   :  { %v292_v12 = vsub.f32 1.0, %v291_v11  ;;  %v3466_v11 = vld [vmem:[%s4278_s3 + $0x60] sm:$0xff] }
 0x1d0   :  { %v149_v5 = vmax.f32 %v140_v4, 0.0 }
 0x1d1   :  { %v293_v15 = vmul.f32 %v2966_v10, %v292_v12  ;;  %v348_v12 = vld [vmem:[%s4281_s7 + $0x8] sm:$0xff] }
 0x1d2   :  { %v3442_v9 = vadd.f32 %v157_v6, %v149_v5  ;;  %376 = vmatpush.msrb.mxu2 %v348_v12 }
 0x1d3   :  { %v294_v17 = vadd.f32 %v2966_v10, %v293_v15  ;;  %v2751_v15 = vld [vmem:[%s4280_s5 + $0x28] sm:$0xff] }
 0x1d4   :  { %377 = vmatpush.msrb.mxu2 %v347_v13  ;;  %730 = vmatpush.msrb.mxu0 %v2751_v15  ;;  %v2801_v15 = vld [vmem:[%s4280_s5 + $0x48] sm:$0xff] }
 0x1d5   :  { %v298_v22 = vsel %vm297_vm10, %v2966_v10, %v294_v17  ;;  %v3459_v10 = vld [vmem:[%s4278_s3 + $0x58] sm:$0xff] }
 0x1d6   :  { %v303_v23 = vsel %vm300_vm11, %v302_v21, %v298_v22  ;;  %v3496_v17 = vld [vmem:[%s4278_s3 + $0x78] sm:$0xff]  ;;  %731 = vmatpush.msrb.mxu0 %v2750_v33 }
 0x1d7   :  { %312 = vrot.lane.b32.xlu0 %v303_v23, %s3127_s20  ;;  %v3512_v23 = vld [vmem:[%s4278_s3 + $0x88] sm:$0xff] }
 0x1df   :  { %310 = vrot.lane.b32.xlu0 %v288_v36, %s3127_s20  ;;  %v2934_v36 = vld [vmem:[%s4279_s6 + $0x1] ss:$0 sm:$0xff] }
 0x239   :  { %v309_v37 = vpop.permute.xlu1 %308 }
 0x23a   :  { %v317_v39 = vmul.f32 %v309_v37, %v3342_v45  ;;  %v154_v45 = vld [vmem:[%s4277_s4 + $0x20] sm:$0xff] }
 0x23b   :  { %v3378_v50 = vadd.f32 %v154_v45, %v146_v47 }
 0x249   :  { %v313_v38 = vpop.permute.xlu0 %312 }
 0x24a   :  { %v319_v40 = vmul.f32 %v313_v38, %v246_v53 }
 0x24c   :  { %v3360_v41 = vadd.f32 %v319_v40, %v317_v39  ;;  %334 = vmatpush.msra.mxu3 %v319_v40 }
 0x251   :  { %v311_v44 = vpop.permute.xlu0 %310 }
 0x252   :  { %v3364_v46 = vmul.f32 %v311_v44, %v3345_v48  ;;  %v2725_v48 = vld [vmem:[%s4280_s5 + $0x10] sm:$0xff]  ;;  %v2776_v44 = vld [vmem:[%s4280_s5 + $0x38] sm:$0xff] }
 0x253   :  { %978 = vmatpush.msra.mxu0 %v2776_v44  ;;  %v2800_v44 = vld [vmem:[%s4280_s5 + $0x40] sm:$0xff] }
 0x254   :  { %335 = vmatpush.msra.mxu3 %v3364_v46 }
 0x256   :  { %336 = vmatpush.msra.mxu3 %v317_v39 }
 0x257   :  { %2712 = vmatmul.msk.f32.vlgmr.msra.gmra.mxu3 %vm170_vm2, %v3276_v24  ;;  %v134_v24 = vadd.f32 %v3252_v8, %v133_v51  ;;  %v3452_v8 = vld [vmem:[%s4278_s3 + $0x50] sm:$0xff] }
 0x258   :  { %482 = vmatpush.msrb.mxu3 %v2726_v49 }
 0x259   :  { %v147_v53 = vmax.f32 %v134_v24, 0.0 }
 0x25a   :  { %483 = vmatpush.msrb.mxu3 %v2725_v48  ;;  %v2775_v48 = vld [vmem:[%s4280_s5 + $0x30] sm:$0xff] }
 0x25b   :  { %v3392_v56 = vadd.f32 %v155_v54, %v147_v53  ;;  %979 = vmatpush.msra.mxu0 %v2775_v48 }
 0x25c   :  { %686 = vmatpush.msra.mxu3 %v3378_v50 }
 0x25e   :  { %687 = vmatpush.msra.mxu3 %v3283_v27 }
 0x25f   :  { %2713 = vmatmul.msk.f32.gmra.mxu3 %vm170_vm2, %v3290_v28  ;;  %v415_v28 = vadd.f32 %v3283_v27, %v3268_v20  ;;  %v3410_v20 = vld [vmem:[%s4278_s3 + $0x30] sm:$0xff] }
 0x260   :  { %688 = vmatpush.msra.mxu3 %v3263_v18 }
 0x267   :  { %2714 = vmatmul.msk.f32.gmra.mxu3 %vm170_vm2, %v3298_v29  ;;  %v446_v29 = vadd.f32 %v445_v57, %v415_v28 }
 0x26f   :  { %2728 = vmatmul.msk.f32.vlgmr.msrb.gmra.mxu3 %vm212_vm3, %v443_v55 }
 0x270   :  { %934 = vmatpush.msrb.mxu3 %v3392_v56 }
 0x272   :  { %935 = vmatpush.msrb.mxu3 %v3378_v50 }
 0x274   :  { %936 = vmatpush.msrb.mxu3 %v3283_v27 }
 0x277   :  { %2729 = vmatmul.msk.f32.gmra.mxu3 %vm212_vm3, %v446_v29 }
 0x27f   :  { %2730 = vmatmul.msk.f32.gmra.mxu3 %vm212_vm3, %v449_v60  ;;  %v663_v60 = vadd.f32 %v3378_v50, %v3263_v18 }
 0x287   :  { %2747 = vmatmul.msk.f32.vlgmr.msra.gmra.mxu3 %vm170_vm2, %v3410_v20 }
 0x288   :  { %1182 = vmatpush.msra.mxu3 %v3412_v0 }
 0x28a   :  { %1183 = vmatpush.msra.mxu3 %v3392_v56 }
 0x28c   :  { %1184 = vmatpush.msra.mxu3 %v3378_v50 }
 0x28f   :  { %2748 = vmatmul.msk.f32.gmra.mxu3 %vm170_vm2, %v3422_v1 }
 0x297   :  { %2749 = vmatmul.msk.f32.gmra.mxu3 %vm170_vm2, %v3429_v3 }
 0x29f   :  { %2772 = vmatmul.msk.f32.vlgmr.msrb.gmra.mxu3 %vm170_vm2, %v3440_v7 }
 0x2a0   :  { %1430 = vmatpush.msrb.mxu3 %v3442_v9 }
 0x2a2   :  { %1431 = vmatpush.msrb.mxu3 %v3412_v0 }
 0x2a4   :  { %1432 = vmatpush.msrb.mxu3 %v3392_v56 }
 0x2a7   :  { %2773 = vmatmul.msk.f32.gmra.mxu3 %vm170_vm2, %v3452_v8 }
 0x2af   :  { %2774 = vmatmul.msk.f32.gmra.mxu3 %vm170_vm2, %v3459_v10 }
 0x2b7   :  { %2797 = vmatmul.msk.f32.vlgmr.msra.gmra.mxu3 %vm170_vm2, %v3466_v11 }
 0x2bf   :  { %2798 = vmatmul.msk.f32.gmra.mxu3 %vm170_vm2, %v3479_v14 }
 0x2c7   :  { %2799 = vmatmul.msk.f32.gmra.mxu3 %vm170_vm2, %v3489_v16 }
 0x2cf   :  { %2822 = vmatmul.msk.f32.vlgmr.msrb.gmra.mxu3 %vm170_vm2, %v3496_v17 }
 0x2d7   :  { %2823 = vmatmul.msk.f32.gmra.mxu3 %vm170_vm2, %v3503_v19 }
 0x2da   :  { %v338_v21 = vpop.f32.mrf.mxu3 }
 0x2db   :  { %v339_v22 = vadd.f32 %v338_v21, %v3364_v46 }
 0x2dd   :  { %2715 = vmatmul.msk.f32.vlgmr.msrb.gmra.mxu2 %vm212_vm3, %v339_v22 }
 0x2df   :  { %2824 = vmatmul.msk.f32.gmra.mxu3 %vm170_vm2, %v3512_v23 }
 0x2e2   :  { %v341_v25 = vpop.f32.mrf.mxu3 }
 0x2e3   :  { %v342_v26 = vadd.f32 %v341_v25, %v3360_v41 }
 0x2e5   :  { %2716 = vmatmul.msk.f32.gmra.mxu2 %vm212_vm3, %v342_v26 }
 0x2ea   :  { %v344_v34 = vpop.f32.mrf.mxu3 }
 0x2eb   :  { %v345_v35 = vadd.f32 %v344_v34, %v3364_v46 }
 0x2ed   :  { %2717 = vmatmul.msk.f32.gmra.mxu2 %vm212_vm3, %v345_v35 }
 0x2f2   :  { %v485_v37 = vpop.f32.mrf.mxu3 }
 0x2f3   :  { %v3526_v38 = vadd.f32 %v2934_v36, %v485_v37 }
 0x2f5   :  { %v2731_v39 = vmul.f32 -1.442695, %v3526_v38 }
 0x2f7   :  { %2967 = vpow2.f32 %v2731_v39 }
 0x2fa   :  { %v488_v40 = vpop.f32.mrf.mxu3 }
 0x2fb   :  { %v3529_v41 = vadd.f32 %v2934_v36, %v488_v40 }
 0x2fd   :  { %v2968_v42 = vpop.eup %2967  ;;  %v2732_v43 = vmul.f32 -1.442695, %v3529_v41 }
 0x2fe   :  { %v3535_v47 = vadd.f32 1.0, %v2968_v42 }
 0x2ff   :  { %2969 = vpow2.f32 %v2732_v43 }
 0x300   :  { %2971 = vrcp.f32 %v3535_v47  ;;  %vm511_vm7 = vweird.f32 %v3535_v47  ;;  %v515_v37 = vand.u32 2147483647, %v3535_v47  ;;  %v517_v39 = vand.u32 2147483648, %v3535_v47 }
 0x302   :  { %v491_v49 = vpop.f32.mrf.mxu3  ;;  %vm516_vm13 = vcmp.eq.f32.partialorder %v515_v37, 8.507059e+37 }
 0x303   :  { %v3537_v45 = vadd.f32 %v2934_v36, %v491_v49 }
 0x305   :  { %v2970_v51 = vpop.eup %2969  ;;  %v2733_v52 = vmul.f32 -1.442695, %v3537_v45 }
 0x306   :  { %v504_v24 = vadd.f32 1.0, %v2970_v51  ;;  %v2972_v53 = vpop.eup %2971 }
 0x307   :  { %2973 = vpow2.f32 %v2733_v52  ;;  %v507_v28 = vmul.f32 %v2972_v53, %v3535_v47  ;;  %vm512_vm6 = vweird.f32 %v2972_v53  ;;  %v518_v52 = vor.u32 1.1754944e-38, %v517_v39 }
 0x308   :  { %2975 = vrcp.f32 %v504_v24  ;;  %v532_v2 = vand.u32 2147483648, %v504_v24  ;;  %v530_v6 = vand.u32 2147483647, %v504_v24  ;;  %vm526_vm1 = vweird.f32 %v504_v24  ;;  %vm513_vm9 = vmor %vm511_vm7, %vm512_vm6 }
 0x309   :  { %v508_v62 = vsub.f32 1.0, %v507_v28 }
 0x30a   :  { %v690_v54 = vpop.f32.mrf.mxu3  ;;  %v533_v18 = vor.u32 1.1754944e-38, %v532_v2  ;;  %vm531_vm5 = vcmp.eq.f32.partialorder %v530_v6, 8.507059e+37 }
 0x30b   :  { %v691_v55 = vadd.f32 %v690_v54, %v3283_v27  ;;  %v509_v13 = vmul.f32 %v2972_v53, %v508_v62 }
 0x30d   :  { %v2974_v57 = vpop.eup %2973  ;;  %2753 = vmatmul.msk.f32.vlgmr.msrb.gmra.mxu0 %vm212_vm3, %v691_v55  ;;  %v510_v34 = vadd.f32 %v2972_v53, %v509_v13 }
 0x30e   :  { %v2976_v29 = vpop.eup %2975  ;;  %v505_v58 = vadd.f32 1.0, %v2974_v57  ;;  %1226 = vmatpush.msrb.mxu0 %v2801_v15  ;;  %v1407_v15 = vadd.f32 %v3442_v9, %v3392_v56 }
 0x30f   :  { %v522_v59 = vmul.f32 %v2976_v29, %v504_v24  ;;  %vm527_vm0 = vweird.f32 %v2976_v29  ;;  %v514_v48 = vsel %vm513_vm9, %v2972_v53, %v510_v34  ;;  %v911_v53 = vadd.f32 %v3392_v56, %v3283_v27 }
 0x310   :  { %2977 = vrcp.f32 %v505_v58  ;;  %vm528_vm4 = vmor %vm526_vm1, %vm527_vm0  ;;  %v547_v36 = vand.u32 2147483648, %v505_v58  ;;  %v545_v43 = vand.u32 2147483647, %v505_v58  ;;  %1227 = vmatpush.msrb.mxu0 %v2800_v44  ;;  %vm541_vm10 = vweird.f32 %v505_v58 }
 0x311   :  { %v523_v61 = vsub.f32 1.0, %v522_v59  ;;  %v519_v54 = vsel %vm516_vm13, %v518_v52, %v514_v48  ;;  %v2826_v59 = vld [vmem:[%s4280_s5 + $0x58] sm:$0xff] }
 0x312   :  { %v693_v63 = vpop.f32.mrf.mxu3  ;;  %v548_v51 = vor.u32 1.1754944e-38, %v547_v36  ;;  %vm546_vm12 = vcmp.eq.f32.partialorder %v545_v43, 8.507059e+37 }
 0x313   :  { %v694_v4 = vadd.f32 %v693_v63, %v663_v60  ;;  %v524_v5 = vmul.f32 %v2976_v29, %v523_v61  ;;  %v2825_v61 = vld [vmem:[%s4280_s5 + $0x50] sm:$0xff]  ;;  %v1159_v63 = vadd.f32 %v3412_v0, %v3378_v50 }
 0x315   :  { %2754 = vmatmul.msk.f32.gmra.mxu0 %vm212_vm3, %v694_v4  ;;  %v525_v12 = vadd.f32 %v2976_v29, %v524_v5 }
 0x316   :  { %v2978_v21 = vpop.eup %2977 }
 0x317   :  { %v529_v22 = vsel %vm528_vm4, %v2976_v29, %v525_v12  ;;  %v537_v25 = vmul.f32 %v2978_v21, %v505_v58  ;;  %vm542_vm8 = vweird.f32 %v2978_v21 }
 0x318   :  { %v534_v26 = vsel %vm531_vm5, %v533_v18, %v529_v22  ;;  %vm543_vm11 = vmor %vm541_vm10, %vm542_vm8 }
 0x319   :  { %556 = vrot.lane.b32.xlu2 %v534_v26, %s3127_s20  ;;  %v538_v33 = vsub.f32 1.0, %v537_v25 }
 0x31a   :  { %v696_v35 = vpop.f32.mrf.mxu3 }
 0x31b   :  { %v697_v40 = vadd.f32 %v696_v35, %v3283_v27  ;;  %v539_v42 = vmul.f32 %v2978_v21, %v538_v33  ;;  %v2936_v35 = vld [vmem:[%s4279_s6 + $0x2] ss:$0 sm:$0xff] }
 0x31d   :  { %2755 = vmatmul.msk.f32.gmra.mxu0 %vm212_vm3, %v697_v40  ;;  %v540_v49 = vadd.f32 %v2978_v21, %v539_v42 }
 0x31f   :  { %v544_v47 = vsel %vm543_vm11, %v2978_v21, %v540_v49 }
 0x320   :  { %v549_v24 = vsel %vm546_vm12, %v548_v51, %v544_v47 }
 0x321   :  { %558 = vrot.lane.b32.xlu1 %v549_v24, %s3127_s20  ;;  %554 = vrot.lane.b32.xlu2 %v519_v54, %s3127_s20 }
 0x322   :  { %v938_v55 = vpop.f32.mrf.mxu3 }
 0x323   :  { %v939_v57 = vadd.f32 %v938_v55, %v3378_v50  ;;  %v2937_v55 = vld [vmem:[%s4279_s6 + $0x3] ss:$0 sm:$0xff] }
 0x325   :  { %2778 = vmatmul.msk.f32.vlgmr.msra.gmra.mxu0 %vm212_vm3, %v939_v57 }
 0x326   :  { %1474 = vmatpush.msra.mxu0 %v2826_v59 }
 0x328   :  { %1475 = vmatpush.msra.mxu0 %v2825_v61 }
 0x32a   :  { %v941_v28 = vpop.f32.mrf.mxu3 }
 0x32b   :  { %v942_v29 = vadd.f32 %v941_v28, %v911_v53 }
 0x32d   :  { %2779 = vmatmul.msk.f32.gmra.mxu0 %vm212_vm3, %v942_v29 }
 0x332   :  { %v944_v58 = vpop.f32.mrf.mxu3 }
 0x333   :  { %v945_v60 = vadd.f32 %v944_v58, %v3378_v50 }
 0x335   :  { %2780 = vmatmul.msk.f32.gmra.mxu0 %vm212_vm3, %v945_v60 }
 0x33a   :  { %v1186_v27 = vpop.f32.mrf.mxu3 }
 0x33b   :  { %v1187_v62 = vadd.f32 %v1186_v27, %v3392_v56 }
 0x33d   :  { %2803 = vmatmul.msk.f32.vlgmr.msrb.gmra.mxu0 %vm212_vm3, %v1187_v62 }
 0x342   :  { %v1189_v2 = vpop.f32.mrf.mxu3 }
 0x343   :  { %v1190_v4 = vadd.f32 %v1189_v2, %v1159_v63 }
 0x345   :  { %2804 = vmatmul.msk.f32.gmra.mxu0 %vm212_vm3, %v1190_v4 }
 0x34a   :  { %v1192_v5 = vpop.f32.mrf.mxu3 }
 0x34b   :  { %v1193_v6 = vadd.f32 %v1192_v5, %v3392_v56 }
 0x34d   :  { %2805 = vmatmul.msk.f32.gmra.mxu0 %vm212_vm3, %v1193_v6 }
 0x352   :  { %v1434_v12 = vpop.f32.mrf.mxu3 }
 0x353   :  { %v1435_v13 = vadd.f32 %v1434_v12, %v3412_v0 }
 0x355   :  { %2828 = vmatmul.msk.f32.vlgmr.msra.gmra.mxu0 %vm212_vm3, %v1435_v13 }
 0x35a   :  { %v1437_v21 = vpop.f32.mrf.mxu3 }
 0x35b   :  { %v1438_v18 = vadd.f32 %v1437_v21, %v1407_v15 }
 0x35d   :  { %2829 = vmatmul.msk.f32.gmra.mxu0 %vm212_vm3, %v1438_v18 }
 0x360   :  { %v379_v50 = vpop.f32.mrf.mxu2 }
 0x362   :  { %v1440_v22 = vpop.f32.mrf.mxu3 }
 0x363   :  { %v1441_v25 = vadd.f32 %v1440_v22, %v3412_v0 }
 0x365   :  { %2830 = vmatmul.msk.f32.gmra.mxu0 %vm212_vm3, %v1441_v25 }
 0x368   :  { %v3591_v26 = vpop.f32.mrf.mxu2 }
 0x370   :  { %v384_v33 = vpop.f32.mrf.mxu2 }
 0x373   :  { %v557_v34 = vpop.permute.xlu2 %556 }
 0x374   :  { %v3605_v48 = vmul.f32 %v557_v34, %v3529_v41 }
 0x37b   :  { %v555_v37 = vpop.permute.xlu2 %554 }
 0x37c   :  { %v563_v42 = vmul.f32 %v555_v37, %v3526_v38 }
 0x38a   :  { %v733_v36 = vpop.f32.mrf.mxu0 }
 0x38b   :  { %v3596_v56 = vadd.f32 %v2936_v35, %v733_v36 }
 0x38d   :  { %v2756_v9 = vmul.f32 -1.442695, %v3596_v56 }
 0x38f   :  { %2979 = vpow2.f32 %v2756_v9 }
 0x392   :  { %v736_v39 = vpop.f32.mrf.mxu0 }
 0x393   :  { %v3599_v40 = vadd.f32 %v2936_v35, %v736_v39  ;;  %v559_v0 = vpop.permute.xlu1 %558 }
 0x394   :  { %v565_v43 = vmul.f32 %v559_v0, %v3537_v45 }
 0x395   :  { %v2980_v44 = vpop.eup %2979  ;;  %v2757_v49 = vmul.f32 -1.442695, %v3599_v40 }
 0x396   :  { %v751_v51 = vadd.f32 1.0, %v2980_v44  ;;  %v3607_v52 = vadd.f32 %v565_v43, %v563_v42  ;;  %580 = vmatpush.msra.mxu2 %v565_v43 }
 0x397   :  { %2981 = vpow2.f32 %v2757_v49 }
 0x398   :  { %2983 = vrcp.f32 %v751_v51  ;;  %581 = vmatpush.msra.mxu2 %v3605_v48  ;;  %v765_v29 = vand.u32 2147483648, %v751_v51  ;;  %v763_v59 = vand.u32 2147483647, %v751_v51  ;;  %vm759_vm15 = vweird.f32 %v751_v51 }
 0x39a   :  { %582 = vmatpush.msra.mxu2 %v563_v42  ;;  %v739_v47 = vpop.f32.mrf.mxu0  ;;  %v766_v2 = vor.u32 1.1754944e-38, %v765_v29  ;;  %vm764_vm1 = vcmp.eq.f32.partialorder %v763_v59, 8.507059e+37 }
 0x39b   :  { %v3610_v24 = vadd.f32 %v2936_v35, %v739_v47  ;;  %2734 = vmatmul.msk.f32.vlgmr.msra.gmra.mxu2 %vm170_vm2, %v3305_v30 }
 0x39d   :  { %v2982_v38 = vpop.eup %2981  ;;  %v2758_v45 = vmul.f32 -1.442695, %v3610_v24 }
 0x39e   :  { %v2984_v41 = vpop.eup %2983  ;;  %v752_v54 = vadd.f32 1.0, %v2982_v38 }
 0x39f   :  { %2985 = vpow2.f32 %v2758_v45  ;;  %v755_v57 = vmul.f32 %v2984_v41, %v751_v51  ;;  %vm760_vm14 = vweird.f32 %v2984_v41 }
 0x3a0   :  { %2987 = vrcp.f32 %v752_v54  ;;  %vm761_vm0 = vmor %vm759_vm15, %vm760_vm14  ;;  %v780_v13 = vand.u32 2147483648, %v752_v54  ;;  %v778_v18 = vand.u32 2147483647, %v752_v54  ;;  %vm774_vm5 = vweird.f32 %v752_v54 }
 0x3a1   :  { %v756_v53 = vsub.f32 1.0, %v755_v57 }
 0x3a2   :  { %v981_v28 = vpop.f32.mrf.mxu0  ;;  %v781_v35 = vor.u32 1.1754944e-38, %v780_v13  ;;  %vm779_vm7 = vcmp.eq.f32.partialorder %v778_v18, 8.507059e+37 }
 0x3a3   :  { %v3618_v58 = vadd.f32 %v2937_v55, %v981_v28  ;;  %2735 = vmatmul.msk.f32.gmra.mxu2 %vm170_vm2, %v3312_v31  ;;  %v757_v30 = vmul.f32 %v2984_v41, %v756_v53 }
 0x3a5   :  { %v2986_v60 = vpop.eup %2985  ;;  %v2781_v61 = vmul.f32 -1.442695, %v3618_v58  ;;  %v758_v27 = vadd.f32 %v2984_v41, %v757_v30 }
 0x3a6   :  { %v2988_v62 = vpop.eup %2987  ;;  %v753_v63 = vadd.f32 1.0, %v2986_v60 }
 0x3a7   :  { %2989 = vpow2.f32 %v2781_v61  ;;  %v762_v4 = vsel %vm761_vm0, %v2984_v41, %v758_v27  ;;  %v770_v5 = vmul.f32 %v2988_v62, %v752_v54  ;;  %vm775_vm4 = vweird.f32 %v2988_v62 }
 0x3a8   :  { %2991 = vrcp.f32 %v753_v63  ;;  %v767_v6 = vsel %vm764_vm1, %v766_v2, %v762_v4  ;;  %vm776_vm6 = vmor %vm774_vm5, %vm775_vm4  ;;  %v795_v0 = vand.u32 2147483648, %v753_v63  ;;  %v793_v44 = vand.u32 2147483647, %v753_v63 }
 0x3a9   :  { %802 = vrot.lane.b32.xlu2 %v767_v6, %s3127_s20  ;;  %v771_v31 = vsub.f32 1.0, %v770_v5  ;;  %vm789_vm9 = vweird.f32 %v753_v63 }
 0x3aa   :  { %v984_v12 = vpop.f32.mrf.mxu0  ;;  %v796_v41 = vor.u32 1.1754944e-38, %v795_v0  ;;  %vm794_vm11 = vcmp.eq.f32.partialorder %v793_v44, 8.507059e+37 }
 0x3ab   :  { %v3624_v15 = vadd.f32 %v2937_v55, %v984_v12  ;;  %2736 = vmatmul.msk.f32.gmra.mxu2 %vm170_vm2, %v3319_v32  ;;  %v772_v21 = vmul.f32 %v2988_v62, %v771_v31 }
 0x3ad   :  { %v2990_v50 = vpop.eup %2989  ;;  %v2782_v22 = vmul.f32 -1.442695, %v3624_v15  ;;  %v773_v25 = vadd.f32 %v2988_v62, %v772_v21  ;;  %v2935_v21 = vld [vmem:[%s4282_s8] ss:$0 sm:$0xff] }
 0x3ae   :  { %v2992_v33 = vpop.eup %2991  ;;  %v999_v34 = vadd.f32 1.0, %v2990_v50 }
 0x3af   :  { %2993 = vpow2.f32 %v2782_v22  ;;  %v777_v36 = vsel %vm776_vm6, %v2988_v62, %v773_v25  ;;  %v785_v9 = vmul.f32 %v2992_v33, %v753_v63  ;;  %vm790_vm8 = vweird.f32 %v2992_v33 }
 0x3b0   :  { %2995 = vrcp.f32 %v999_v34  ;;  %v782_v37 = vsel %vm779_vm7, %v781_v35, %v777_v36  ;;  %vm791_vm10 = vmor %vm789_vm9, %vm790_vm8  ;;  %v1013_v30 = vand.u32 2147483648, %v999_v34  ;;  %v1011_v61 = vand.u32 2147483647, %v999_v34 }
 0x3b1   :  { %804 = vrot.lane.b32.xlu1 %v782_v37, %s3127_s20  ;;  %v786_v32 = vsub.f32 1.0, %v785_v9  ;;  %vm1007_vm13 = vweird.f32 %v999_v34  ;;  %v3648_v37 = vadd.f32 %v2935_v21, %v3591_v26 }
 0x3b2   :  { %v987_v39 = vpop.f32.mrf.mxu0  ;;  %v1014_v5 = vor.u32 1.1754944e-38, %v1013_v30  ;;  %vm1012_vm15 = vcmp.eq.f32.partialorder %v1011_v61, 8.507059e+37 }
 0x3b3   :  { %v3630_v42 = vadd.f32 %v2937_v55, %v987_v39  ;;  %v787_v43 = vmul.f32 %v2992_v33, %v786_v32  ;;  %v2938_v55 = vld [vmem:[%s4279_s6 + $0x4] ss:$0 sm:$0xff] }
 0x3b5   :  { %v2994_v49 = vpop.eup %2993  ;;  %v2783_v51 = vmul.f32 -1.442695, %v3630_v42  ;;  %v788_v47 = vadd.f32 %v2992_v33, %v787_v43 }
 0x3b6   :  { %v2996_v38 = vpop.eup %2995  ;;  %v1000_v45 = vadd.f32 1.0, %v2994_v49 }
 0x3b7   :  { %2997 = vpow2.f32 %v2783_v51  ;;  %v792_v54 = vsel %vm791_vm10, %v2992_v33, %v788_v47  ;;  %v1003_v57 = vmul.f32 %v2996_v38, %v999_v34  ;;  %vm1008_vm12 = vweird.f32 %v2996_v38 }
 0x3b8   :  { %2999 = vrcp.f32 %v1000_v45  ;;  %v797_v53 = vsel %vm794_vm11, %v796_v41, %v792_v54  ;;  %vm1009_vm14 = vmor %vm1007_vm13, %vm1008_vm12  ;;  %v1028_v50 = vand.u32 2147483648, %v1000_v45  ;;  %v1026_v33 = vand.u32 2147483647, %v1000_v45 }
 0x3b9   :  { %806 = vrot.lane.b32.xlu0 %v797_v53, %s3127_s20  ;;  %v1004_v28 = vsub.f32 1.0, %v1003_v57  ;;  %vm1022_vm1 = vweird.f32 %v1000_v45  ;;  %v2718_v51 = vmul.f32 -1.442695, %v3648_v37 }
 0x3ba   :  { %v1229_v29 = vpop.f32.mrf.mxu0  ;;  %v1029_v39 = vor.u32 1.1754944e-38, %v1028_v50  ;;  %vm1027_vm5 = vcmp.eq.f32.partialorder %v1026_v33, 8.507059e+37 }
 0x3bb   :  { %v3637_v59 = vadd.f32 %v2938_v55, %v1229_v29  ;;  %v1005_v60 = vmul.f32 %v2996_v38, %v1004_v28 }
 0x3bd   :  { %v2998_v27 = vpop.eup %2997  ;;  %v2806_v62 = vmul.f32 -1.442695, %v3637_v59  ;;  %v1006_v63 = vadd.f32 %v2996_v38, %v1005_v60 }
 0x3be   :  { %v3000_v2 = vpop.eup %2999  ;;  %v1001_v4 = vadd.f32 1.0, %v2998_v27 }
 0x3bf   :  { %3001 = vpow2.f32 %v2806_v62  ;;  %v1010_v6 = vsel %vm1009_vm14, %v2996_v38, %v1006_v63  ;;  %v1018_v31 = vmul.f32 %v3000_v2, %v1000_v45  ;;  %vm1023_vm0 = vweird.f32 %v3000_v2 }
 0x3c0   :  { %3003 = vrcp.f32 %v1001_v4  ;;  %v1015_v12 = vsel %vm1012_vm15, %v1014_v5, %v1010_v6  ;;  %vm1024_vm4 = vmor %vm1022_vm1, %vm1023_vm0  ;;  %v1043_v38 = vand.u32 2147483648, %v1001_v4  ;;  %v1041_v41 = vand.u32 2147483647, %v1001_v4 }
 0x3c1   :  { %1050 = vrot.lane.b32.xlu2 %v1015_v12, %s3127_s20  ;;  %v1019_v13 = vsub.f32 1.0, %v1018_v31  ;;  %vm1037_vm7 = vweird.f32 %v1001_v4 }
 0x3c2   :  { %v1232_v18 = vpop.f32.mrf.mxu0  ;;  %v1044_v30 = vor.u32 1.1754944e-38, %v1043_v38  ;;  %vm1042_vm9 = vcmp.eq.f32.partialorder %v1041_v41, 8.507059e+37 }
 0x3c3   :  { %v3644_v22 = vadd.f32 %v2938_v55, %v1232_v18  ;;  %v1020_v25 = vmul.f32 %v3000_v2, %v1019_v13 }
 0x3c5   :  { %v3002_v34 = vpop.eup %3001  ;;  %v2807_v35 = vmul.f32 -1.442695, %v3644_v22  ;;  %v1021_v36 = vadd.f32 %v3000_v2, %v1020_v25 }
 0x3c6   :  { %v3004_v9 = vpop.eup %3003  ;;  %v1247_v32 = vadd.f32 1.0, %v3002_v34 }
 0x3c7   :  { %3005 = vpow2.f32 %v2807_v35  ;;  %v1025_v0 = vsel %vm1024_vm4, %v3000_v2, %v1021_v36  ;;  %v1033_v43 = vmul.f32 %v3004_v9, %v1001_v4  ;;  %vm1038_vm6 = vweird.f32 %v3004_v9 }
 0x3c8   :  { %3007 = vrcp.f32 %v1247_v32  ;;  %v1030_v44 = vsel %vm1027_vm5, %v1029_v39, %v1025_v0  ;;  %vm1039_vm8 = vmor %vm1037_vm7, %vm1038_vm6  ;;  %v1261_v2 = vand.u32 2147483648, %v1247_v32  ;;  %v1259_v6 = vand.u32 2147483647, %v1247_v32 }
 0x3c9   :  { %1052 = vrot.lane.b32.xlu1 %v1030_v44, %s3127_s20  ;;  %v1034_v49 = vsub.f32 1.0, %v1033_v43  ;;  %3009 = vpow2.f32 %v2718_v51  ;;  %vm1255_vm11 = vweird.f32 %v1247_v32 }
 0x3ca   :  { %v1235_v47 = vpop.f32.mrf.mxu0  ;;  %v1262_v25 = vor.u32 1.1754944e-38, %v1261_v2  ;;  %vm1260_vm13 = vcmp.eq.f32.partialorder %v1259_v6, 8.507059e+37 }
 0x3cb   :  { %v3652_v45 = vadd.f32 %v2938_v55, %v1235_v47  ;;  %v1035_v26 = vmul.f32 %v3004_v9, %v1034_v49  ;;  %v2939_v55 = vld [vmem:[%s4279_s6 + $0x5] ss:$0 sm:$0xff] }
 0x3cd   :  { %v3006_v54 = vpop.eup %3005  ;;  %v2808_v57 = vmul.f32 -1.442695, %v3652_v45  ;;  %v1036_v53 = vadd.f32 %v3004_v9, %v1035_v26 }
 0x3ce   :  { %v3008_v28 = vpop.eup %3007  ;;  %v1248_v29 = vadd.f32 1.0, %v3006_v54 }
 0x3cf   :  { %3011 = vpow2.f32 %v2808_v57  ;;  %v1040_v60 = vsel %vm1039_vm8, %v3004_v9, %v1036_v53  ;;  %v1251_v61 = vmul.f32 %v3008_v28, %v1247_v32  ;;  %vm1256_vm10 = vweird.f32 %v3008_v28  ;;  %v3010_v31 = vpop.eup %3009 }
 0x3d0   :  { %3013 = vrcp.f32 %v1248_v29  ;;  %v1045_v27 = vsel %vm1042_vm9, %v1044_v30, %v1040_v60  ;;  %vm1257_vm12 = vmor %vm1255_vm11, %vm1256_vm10  ;;  %v3662_v35 = vadd.f32 1.0, %v3010_v31  ;;  %v1276_v0 = vand.u32 2147483648, %v1248_v29 }
 0x3d1   :  { %1054 = vrot.lane.b32.xlu0 %v1045_v27, %s3127_s20  ;;  %v1252_v62 = vsub.f32 1.0, %v1251_v61  ;;  %v1274_v44 = vand.u32 2147483647, %v1248_v29  ;;  %vm1270_vm15 = vweird.f32 %v1248_v29 }
 0x3d2   :  { %v1477_v63 = vpop.f32.mrf.mxu0  ;;  %v1277_v41 = vor.u32 1.1754944e-38, %v1276_v0 }
 0x3d3   :  { %v3659_v4 = vadd.f32 %v2939_v55, %v1477_v63  ;;  %v1253_v5 = vmul.f32 %v3008_v28, %v1252_v62  ;;  %vm1275_vm1 = vcmp.eq.f32.partialorder %v1274_v44, 8.507059e+37 }
 0x3d5   :  { %v3012_v12 = vpop.eup %3011  ;;  %v2831_v13 = vmul.f32 -1.442695, %v3659_v4  ;;  %v1254_v21 = vadd.f32 %v3008_v28, %v1253_v5 }
 0x3d6   :  { %v3014_v18 = vpop.eup %3013  ;;  %v1249_v50 = vadd.f32 1.0, %v3012_v12 }
 0x3d7   :  { %3015 = vpow2.f32 %v2831_v13  ;;  %v1258_v33 = vsel %vm1257_vm12, %v3008_v28, %v1254_v21  ;;  %v1266_v34 = vmul.f32 %v3014_v18, %v1248_v29  ;;  %vm1271_vm14 = vweird.f32 %v3014_v18 }
 0x3d8   :  { %3017 = vrcp.f32 %v1249_v50  ;;  %v1263_v36 = vsel %vm1260_vm13, %v1262_v25, %v1258_v33  ;;  %vm1272_vm0 = vmor %vm1270_vm15, %vm1271_vm14  ;;  %v1291_v61 = vand.u32 2147483648, %v1249_v50  ;;  %v1289_v62 = vand.u32 2147483647, %v1249_v50 }
 0x3d9   :  { %1298 = vrot.lane.b32.xlu2 %v1263_v36, %s3127_s20  ;;  %v1267_v9 = vsub.f32 1.0, %v1266_v34  ;;  %3019 = vrcp.f32 %v3662_v35  ;;  %vm1285_vm5 = vweird.f32 %v1249_v50  ;;  %vm395_vm13 = vweird.f32 %v3662_v35 }
 0x3da   :  { %v1480_v39 = vpop.f32.mrf.mxu0  ;;  %v1292_v13 = vor.u32 1.1754944e-38, %v1291_v61  ;;  %vm1290_vm7 = vcmp.eq.f32.partialorder %v1289_v62, 8.507059e+37 }
 0x3db   :  { %v3665_v43 = vadd.f32 %v2939_v55, %v1480_v39  ;;  %v1268_v32 = vmul.f32 %v3014_v18, %v1267_v9 }
 0x3dd   :  { %v3016_v49 = vpop.eup %3015  ;;  %v2832_v51 = vmul.f32 -1.442695, %v3665_v43  ;;  %v1269_v47 = vadd.f32 %v3014_v18, %v1268_v32 }
 0x3de   :  { %v3018_v38 = vpop.eup %3017  ;;  %v1495_v26 = vadd.f32 1.0, %v3016_v49 }
 0x3df   :  { %3021 = vpow2.f32 %v2832_v51  ;;  %v1273_v54 = vsel %vm1272_vm0, %v3014_v18, %v1269_v47  ;;  %v1281_v57 = vmul.f32 %v3018_v38, %v1249_v50  ;;  %v3670_v30 = vpop.eup %3019  ;;  %vm1286_vm4 = vweird.f32 %v3018_v38 }
 0x3e0   :  { %3023 = vrcp.f32 %v1495_v26  ;;  %v1278_v53 = vsel %vm1275_vm1, %v1277_v41, %v1273_v54  ;;  %v391_v6 = vmul.f32 %v3670_v30, %v3662_v35  ;;  %vm1287_vm6 = vmor %vm1285_vm5, %vm1286_vm4  ;;  %v1509_v34 = vand.u32 2147483648, %v1495_v26 }
 0x3e1   :  { %1300 = vrot.lane.b32.xlu1 %v1278_v53, %s3127_s20  ;;  %v1282_v28 = vsub.f32 1.0, %v1281_v57  ;;  %v1507_v50 = vand.u32 2147483647, %v1495_v26  ;;  %vm1503_vm9 = vweird.f32 %v1495_v26  ;;  %vm396_vm12 = vweird.f32 %v3670_v30 }
 0x3e2   :  { %v1483_v60 = vpop.f32.mrf.mxu0  ;;  %v392_v33 = vsub.f32 1.0, %v391_v6  ;;  %v1510_v49 = vor.u32 1.1754944e-38, %v1509_v34  ;;  %vm397_vm15 = vmor %vm395_vm13, %vm396_vm12  ;;  %v2737_v34 = vld [vmem:[%s4281_s7 + $0x10] sm:$0xff] }
 0x3e3   :  { %v3672_v27 = vadd.f32 %v2939_v55, %v1483_v60  ;;  %v1283_v29 = vmul.f32 %v3018_v38, %v1282_v28  ;;  %vm1508_vm11 = vcmp.eq.f32.partialorder %v1507_v50, 8.507059e+37  ;;  %v399_v60 = vand.u32 2147483647, %v3662_v35 }
 0x3e4   :  { %v393_v0 = vmul.f32 %v3670_v30, %v392_v33 }
 0x3e5   :  { %v3022_v63 = vpop.eup %3021  ;;  %v2833_v2 = vmul.f32 -1.442695, %v3672_v27  ;;  %v1284_v5 = vadd.f32 %v3018_v38, %v1283_v29  ;;  %vm400_vm5 = vcmp.eq.f32.partialorder %v399_v60, 8.507059e+37 }
 0x3e6   :  { %v3024_v31 = vpop.eup %3023  ;;  %v1496_v12 = vadd.f32 1.0, %v3022_v63  ;;  %v394_v54 = vadd.f32 %v3670_v30, %v393_v0 }
 0x3e7   :  { %3025 = vpow2.f32 %v2833_v2  ;;  %v1288_v21 = vsel %vm1287_vm6, %v3018_v38, %v1284_v5  ;;  %v1499_v55 = vmul.f32 %v3024_v31, %v1495_v26  ;;  %vm1504_vm8 = vweird.f32 %v3024_v31 }
 0x3e8   :  { %3027 = vrcp.f32 %v1496_v12  ;;  %v1293_v18 = vsel %vm1290_vm7, %v1292_v13, %v1288_v21  ;;  %vm1505_vm10 = vmor %vm1503_vm9, %vm1504_vm8  ;;  %v1524_v57 = vand.u32 2147483648, %v1496_v12  ;;  %v401_v26 = vand.u32 2147483648, %v3662_v35 }
 0x3e9   :  { %1302 = vrot.lane.b32.xlu0 %v1293_v18, %s3127_s20  ;;  %v1500_v25 = vsub.f32 1.0, %v1499_v55  ;;  %v1522_v28 = vand.u32 2147483647, %v1496_v12  ;;  %vm1518_vm0 = vweird.f32 %v1496_v12  ;;  %v398_v29 = vsel %vm397_vm15, %v3670_v30, %v394_v54 }
 0x3ea   :  { %v1525_v63 = vor.u32 1.1754944e-38, %v1524_v57  ;;  %v402_v2 = vor.u32 1.1754944e-38, %v401_v26 }
 0x3eb   :  { %v1501_v36 = vmul.f32 %v3024_v31, %v1500_v25  ;;  %vm1523_vm4 = vcmp.eq.f32.partialorder %v1522_v28, 8.507059e+37  ;;  %v2738_v25 = vld [vmem:[%s4281_s7 + $0x18] sm:$0xff] }
 0x3ec   :  { %v403_v13 = vsel %vm400_vm5, %v402_v2, %v398_v29  ;;  %624 = vmatpush.msra.mxu1 %v2738_v25  ;;  %v2787_v29 = vld [vmem:[%s4281_s7 + $0x30] sm:$0xff]  ;;  %v2813_v25 = vld [vmem:[%s4281_s7 + $0x48] sm:$0xff] }
 0x3ed   :  { %v3026_v9 = vpop.eup %3025  ;;  %v1502_v39 = vadd.f32 %v3024_v31, %v1501_v36 }
 0x3ee   :  { %v3028_v32 = vpop.eup %3027  ;;  %v1497_v44 = vadd.f32 1.0, %v3026_v9  ;;  %625 = vmatpush.msra.mxu1 %v2737_v34 }
 0x3ef   :  { %v1506_v51 = vsel %vm1505_vm10, %v3024_v31, %v1502_v39  ;;  %v1514_v47 = vmul.f32 %v3028_v32, %v1496_v12  ;;  %vm1519_vm14 = vweird.f32 %v3028_v32 }
 0x3f0   :  { %3029 = vrcp.f32 %v1497_v44  ;;  %v1511_v38 = vsel %vm1508_vm11, %v1510_v49, %v1506_v51  ;;  %vm1520_vm1 = vmor %vm1518_vm0, %vm1519_vm14  ;;  %v1539_v21 = vand.u32 2147483648, %v1497_v44  ;;  %v1537_v12 = vand.u32 2147483647, %v1497_v44 }
 0x3f1   :  { %1546 = vrot.lane.b32.xlu2 %v1511_v38, %s3127_s20  ;;  %v1515_v41 = vsub.f32 1.0, %v1514_v47  ;;  %vm1533_vm7 = vweird.f32 %v1497_v44 }
 0x3f2   :  { %v1540_v18 = vor.u32 1.1754944e-38, %v1539_v21  ;;  %vm1538_vm9 = vcmp.eq.f32.partialorder %v1537_v12, 8.507059e+37 }
 0x3f3   :  { %v1516_v53 = vmul.f32 %v3028_v32, %v1515_v41 }
 0x3f5   :  { %v1517_v61 = vadd.f32 %v3028_v32, %v1516_v53 }
 0x3f6   :  { %v3030_v62 = vpop.eup %3029 }
 0x3f7   :  { %v1521_v5 = vsel %vm1520_vm1, %v3028_v32, %v1517_v61  ;;  %v1529_v6 = vmul.f32 %v3030_v62, %v1497_v44  ;;  %vm1534_vm6 = vweird.f32 %v3030_v62 }
 0x3f8   :  { %v1526_v31 = vsel %vm1523_vm4, %v1525_v63, %v1521_v5  ;;  %vm1535_vm8 = vmor %vm1533_vm7, %vm1534_vm6 }
 0x3f9   :  { %1548 = vrot.lane.b32.xlu1 %v1526_v31, %s3127_s20  ;;  %406 = vrot.lane.b32.xlu2 %v403_v13, %s3127_s20  ;;  %v1530_v35 = vsub.f32 1.0, %v1529_v6 }
 0x3fb   :  { %v1531_v55 = vmul.f32 %v3030_v62, %v1530_v35 }
 0x3fd   :  { %v1532_v30 = vadd.f32 %v3030_v62, %v1531_v55 }
 0x3ff   :  { %v1536_v33 = vsel %vm1535_vm8, %v3030_v62, %v1532_v30 }
 0x400   :  { %v1541_v36 = vsel %vm1538_vm9, %v1540_v18, %v1536_v33 }
 0x401   :  { %1550 = vrot.lane.b32.xlu0 %v1541_v36, %s3127_s20 }
 0x403   :  { %v803_v32 = vpop.permute.xlu2 %802 }
 0x404   :  { %v811_v51 = vmul.f32 %v803_v32, %v3596_v56 }
 0x41b   :  { %v1051_v56 = vpop.permute.xlu2 %1050 }
 0x41e   :  { %v584_v50 = vpop.f32.mrf.mxu2 }
 0x41f   :  { %v585_v9 = vadd.f32 %v584_v50, %v3605_v48 }
 0x421   :  { %2740 = vmatmul.msk.f32.vlgmr.msra.gmra.mxu1 %vm212_vm3, %v585_v9 }
 0x423   :  { %v805_v44 = vpop.permute.xlu1 %804 }
 0x424   :  { %v3702_v38 = vmul.f32 %v805_v44, %v3599_v40 }
 0x426   :  { %v587_v39 = vpop.f32.mrf.mxu2 }
 0x427   :  { %v588_v0 = vadd.f32 %v587_v39, %v3607_v52  ;;  %v2812_v39 = vld [vmem:[%s4281_s7 + $0x40] sm:$0xff] }
 0x429   :  { %2741 = vmatmul.msk.f32.gmra.mxu1 %vm212_vm3, %v588_v0 }
 0x42b   :  { %v807_v49 = vpop.permute.xlu0 %806 }
 0x42c   :  { %v813_v47 = vmul.f32 %v807_v49, %v3610_v24  ;;  %v1059_v24 = vmul.f32 %v1051_v56, %v3618_v58 }
 0x42e   :  { %v590_v41 = vpop.f32.mrf.mxu2  ;;  %828 = vmatpush.msrb.mxu2 %v813_v47  ;;  %v3704_v54 = vadd.f32 %v813_v47, %v811_v51  ;;  %v2838_v47 = vld [vmem:[%s4281_s7 + $0x58] sm:$0xff] }
 0x42f   :  { %v591_v57 = vadd.f32 %v590_v41, %v3605_v48 }
 0x430   :  { %829 = vmatpush.msrb.mxu2 %v3702_v38 }
 0x431   :  { %2742 = vmatmul.msk.f32.gmra.mxu1 %vm212_vm3, %v591_v57 }
 0x432   :  { %830 = vmatpush.msrb.mxu2 %v811_v51 }
 0x433   :  { %2759 = vmatmul.msk.f32.vlgmr.msrb.gmra.mxu2 %vm170_vm2, %v3410_v20  ;;  %v1299_v20 = vpop.permute.xlu2 %1298 }
 0x434   :  { %v1307_v58 = vmul.f32 %v1299_v20, %v3637_v59 }
 0x43b   :  { %2760 = vmatmul.msk.f32.gmra.mxu2 %vm170_vm2, %v3422_v1  ;;  %v1053_v40 = vpop.permute.xlu1 %1052 }
 0x43c   :  { %v3718_v53 = vmul.f32 %v1053_v40, %v3624_v15 }
 0x443   :  { %v1055_v52 = vpop.permute.xlu0 %1054  ;;  %2761 = vmatmul.msk.f32.gmra.mxu2 %vm170_vm2, %v3429_v3 }
 0x444   :  { %v1061_v26 = vmul.f32 %v1055_v52, %v3630_v42 }
 0x446   :  { %1076 = vmatpush.msra.mxu2 %v1061_v26  ;;  %v3720_v28 = vadd.f32 %v1061_v26, %v1059_v24 }
 0x448   :  { %1077 = vmatpush.msra.mxu2 %v3718_v53 }
 0x44a   :  { %1078 = vmatpush.msra.mxu2 %v1059_v24 }
 0x44b   :  { %2784 = vmatmul.msk.f32.vlgmr.msra.gmra.mxu2 %vm170_vm2, %v3440_v7  ;;  %v1547_v7 = vpop.permute.xlu2 %1546 }
 0x44c   :  { %v1555_v59 = vmul.f32 %v1547_v7, %v3659_v4  ;;  %v2941_v7 = vld [vmem:[%s4282_s8 + $0x2] ss:$0 sm:$0xff] }
 0x453   :  { %2785 = vmatmul.msk.f32.gmra.mxu2 %vm170_vm2, %v3452_v8  ;;  %v1301_v1 = vpop.permute.xlu1 %1300 }
 0x454   :  { %v3732_v42 = vmul.f32 %v1301_v1, %v3644_v22 }
 0x45b   :  { %v1303_v3 = vpop.permute.xlu0 %1302  ;;  %2786 = vmatmul.msk.f32.gmra.mxu2 %vm170_vm2, %v3459_v10 }
 0x45c   :  { %v1309_v15 = vmul.f32 %v1303_v3, %v3652_v45 }
 0x45e   :  { %1324 = vmatpush.msrb.mxu2 %v1309_v15  ;;  %v3734_v60 = vadd.f32 %v1309_v15, %v1307_v58 }
 0x460   :  { %1325 = vmatpush.msrb.mxu2 %v3732_v42 }
 0x462   :  { %1326 = vmatpush.msrb.mxu2 %v1307_v58 }
 0x463   :  { %2809 = vmatmul.msk.f32.vlgmr.msrb.gmra.mxu2 %vm170_vm2, %v3466_v11  ;;  %v2763_v11 = vld [vmem:[%s4281_s7 + $0x28] sm:$0xff] }
 0x464   :  { %872 = vmatpush.msrb.mxu1 %v2763_v11 }
 0x46b   :  { %2810 = vmatmul.msk.f32.gmra.mxu2 %vm170_vm2, %v3479_v14  ;;  %v1549_v8 = vpop.permute.xlu1 %1548  ;;  %v2762_v14 = vld [vmem:[%s4281_s7 + $0x20] sm:$0xff] }
 0x46c   :  { %v3746_v45 = vmul.f32 %v1549_v8, %v3665_v43  ;;  %873 = vmatpush.msrb.mxu1 %v2762_v14  ;;  %v2788_v43 = vld [vmem:[%s4281_s7 + $0x38] sm:$0xff] }
 0x46e   :  { %1120 = vmatpush.msra.mxu1 %v2788_v43 }
 0x470   :  { %1121 = vmatpush.msra.mxu1 %v2787_v29 }
 0x473   :  { %v1551_v10 = vpop.permute.xlu0 %1550  ;;  %2811 = vmatmul.msk.f32.gmra.mxu2 %vm170_vm2, %v3489_v16 }
 0x474   :  { %v1557_v22 = vmul.f32 %v1551_v10, %v3672_v27 }
 0x476   :  { %1572 = vmatpush.msra.mxu2 %v1557_v22  ;;  %v3748_v61 = vadd.f32 %v1557_v22, %v1555_v59 }
 0x478   :  { %1573 = vmatpush.msra.mxu2 %v3746_v45 }
 0x47a   :  { %1574 = vmatpush.msra.mxu2 %v1555_v59 }
 0x47b   :  { %2834 = vmatmul.msk.f32.vlgmr.msra.gmra.mxu2 %vm170_vm2, %v3496_v17  ;;  %v2940_v17 = vld [vmem:[%s4282_s8 + $0x1] ss:$0 sm:$0xff] }
 0x483   :  { %2835 = vmatmul.msk.f32.gmra.mxu2 %vm170_vm2, %v3503_v19 }
 0x48b   :  { %2836 = vmatmul.msk.f32.gmra.mxu2 %vm170_vm2, %v3512_v23 }
 0x49e   :  { %v627_v16 = vpop.f32.mrf.mxu1 }
 0x4a6   :  { %v629_v4 = vpop.f32.mrf.mxu1 }
 0x4a7   :  { %v3766_v19 = vadd.f32 %v2940_v17, %v629_v4  ;;  %v2942_v17 = vld [vmem:[%s4282_s8 + $0x3] ss:$0 sm:$0xff] }
 0x4a9   :  { %v2743_v23 = vmul.f32 -1.442695, %v3766_v19 }
 0x4ab   :  { %3031 = vpow2.f32 %v2743_v23 }
 0x4ae   :  { %v632_v27 = vpop.f32.mrf.mxu1 }
 0x4b1   :  { %v3032_v62 = vpop.eup %3031 }
 0x4b2   :  { %v637_v63 = vadd.f32 1.0, %v3032_v62 }
 0x4b4   :  { %3033 = vrcp.f32 %v637_v63  ;;  %v649_v21 = vand.u32 2147483648, %v637_v63  ;;  %v647_v30 = vand.u32 2147483647, %v637_v63  ;;  %vm643_vm11 = vweird.f32 %v637_v63 }
 0x4b6   :  { %v832_v2 = vpop.f32.mrf.mxu2  ;;  %v650_v33 = vor.u32 1.1754944e-38, %v649_v21  ;;  %vm648_vm13 = vcmp.eq.f32.partialorder %v647_v30, 8.507059e+37 }
 0x4b7   :  { %v833_v5 = vadd.f32 %v832_v2, %v3702_v38 }
 0x4b9   :  { %2765 = vmatmul.msk.f32.vlgmr.msrb.gmra.mxu1 %vm212_vm3, %v833_v5 }
 0x4ba   :  { %v3034_v6 = vpop.eup %3033  ;;  %1368 = vmatpush.msrb.mxu1 %v2813_v25 }
 0x4bb   :  { %v639_v31 = vmul.f32 %v3034_v6, %v637_v63  ;;  %vm644_vm10 = vweird.f32 %v3034_v6 }
 0x4bc   :  { %vm645_vm12 = vmor %vm643_vm11, %vm644_vm10  ;;  %1369 = vmatpush.msrb.mxu1 %v2812_v39 }
 0x4bd   :  { %v640_v13 = vsub.f32 1.0, %v639_v31 }
 0x4be   :  { %v835_v35 = vpop.f32.mrf.mxu2 }
 0x4bf   :  { %v836_v55 = vadd.f32 %v835_v35, %v3704_v54  ;;  %v641_v12 = vmul.f32 %v3034_v6, %v640_v13  ;;  %v2837_v54 = vld [vmem:[%s4281_s7 + $0x50] sm:$0xff] }
 0x4c1   :  { %2766 = vmatmul.msk.f32.gmra.mxu1 %vm212_vm3, %v836_v55  ;;  %v642_v18 = vadd.f32 %v3034_v6, %v641_v12 }
 0x4c3   :  { %v646_v34 = vsel %vm645_vm12, %v3034_v6, %v642_v18  ;;  %v2943_v18 = vld [vmem:[%s4282_s8 + $0x4] ss:$0 sm:$0xff] }
 0x4c4   :  { %v651_v36 = vsel %vm648_vm13, %v650_v33, %v646_v34 }
 0x4c5   :  { %654 = vrot.lane.b32.xlu1 %v651_v36, %s3127_s20 }
 0x4c6   :  { %v838_v50 = vpop.f32.mrf.mxu2 }
 0x4c7   :  { %v839_v9 = vadd.f32 %v838_v50, %v3702_v38 }
 0x4c9   :  { %2767 = vmatmul.msk.f32.gmra.mxu1 %vm212_vm3, %v839_v9 }
 0x4ce   :  { %v1080_v0 = vpop.f32.mrf.mxu2 }
 0x4cf   :  { %v1081_v32 = vadd.f32 %v1080_v0, %v3718_v53 }
 0x4d1   :  { %2790 = vmatmul.msk.f32.vlgmr.msra.gmra.mxu1 %vm212_vm3, %v1081_v32 }
 0x4d2   :  { %1616 = vmatpush.msra.mxu1 %v2838_v47 }
 0x4d4   :  { %1617 = vmatpush.msra.mxu1 %v2837_v54 }
 0x4d6   :  { %v1083_v44 = vpop.f32.mrf.mxu2 }
 0x4d7   :  { %v1084_v49 = vadd.f32 %v1083_v44, %v3720_v28 }
 0x4d9   :  { %2791 = vmatmul.msk.f32.gmra.mxu1 %vm212_vm3, %v1084_v49 }
 0x4de   :  { %v1086_v51 = vpop.f32.mrf.mxu2 }
 0x4df   :  { %v1087_v41 = vadd.f32 %v1086_v51, %v3718_v53 }
 0x4e1   :  { %2792 = vmatmul.msk.f32.gmra.mxu1 %vm212_vm3, %v1087_v41 }
 0x4e6   :  { %v1328_v57 = vpop.f32.mrf.mxu2 }
 0x4e7   :  { %v1329_v56 = vadd.f32 %v1328_v57, %v3732_v42 }
 0x4e9   :  { %2815 = vmatmul.msk.f32.vlgmr.msrb.gmra.mxu1 %vm212_vm3, %v1329_v56 }
 0x4ee   :  { %v1331_v40 = vpop.f32.mrf.mxu2 }
 0x4ef   :  { %v1332_v52 = vadd.f32 %v1331_v40, %v3734_v60  ;;  %v2944_v40 = vld [vmem:[%s4282_s8 + $0x5] ss:$0 sm:$0xff] }
 0x4f1   :  { %2816 = vmatmul.msk.f32.gmra.mxu1 %vm212_vm3, %v1332_v52 }
 0x4f6   :  { %v1334_v24 = vpop.f32.mrf.mxu2 }
 0x4f7   :  { %v1335_v26 = vadd.f32 %v1334_v24, %v3732_v42 }
 0x4f9   :  { %2817 = vmatmul.msk.f32.gmra.mxu1 %vm212_vm3, %v1335_v26 }
 0x4fe   :  { %v1576_v28 = vpop.f32.mrf.mxu2 }
 0x4ff   :  { %v1577_v20 = vadd.f32 %v1576_v28, %v3746_v45 }
 0x501   :  { %2840 = vmatmul.msk.f32.vlgmr.msra.gmra.mxu1 %vm212_vm3, %v1577_v20 }
 0x506   :  { %v1579_v1 = vpop.f32.mrf.mxu2 }
 0x507   :  { %v1580_v3 = vadd.f32 %v1579_v1, %v3748_v61 }
 0x509   :  { %2841 = vmatmul.msk.f32.gmra.mxu1 %vm212_vm3, %v1580_v3 }
 0x50e   :  { %v1582_v58 = vpop.f32.mrf.mxu2 }
 0x50f   :  { %v1583_v15 = vadd.f32 %v1582_v58, %v3746_v45 }
 0x511   :  { %2842 = vmatmul.msk.f32.gmra.mxu1 %vm212_vm3, %v1583_v15 }
 0x536   :  { %v875_v60 = vpop.f32.mrf.mxu1 }
 0x53e   :  { %v877_v8 = vpop.f32.mrf.mxu1 }
 0x53f   :  { %v3815_v10 = vadd.f32 %v2941_v7, %v877_v8 }
 0x541   :  { %v2768_v59 = vmul.f32 -1.442695, %v3815_v10 }
 0x543   :  { %3035 = vpow2.f32 %v2768_v59 }
 0x546   :  { %v880_v22 = vpop.f32.mrf.mxu1 }
 0x549   :  { %v3036_v61 = vpop.eup %3035 }
 0x54a   :  { %v885_v11 = vadd.f32 1.0, %v3036_v61 }
 0x54c   :  { %3037 = vrcp.f32 %v885_v11  ;;  %v897_v27 = vand.u32 2147483648, %v885_v11  ;;  %v895_v63 = vand.u32 2147483647, %v885_v11  ;;  %vm891_vm15 = vweird.f32 %v885_v11 }
 0x54e   :  { %v1123_v14 = vpop.f32.mrf.mxu1  ;;  %v898_v6 = vor.u32 1.1754944e-38, %v897_v27  ;;  %vm896_vm1 = vcmp.eq.f32.partialorder %v895_v63, 8.507059e+37 }
 0x552   :  { %v3038_v16 = vpop.eup %3037 }
 0x553   :  { %v887_v4 = vmul.f32 %v3038_v16, %v885_v11  ;;  %vm892_vm14 = vweird.f32 %v3038_v16 }
 0x554   :  { %vm893_vm0 = vmor %vm891_vm15, %vm892_vm14 }
 0x555   :  { %v888_v23 = vsub.f32 1.0, %v887_v4 }
 0x556   :  { %v1125_v43 = vpop.f32.mrf.mxu1 }
 0x557   :  { %v3821_v29 = vadd.f32 %v2942_v17, %v1125_v43  ;;  %v889_v62 = vmul.f32 %v3038_v16, %v888_v23 }
 0x559   :  { %v2793_v2 = vmul.f32 -1.442695, %v3821_v29  ;;  %v890_v5 = vadd.f32 %v3038_v16, %v889_v62 }
 0x55b   :  { %3039 = vpow2.f32 %v2793_v2  ;;  %v894_v31 = vsel %vm893_vm0, %v3038_v16, %v890_v5  ;;  %v655_v2 = vpop.permute.xlu1 %654  ;;  %v407_v5 = vpop.permute.xlu2 %406 }
 0x55c   :  { %v899_v13 = vsel %vm896_vm1, %v898_v6, %v894_v31  ;;  %v657_v6 = vmul.f32 %v655_v2, %v3766_v19 }
 0x55d   :  { %902 = vrot.lane.b32.xlu0 %v899_v13, %s3127_s20  ;;  %v409_v13 = vmul.f32 %v407_v5, %v3648_v37  ;;  %v1651_v37 = vld [vmem:[%s4283_s9] sm:$0xff] }
 0x55e   :  { %v1128_v35 = vpop.f32.mrf.mxu1 }
 0x561   :  { %v3040_v21 = vpop.eup %3039 }
 0x562   :  { %v1133_v55 = vadd.f32 1.0, %v3040_v21  ;;  %v1653_v21 = vld [vmem:[%s4283_s9 + $0x10] sm:$0xff] }
 0x564   :  { %3041 = vrcp.f32 %v1133_v55  ;;  %v1145_v36 = vand.u32 2147483648, %v1133_v55  ;;  %v1143_v39 = vand.u32 2147483647, %v1133_v55  ;;  %vm1139_vm5 = vweird.f32 %v1133_v55 }
 0x566   :  { %v1371_v12 = vpop.f32.mrf.mxu1  ;;  %v1146_v44 = vor.u32 1.1754944e-38, %v1145_v36  ;;  %vm1144_vm7 = vcmp.eq.f32.partialorder %v1143_v39, 8.507059e+37 }
 0x56a   :  { %v3042_v30 = vpop.eup %3041 }
 0x56b   :  { %v1135_v25 = vmul.f32 %v3042_v30, %v1133_v55  ;;  %vm1140_vm4 = vweird.f32 %v3042_v30  ;;  %v658_v55 = vmax.f32 %v3605_v48, %v657_v6 }
 0x56c   :  { %vm1141_vm6 = vmor %vm1139_vm5, %vm1140_vm4 }
 0x56d   :  { %v1136_v33 = vsub.f32 1.0, %v1135_v25 }
 0x56e   :  { %v1373_v34 = vpop.f32.mrf.mxu1 }
 0x56f   :  { %v3828_v50 = vadd.f32 %v2943_v18, %v1373_v34  ;;  %v1137_v9 = vmul.f32 %v3042_v30, %v1136_v33  ;;  %v410_v18 = vmax.f32 %v3364_v46, %v409_v13  ;;  %v3867_v46 = vld [vmem:[%s4278_s3] sm:$0xff]  ;;  %v1654_v34 = vld [vmem:[%s4283_s9 + $0x18] sm:$0xff] }
 0x571   :  { %v2818_v0 = vmul.f32 -1.442695, %v3828_v50  ;;  %v1138_v32 = vadd.f32 %v3042_v30, %v1137_v9  ;;  %v3861_v48 = vadd.f32 %v1651_v37, %v410_v18  ;;  %v3886_v9 = vld [vmem:[%s4278_s3 + $0x10] sm:$0xff] }
 0x573   :  { %3043 = vpow2.f32 %v2818_v0  ;;  %v1142_v49 = vsel %vm1141_vm6, %v3042_v30, %v1138_v32  ;;  %v1652_v30 = vld [vmem:[%s4283_s9 + $0x8] sm:$0xff] }
 0x574   :  { %v1147_v51 = vsel %vm1144_vm7, %v1146_v44, %v1142_v49  ;;  %v1655_v49 = vld [vmem:[%s4283_s9 + $0x20] sm:$0xff] }
 0x575   :  { %1150 = vrot.lane.b32.xlu0 %v1147_v51, %s3127_s20 }
 0x576   :  { %v1376_v47 = vpop.f32.mrf.mxu1 }
 0x579   :  { %v3044_v41 = vpop.eup %3043 }
 0x57a   :  { %v1381_v54 = vadd.f32 1.0, %v3044_v41  ;;  %v3918_v41 = vld [vmem:[%s4278_s3 + $0x28] sm:$0xff] }
 0x57c   :  { %3045 = vrcp.f32 %v1381_v54  ;;  %v1393_v28 = vand.u32 2147483648, %v1381_v54  ;;  %v1391_v3 = vand.u32 2147483647, %v1381_v54  ;;  %vm1387_vm9 = vweird.f32 %v1381_v54 }
 0x57e   :  { %v1619_v57 = vpop.f32.mrf.mxu1  ;;  %v1394_v60 = vor.u32 1.1754944e-38, %v1393_v28  ;;  %vm1392_vm11 = vcmp.eq.f32.partialorder %v1391_v3, 8.507059e+37  ;;  %v3977_v28 = vld [vmem:[%s4278_s3 + $0x58] sm:$0xff]  ;;  %v2863_v3 = vld [vmem:[%s4284_s10 + $0x10] sm:$0xff] }
 0x582   :  { %v3046_v56 = vpop.eup %3045 }
 0x583   :  { %v1383_v52 = vmul.f32 %v3046_v56, %v1381_v54  ;;  %vm1388_vm8 = vweird.f32 %v3046_v56 }
 0x584   :  { %vm1389_vm10 = vmor %vm1387_vm9, %vm1388_vm8 }
 0x585   :  { %v1384_v24 = vsub.f32 1.0, %v1383_v52  ;;  %v3956_v52 = vld [vmem:[%s4278_s3 + $0x40] sm:$0xff] }
 0x586   :  { %v1621_v26 = vpop.f32.mrf.mxu1 }
 0x587   :  { %v3835_v20 = vadd.f32 %v2944_v40, %v1621_v26  ;;  %v1385_v1 = vmul.f32 %v3046_v56, %v1384_v24  ;;  %v1691_v40 = vld [vmem:[%s4284_s10 + $0x8] sm:$0xff]  ;;  %v3970_v26 = vld [vmem:[%s4278_s3 + $0x50] sm:$0xff] }
 0x588   :  { %1719 = vmatpush.msrb.mxu0 %v1691_v40  ;;  %v3963_v24 = vld [vmem:[%s4278_s3 + $0x48] sm:$0xff] }
 0x589   :  { %v2843_v58 = vmul.f32 -1.442695, %v3835_v20  ;;  %v1386_v15 = vadd.f32 %v3046_v56, %v1385_v1  ;;  %v2864_v1 = vld [vmem:[%s4284_s10 + $0x18] sm:$0xff] }
 0x58b   :  { %3047 = vpow2.f32 %v2843_v58  ;;  %v1390_v7 = vsel %vm1389_vm10, %v3046_v56, %v1386_v15  ;;  %v3936_v56 = vld [vmem:[%s4278_s3 + $0x30] sm:$0xff] }
 0x58c   :  { %v1395_v8 = vsel %vm1392_vm11, %v1394_v60, %v1390_v7 }
 0x58d   :  { %1398 = vrot.lane.b32.xlu1 %v1395_v8, %s3127_s20 }
 0x58e   :  { %v1624_v59 = vpop.f32.mrf.mxu1 }
 0x58f   :  { %v2886_v59 = vld [vmem:[%s4284_s10 + $0x28] sm:$0xff] }
 0x591   :  { %v3048_v22 = vpop.eup %3047 }
 0x592   :  { %v1629_v61 = vadd.f32 1.0, %v3048_v22 }
 0x594   :  { %3049 = vrcp.f32 %v1629_v61  ;;  %v1641_v17 = vand.u32 2147483648, %v1629_v61  ;;  %v1639_v23 = vand.u32 2147483647, %v1629_v61  ;;  %vm1635_vm13 = vweird.f32 %v1629_v61 }
 0x596   :  { %v1642_v27 = vor.u32 1.1754944e-38, %v1641_v17  ;;  %vm1640_vm15 = vcmp.eq.f32.partialorder %v1639_v23, 8.507059e+37 }
 0x59a   :  { %v3050_v11 = vpop.eup %3049 }
 0x59b   :  { %v1631_v14 = vmul.f32 %v3050_v11, %v1629_v61  ;;  %vm1636_vm12 = vweird.f32 %v3050_v11 }
 0x59c   :  { %vm1637_vm14 = vmor %vm1635_vm13, %vm1636_vm12 }
 0x59d   :  { %v1632_v16 = vsub.f32 1.0, %v1631_v14 }
 0x59f   :  { %v1633_v4 = vmul.f32 %v3050_v11, %v1632_v16 }
 0x5a1   :  { %v1634_v43 = vadd.f32 %v3050_v11, %v1633_v4 }
 0x5a3   :  { %v1638_v62 = vsel %vm1637_vm14, %v3050_v11, %v1634_v43  ;;  %v2885_v11 = vld [vmem:[%s4284_s10 + $0x20] sm:$0xff]  ;;  %v2908_v43 = vld [vmem:[%s4284_s10 + $0x38] sm:$0xff] }
 0x5a4   :  { %v1643_v63 = vsel %vm1640_vm15, %v1642_v27, %v1638_v62 }
 0x5a5   :  { %1646 = vrot.lane.b32.xlu2 %v1643_v63, %s3127_s20  ;;  %v2907_v63 = vld [vmem:[%s4284_s10 + $0x30] sm:$0xff] }
 0x5cf   :  { %v903_v31 = vpop.permute.xlu0 %902 }
 0x5d0   :  { %v905_v35 = vmul.f32 %v903_v31, %v3815_v10  ;;  %v3857_v10 = vadd.f32 %v1652_v30, %v658_v55 }
 0x5d2   :  { %v906_v12 = vmax.f32 %v3702_v38, %v905_v35  ;;  %v3874_v38 = vld [vmem:[%s4278_s3 + $0x8] sm:$0xff] }
 0x5d4   :  { %v3852_v19 = vadd.f32 %v1653_v21, %v906_v12 }
 0x5d6   :  { %1677 = vmatpush.msra.mxu3 %v3852_v19  ;;  %v1663_v60 = vadd.f32 %v3852_v19, %v3861_v48 }
 0x5d8   :  { %1678 = vmatpush.msra.mxu3 %v3857_v10 }
 0x5da   :  { %1679 = vmatpush.msra.mxu3 %v3861_v48  ;;  %v2945_v48 = vld [vmem:[%s4285_s11] ss:$0 sm:$0xff] }
 0x5db   :  { %2844 = vmatmul.msk.f32.vlgmr.msra.gmra.mxu3 %vm170_vm2, %v3867_v46 }
 0x5e3   :  { %2845 = vmatmul.msk.f32.gmra.mxu3 %vm170_vm2, %v3874_v38 }
 0x5e7   :  { %v1151_v25 = vpop.permute.xlu0 %1150 }
 0x5e8   :  { %v1153_v33 = vmul.f32 %v1151_v25, %v3821_v29  ;;  %v3905_v29 = vld [vmem:[%s4278_s3 + $0x20] sm:$0xff] }
 0x5ea   :  { %v1154_v36 = vmax.f32 %v3718_v53, %v1153_v33  ;;  %v3898_v53 = vld [vmem:[%s4278_s3 + $0x18] sm:$0xff] }
 0x5eb   :  { %2846 = vmatmul.msk.f32.gmra.mxu3 %vm170_vm2, %v3886_v9 }
 0x5ec   :  { %v3890_v39 = vadd.f32 %v1654_v34, %v1154_v36 }
 0x5ee   :  { %1908 = vmatpush.msrb.mxu3 %v3890_v39  ;;  %v1894_v17 = vadd.f32 %v3890_v39, %v3857_v10 }
 0x5f0   :  { %1909 = vmatpush.msrb.mxu3 %v3852_v19 }
 0x5f2   :  { %1910 = vmatpush.msrb.mxu3 %v3857_v10 }
 0x5f3   :  { %2860 = vmatmul.msk.f32.vlgmr.msrb.gmra.mxu3 %vm170_vm2, %v3898_v53 }
 0x5fb   :  { %2861 = vmatmul.msk.f32.gmra.mxu3 %vm170_vm2, %v3905_v29 }
 0x5ff   :  { %v1399_v0 = vpop.permute.xlu1 %1398  ;;  %v1647_v32 = vpop.permute.xlu2 %1646 }
 0x600   :  { %v1401_v44 = vmul.f32 %v1399_v0, %v3828_v50  ;;  %v1649_v47 = vmul.f32 %v1647_v32, %v3835_v20  ;;  %v1690_v20 = vld [vmem:[%s4284_s10] sm:$0xff] }
 0x601   :  { %1720 = vmatpush.msrb.mxu0 %v1690_v20 }
 0x602   :  { %v1402_v51 = vmax.f32 %v3732_v42, %v1401_v44  ;;  %v1650_v50 = vmax.f32 %v3746_v45, %v1649_v47  ;;  %v1656_v42 = vld [vmem:[%s4283_s9 + $0x28] sm:$0xff]  ;;  %v3946_v45 = vld [vmem:[%s4278_s3 + $0x38] sm:$0xff] }
 0x603   :  { %2862 = vmatmul.msk.f32.gmra.mxu3 %vm170_vm2, %v3918_v41  ;;  %1952 = vmatpush.msra.mxu0 %v2864_v1 }
 0x604   :  { %v3922_v54 = vadd.f32 %v1655_v49, %v1402_v51  ;;  %v3930_v57 = vadd.f32 %v1656_v42, %v1650_v50 }
 0x605   :  { %1953 = vmatpush.msra.mxu0 %v2863_v3 }
 0x606   :  { %2143 = vmatpush.msra.mxu3 %v3922_v54  ;;  %v2129_v6 = vadd.f32 %v3922_v54, %v3852_v19  ;;  %v2364_v30 = vadd.f32 %v3930_v57, %v3890_v39 }
 0x608   :  { %2144 = vmatpush.msra.mxu3 %v3890_v39 }
 0x60a   :  { %2145 = vmatpush.msra.mxu3 %v3852_v19 }
 0x60b   :  { %2882 = vmatmul.msk.f32.vlgmr.msra.gmra.mxu3 %vm170_vm2, %v3936_v56 }
 0x60c   :  { %2378 = vmatpush.msrb.mxu3 %v3930_v57  ;;  %v2946_v57 = vld [vmem:[%s4285_s11 + $0x1] ss:$0 sm:$0xff] }
 0x60e   :  { %2379 = vmatpush.msrb.mxu3 %v3922_v54 }
 0x610   :  { %2380 = vmatpush.msrb.mxu3 %v3890_v39 }
 0x613   :  { %2883 = vmatmul.msk.f32.gmra.mxu3 %vm170_vm2, %v3946_v45 }
 0x61b   :  { %2884 = vmatmul.msk.f32.gmra.mxu3 %vm170_vm2, %v3956_v52 }
 0x623   :  { %2904 = vmatmul.msk.f32.vlgmr.msrb.gmra.mxu3 %vm170_vm2, %v3963_v24 }
 0x62b   :  { %2905 = vmatmul.msk.f32.gmra.mxu3 %vm170_vm2, %v3970_v26 }
 0x633   :  { %2906 = vmatmul.msk.f32.gmra.mxu3 %vm170_vm2, %v3977_v28 }
 0x65e   :  { %v1681_v58 = vpop.f32.mrf.mxu3 }
 0x65f   :  { %v1682_v15 = vadd.f32 %v1681_v58, %v3857_v10 }
 0x661   :  { %2847 = vmatmul.msk.f32.vlgmr.msrb.gmra.mxu0 %vm212_vm3, %v1682_v15 }
 0x662   :  { %2187 = vmatpush.msrb.mxu0 %v2886_v59 }
 0x664   :  { %2188 = vmatpush.msrb.mxu0 %v2885_v11 }
 0x666   :  { %v1684_v7 = vpop.f32.mrf.mxu3 }
 0x667   :  { %v1685_v8 = vadd.f32 %v1684_v7, %v1663_v60 }
 0x669   :  { %2848 = vmatmul.msk.f32.gmra.mxu0 %vm212_vm3, %v1685_v8 }
 0x66e   :  { %v1687_v22 = vpop.f32.mrf.mxu3 }
 0x66f   :  { %v1688_v61 = vadd.f32 %v1687_v22, %v3857_v10 }
 0x671   :  { %2849 = vmatmul.msk.f32.gmra.mxu0 %vm212_vm3, %v1688_v61 }
 0x676   :  { %v1912_v14 = vpop.f32.mrf.mxu3 }
 0x677   :  { %v1913_v16 = vadd.f32 %v1912_v14, %v3852_v19 }
 0x679   :  { %2866 = vmatmul.msk.f32.vlgmr.msra.gmra.mxu0 %vm212_vm3, %v1913_v16 }
 0x67a   :  { %2422 = vmatpush.msra.mxu0 %v2908_v43 }
 0x67c   :  { %2423 = vmatpush.msra.mxu0 %v2907_v63 }
 0x67e   :  { %v1915_v4 = vpop.f32.mrf.mxu3 }
 0x67f   :  { %v1916_v23 = vadd.f32 %v1915_v4, %v1894_v17 }
 0x681   :  { %2867 = vmatmul.msk.f32.gmra.mxu0 %vm212_vm3, %v1916_v23 }
 0x686   :  { %v1918_v27 = vpop.f32.mrf.mxu3 }
 0x687   :  { %v1919_v62 = vadd.f32 %v1918_v27, %v3852_v19 }
 0x689   :  { %2868 = vmatmul.msk.f32.gmra.mxu0 %vm212_vm3, %v1919_v62 }
 0x68e   :  { %v2147_v2 = vpop.f32.mrf.mxu3 }
 0x68f   :  { %v2148_v5 = vadd.f32 %v2147_v2, %v3890_v39 }
 0x691   :  { %2888 = vmatmul.msk.f32.vlgmr.msrb.gmra.mxu0 %vm212_vm3, %v2148_v5 }
 0x696   :  { %v2150_v31 = vpop.f32.mrf.mxu3 }
 0x697   :  { %v2151_v13 = vadd.f32 %v2150_v31, %v2129_v6 }
 0x699   :  { %2889 = vmatmul.msk.f32.gmra.mxu0 %vm212_vm3, %v2151_v13 }
 0x69e   :  { %v2153_v35 = vpop.f32.mrf.mxu3 }
 0x69f   :  { %v2154_v21 = vadd.f32 %v2153_v35, %v3890_v39 }
 0x6a1   :  { %2890 = vmatmul.msk.f32.gmra.mxu0 %vm212_vm3, %v2154_v21 }
 0x6a6   :  { %v2382_v55 = vpop.f32.mrf.mxu3 }
 0x6a7   :  { %v2383_v12 = vadd.f32 %v2382_v55, %v3922_v54 }
 0x6a9   :  { %2910 = vmatmul.msk.f32.vlgmr.msra.gmra.mxu0 %vm212_vm3, %v2383_v12 }
 0x6ae   :  { %v2385_v18 = vpop.f32.mrf.mxu3 }
 0x6af   :  { %v2386_v37 = vadd.f32 %v2385_v18, %v2364_v30 }
 0x6b1   :  { %2911 = vmatmul.msk.f32.gmra.mxu0 %vm212_vm3, %v2386_v37 }
 0x6b6   :  { %v2388_v19 = vpop.f32.mrf.mxu3 }
 0x6b7   :  { %v2389_v10 = vadd.f32 %v2388_v19, %v3922_v54 }
 0x6b9   :  { %2912 = vmatmul.msk.f32.gmra.mxu0 %vm212_vm3, %v2389_v10 }
 0x6de   :  { %v1722_v25 = vpop.f32.mrf.mxu0 }
 0x6df   :  { %v4033_v33 = vadd.f32 %v2945_v48, %v1722_v25 }
 0x6e1   :  { %v2850_v34 = vmul.f32 -1.442695, %v4033_v33 }
 0x6e3   :  { %3051 = vpow2.f32 %v2850_v34 }
 0x6e6   :  { %v1725_v36 = vpop.f32.mrf.mxu0 }
 0x6e7   :  { %v4036_v39 = vadd.f32 %v2945_v48, %v1725_v36 }
 0x6e9   :  { %v3052_v0 = vpop.eup %3051  ;;  %v2851_v32 = vmul.f32 -1.442695, %v4036_v39 }
 0x6ea   :  { %v1740_v44 = vadd.f32 1.0, %v3052_v0 }
 0x6eb   :  { %3053 = vpow2.f32 %v2851_v32 }
 0x6ec   :  { %3055 = vrcp.f32 %v1740_v44  ;;  %v1754_v3 = vand.u32 2147483648, %v1740_v44  ;;  %v1752_v60 = vand.u32 2147483647, %v1740_v44  ;;  %vm1748_vm1 = vweird.f32 %v1740_v44 }
 0x6ee   :  { %v1728_v49 = vpop.f32.mrf.mxu0  ;;  %v1755_v11 = vor.u32 1.1754944e-38, %v1754_v3  ;;  %vm1753_vm5 = vcmp.eq.f32.partialorder %v1752_v60, 8.507059e+37 }
 0x6ef   :  { %v4039_v51 = vadd.f32 %v2945_v48, %v1728_v49 }
 0x6f1   :  { %v3054_v47 = vpop.eup %3053  ;;  %v2852_v54 = vmul.f32 -1.442695, %v4039_v51 }
 0x6f2   :  { %v3056_v50 = vpop.eup %3055  ;;  %v1741_v42 = vadd.f32 1.0, %v3054_v47  ;;  %v2947_v47 = vld [vmem:[%s4285_s11 + $0x2] ss:$0 sm:$0xff] }
 0x6f3   :  { %3057 = vpow2.f32 %v2852_v54  ;;  %v1744_v40 = vmul.f32 %v3056_v50, %v1740_v44  ;;  %vm1749_vm0 = vweird.f32 %v3056_v50 }
 0x6f4   :  { %3059 = vrcp.f32 %v1741_v42  ;;  %vm1750_vm4 = vmor %vm1748_vm1, %vm1749_vm0  ;;  %v1769_v43 = vand.u32 2147483648, %v1741_v42  ;;  %v1767_v63 = vand.u32 2147483647, %v1741_v42  ;;  %vm1763_vm7 = vweird.f32 %v1741_v42 }
 0x6f5   :  { %v1745_v20 = vsub.f32 1.0, %v1744_v40 }
 0x6f6   :  { %v1955_v1 = vpop.f32.mrf.mxu0  ;;  %v1770_v35 = vor.u32 1.1754944e-38, %v1769_v43  ;;  %vm1768_vm9 = vcmp.eq.f32.partialorder %v1767_v63, 8.507059e+37 }
 0x6f7   :  { %v4045_v58 = vadd.f32 %v2946_v57, %v1955_v1  ;;  %v1746_v15 = vmul.f32 %v3056_v50, %v1745_v20 }
 0x6f9   :  { %v3058_v7 = vpop.eup %3057  ;;  %v2869_v8 = vmul.f32 -1.442695, %v4045_v58  ;;  %v1747_v59 = vadd.f32 %v3056_v50, %v1746_v15 }
 0x6fa   :  { %v3060_v22 = vpop.eup %3059  ;;  %v1742_v61 = vadd.f32 1.0, %v3058_v7 }
 0x6fb   :  { %3061 = vpow2.f32 %v2869_v8  ;;  %v1751_v14 = vsel %vm1750_vm4, %v3056_v50, %v1747_v59  ;;  %v1759_v16 = vmul.f32 %v3060_v22, %v1741_v42  ;;  %vm1764_vm6 = vweird.f32 %v3060_v22 }
 0x6fc   :  { %3063 = vrcp.f32 %v1742_v61  ;;  %v1756_v17 = vsel %vm1753_vm5, %v1755_v11, %v1751_v14  ;;  %vm1765_vm8 = vmor %vm1763_vm7, %vm1764_vm6  ;;  %v1784_v37 = vand.u32 2147483648, %v1742_v61  ;;  %v1782_v48 = vand.u32 2147483647, %v1742_v61 }
 0x6fd   :  { %1791 = vrot.lane.b32.xlu2 %v1756_v17, %s3127_s20  ;;  %v1760_v4 = vsub.f32 1.0, %v1759_v16  ;;  %vm1778_vm11 = vweird.f32 %v1742_v61 }
 0x6fe   :  { %v1958_v23 = vpop.f32.mrf.mxu0  ;;  %v1785_v44 = vor.u32 1.1754944e-38, %v1784_v37  ;;  %vm1783_vm13 = vcmp.eq.f32.partialorder %v1782_v48, 8.507059e+37 }
 0x6ff   :  { %v4049_v27 = vadd.f32 %v2946_v57, %v1958_v23  ;;  %v1761_v62 = vmul.f32 %v3060_v22, %v1760_v4 }
 0x701   :  { %v3062_v2 = vpop.eup %3061  ;;  %v2870_v5 = vmul.f32 -1.442695, %v4049_v27  ;;  %v1762_v6 = vadd.f32 %v3060_v22, %v1761_v62 }
 0x702   :  { %v3064_v31 = vpop.eup %3063  ;;  %v1973_v13 = vadd.f32 1.0, %v3062_v2 }
 0x703   :  { %3065 = vpow2.f32 %v2870_v5  ;;  %v1766_v21 = vsel %vm1765_vm8, %v3060_v22, %v1762_v6  ;;  %v1774_v55 = vmul.f32 %v3064_v31, %v1742_v61  ;;  %vm1779_vm10 = vweird.f32 %v3064_v31 }
 0x704   :  { %3067 = vrcp.f32 %v1973_v13  ;;  %v1771_v12 = vsel %vm1768_vm9, %v1770_v35, %v1766_v21  ;;  %vm1780_vm12 = vmor %vm1778_vm11, %vm1779_vm10  ;;  %v1987_v40 = vand.u32 2147483648, %v1973_v13  ;;  %v1985_v3 = vand.u32 2147483647, %v1973_v13 }
 0x705   :  { %1793 = vrot.lane.b32.xlu1 %v1771_v12, %s3127_s20  ;;  %v1775_v30 = vsub.f32 1.0, %v1774_v55  ;;  %vm1981_vm15 = vweird.f32 %v1973_v13 }
 0x706   :  { %v1961_v18 = vpop.f32.mrf.mxu0  ;;  %v1988_v22 = vor.u32 1.1754944e-38, %v1987_v40  ;;  %vm1986_vm1 = vcmp.eq.f32.partialorder %v1985_v3, 8.507059e+37 }
 0x707   :  { %v4053_v19 = vadd.f32 %v2946_v57, %v1961_v18  ;;  %v1776_v10 = vmul.f32 %v3064_v31, %v1775_v30 }
 0x709   :  { %v3066_v25 = vpop.eup %3065  ;;  %v2871_v34 = vmul.f32 -1.442695, %v4053_v19  ;;  %v1777_v36 = vadd.f32 %v3064_v31, %v1776_v10 }
 0x70a   :  { %v3068_v0 = vpop.eup %3067  ;;  %v1974_v32 = vadd.f32 1.0, %v3066_v25 }
 0x70b   :  { %3069 = vpow2.f32 %v2871_v34  ;;  %v1781_v49 = vsel %vm1780_vm12, %v3064_v31, %v1777_v36  ;;  %v1977_v54 = vmul.f32 %v3068_v0, %v1973_v13  ;;  %vm1982_vm14 = vweird.f32 %v3068_v0 }
 0x70c   :  { %3071 = vrcp.f32 %v1974_v32  ;;  %v1786_v50 = vsel %vm1783_vm13, %v1785_v44, %v1781_v49  ;;  %vm1983_vm0 = vmor %vm1981_vm15, %vm1982_vm14  ;;  %v2002_v4 = vand.u32 2147483648, %v1974_v32  ;;  %v2000_v62 = vand.u32 2147483647, %v1974_v32 }
 0x70d   :  { %1795 = vrot.lane.b32.xlu0 %v1786_v50, %s3127_s20  ;;  %v1978_v42 = vsub.f32 1.0, %v1977_v54  ;;  %vm1996_vm5 = vweird.f32 %v1974_v32 }
 0x70e   :  { %v2190_v57 = vpop.f32.mrf.mxu0  ;;  %v2003_v13 = vor.u32 1.1754944e-38, %v2002_v4  ;;  %vm2001_vm7 = vcmp.eq.f32.partialorder %v2000_v62, 8.507059e+37 }
 0x70f   :  { %v4060_v20 = vadd.f32 %v2947_v47, %v2190_v57  ;;  %v1979_v1 = vmul.f32 %v3068_v0, %v1978_v42 }
 0x711   :  { %v3070_v15 = vpop.eup %3069  ;;  %v2891_v60 = vmul.f32 -1.442695, %v4060_v20  ;;  %v1980_v7 = vadd.f32 %v3068_v0, %v1979_v1 }
 0x712   :  { %v3072_v8 = vpop.eup %3071  ;;  %v1975_v59 = vadd.f32 1.0, %v3070_v15 }
 0x713   :  { %3073 = vpow2.f32 %v2891_v60  ;;  %v1984_v61 = vsel %vm1983_vm0, %v3068_v0, %v1980_v7  ;;  %v1992_v11 = vmul.f32 %v3072_v8, %v1974_v32  ;;  %vm1997_vm4 = vweird.f32 %v3072_v8 }
 0x714   :  { %3075 = vrcp.f32 %v1975_v59  ;;  %v1989_v14 = vsel %vm1986_vm1, %v1988_v22, %v1984_v61  ;;  %vm1998_vm6 = vmor %vm1996_vm5, %vm1997_vm4  ;;  %v2017_v18 = vand.u32 2147483648, %v1975_v59  ;;  %v2015_v48 = vand.u32 2147483647, %v1975_v59 }
 0x715   :  { %2024 = vrot.lane.b32.xlu2 %v1989_v14, %s3127_s20  ;;  %v1993_v16 = vsub.f32 1.0, %v1992_v11  ;;  %vm2011_vm9 = vweird.f32 %v1975_v59 }
 0x716   :  { %v2193_v17 = vpop.f32.mrf.mxu0  ;;  %v2018_v44 = vor.u32 1.1754944e-38, %v2017_v18  ;;  %vm2016_vm11 = vcmp.eq.f32.partialorder %v2015_v48, 8.507059e+37 }
 0x717   :  { %v4064_v23 = vadd.f32 %v2947_v47, %v2193_v17  ;;  %v1994_v43 = vmul.f32 %v3072_v8, %v1993_v16 }
 0x719   :  { %v3074_v63 = vpop.eup %3073  ;;  %v2892_v2 = vmul.f32 -1.442695, %v4064_v23  ;;  %v1995_v5 = vadd.f32 %v3072_v8, %v1994_v43 }
 0x71a   :  { %v3076_v6 = vpop.eup %3075  ;;  %v2208_v31 = vadd.f32 1.0, %v3074_v63 }
 0x71b   :  { %3077 = vpow2.f32 %v2892_v2  ;;  %v1999_v35 = vsel %vm1998_vm6, %v3072_v8, %v1995_v5  ;;  %v2007_v21 = vmul.f32 %v3076_v6, %v1975_v59  ;;  %vm2012_vm8 = vweird.f32 %v3076_v6 }
 0x71c   :  { %3079 = vrcp.f32 %v2208_v31  ;;  %v2004_v55 = vsel %vm2001_vm7, %v2003_v13, %v1999_v35  ;;  %vm2013_vm10 = vmor %vm2011_vm9, %vm2012_vm8  ;;  %v2222_v40 = vand.u32 2147483648, %v2208_v31  ;;  %v2220_v15 = vand.u32 2147483647, %v2208_v31 }
 0x71d   :  { %2026 = vrot.lane.b32.xlu1 %v2004_v55, %s3127_s20  ;;  %v2008_v12 = vsub.f32 1.0, %v2007_v21  ;;  %vm2216_vm13 = vweird.f32 %v2208_v31 }
 0x71e   :  { %v2196_v30 = vpop.f32.mrf.mxu0  ;;  %v2223_v61 = vor.u32 1.1754944e-38, %v2222_v40  ;;  %vm2221_vm15 = vcmp.eq.f32.partialorder %v2220_v15, 8.507059e+37 }
 0x71f   :  { %v4068_v37 = vadd.f32 %v2947_v47, %v2196_v30  ;;  %v2009_v10 = vmul.f32 %v3076_v6, %v2008_v12  ;;  %v2948_v47 = vld [vmem:[%s4285_s11 + $0x3] ss:$0 sm:$0xff]  ;;  %s3129_s11 = smov 32  }
 0x721   :  { %v3078_v25 = vpop.eup %3077  ;;  %v2893_v34 = vmul.f32 -1.442695, %v4068_v37  ;;  %v2010_v36 = vadd.f32 %v3076_v6, %v2009_v10 }
 0x722   :  { %v3080_v0 = vpop.eup %3079  ;;  %v2209_v32 = vadd.f32 1.0, %v3078_v25 }
 0x723   :  { %3081 = vpow2.f32 %v2893_v34  ;;  %v2014_v49 = vsel %vm2013_vm10, %v3076_v6, %v2010_v36  ;;  %v2212_v54 = vmul.f32 %v3080_v0, %v2208_v31  ;;  %vm2217_vm12 = vweird.f32 %v3080_v0 }
 0x724   :  { %3083 = vrcp.f32 %v2209_v32  ;;  %v2019_v50 = vsel %vm2016_vm11, %v2018_v44, %v2014_v49  ;;  %vm2218_vm14 = vmor %vm2216_vm13, %vm2217_vm12  ;;  %v2237_v43 = vand.u32 2147483648, %v2209_v32  ;;  %v2235_v2 = vand.u32 2147483647, %v2209_v32 }
 0x725   :  { %2028 = vrot.lane.b32.xlu0 %v2019_v50, %s3127_s20  ;;  %v2213_v42 = vsub.f32 1.0, %v2212_v54  ;;  %vm2231_vm1 = vweird.f32 %v2209_v32 }
 0x726   :  { %v2425_v57 = vpop.f32.mrf.mxu0  ;;  %v2238_v21 = vor.u32 1.1754944e-38, %v2237_v43  ;;  %vm2236_vm5 = vcmp.eq.f32.partialorder %v2235_v2, 8.507059e+37 }
 0x727   :  { %v4075_v1 = vadd.f32 %v2948_v47, %v2425_v57  ;;  %v2214_v3 = vmul.f32 %v3080_v0, %v2213_v42 }
 0x729   :  { %v3082_v60 = vpop.eup %3081  ;;  %v2913_v7 = vmul.f32 -1.442695, %v4075_v1  ;;  %v2215_v8 = vadd.f32 %v3080_v0, %v2214_v3 }
 0x72a   :  { %v3084_v59 = vpop.eup %3083  ;;  %v2210_v22 = vadd.f32 1.0, %v3082_v60 }
 0x72b   :  { %3085 = vpow2.f32 %v2913_v7  ;;  %v2219_v11 = vsel %vm2218_vm14, %v3080_v0, %v2215_v8  ;;  %v2227_v14 = vmul.f32 %v3084_v59, %v2209_v32  ;;  %vm2232_vm0 = vweird.f32 %v3084_v59 }
 0x72c   :  { %3087 = vrcp.f32 %v2210_v22  ;;  %v2224_v16 = vsel %vm2221_vm15, %v2223_v61, %v2219_v11  ;;  %vm2233_vm4 = vmor %vm2231_vm1, %vm2232_vm0  ;;  %v2252_v48 = vand.u32 2147483648, %v2210_v22  ;;  %v2250_v36 = vand.u32 2147483647, %v2210_v22 }
 0x72d   :  { %2259 = vrot.lane.b32.xlu2 %v2224_v16, %s3127_s20  ;;  %v2228_v17 = vsub.f32 1.0, %v2227_v14  ;;  %vm2246_vm7 = vweird.f32 %v2210_v22 }
 0x72e   :  { %v2428_v4 = vpop.f32.mrf.mxu0  ;;  %v2253_v50 = vor.u32 1.1754944e-38, %v2252_v48  ;;  %vm2251_vm9 = vcmp.eq.f32.partialorder %v2250_v36, 8.507059e+37 }
 0x72f   :  { %v4079_v62 = vadd.f32 %v2948_v47, %v2428_v4  ;;  %v2229_v63 = vmul.f32 %v3084_v59, %v2228_v17 }
 0x731   :  { %v3086_v5 = vpop.eup %3085  ;;  %v2914_v6 = vmul.f32 -1.442695, %v4079_v62  ;;  %v2230_v31 = vadd.f32 %v3084_v59, %v2229_v63 }
 0x732   :  { %v3088_v13 = vpop.eup %3087  ;;  %v2443_v35 = vadd.f32 1.0, %v3086_v5 }
 0x733   :  { %3089 = vpow2.f32 %v2914_v6  ;;  %v2234_v55 = vsel %vm2233_vm4, %v3084_v59, %v2230_v31  ;;  %v2242_v12 = vmul.f32 %v3088_v13, %v2210_v22  ;;  %vm2247_vm6 = vweird.f32 %v3088_v13 }
 0x734   :  { %3091 = vrcp.f32 %v2443_v35  ;;  %v2239_v30 = vsel %vm2236_vm5, %v2238_v21, %v2234_v55  ;;  %vm2248_vm8 = vmor %vm2246_vm7, %vm2247_vm6  ;;  %v2457_v3 = vand.u32 2147483648, %v2443_v35  ;;  %v2455_v60 = vand.u32 2147483647, %v2443_v35 }
 0x735   :  { %2261 = vrot.lane.b32.xlu1 %v2239_v30, %s3127_s20  ;;  %v2243_v18 = vsub.f32 1.0, %v2242_v12  ;;  %vm2451_vm11 = vweird.f32 %v2443_v35 }
 0x736   :  { %v2431_v10 = vpop.f32.mrf.mxu0  ;;  %v2458_v61 = vor.u32 1.1754944e-38, %v2457_v3  ;;  %vm2456_vm13 = vcmp.eq.f32.partialorder %v2455_v60, 8.507059e+37 }
 0x737   :  { %v4083_v25 = vadd.f32 %v2948_v47, %v2431_v10  ;;  %v2244_v34 = vmul.f32 %v3088_v13, %v2243_v18 }
 0x739   :  { %v3090_v0 = vpop.eup %3089  ;;  %v2915_v32 = vmul.f32 -1.442695, %v4083_v25  ;;  %v2245_v44 = vadd.f32 %v3088_v13, %v2244_v34 }
 0x73a   :  { %v3092_v49 = vpop.eup %3091  ;;  %v2444_v54 = vadd.f32 1.0, %v3090_v0 }
 0x73b   :  { %3093 = vpow2.f32 %v2915_v32  ;;  %v2249_v42 = vsel %vm2248_vm8, %v3088_v13, %v2245_v44  ;;  %v2447_v57 = vmul.f32 %v3092_v49, %v2443_v35  ;;  %vm2452_vm10 = vweird.f32 %v3092_v49 }
 0x73c   :  { %3095 = vrcp.f32 %v2444_v54  ;;  %v2254_v40 = vsel %vm2251_vm9, %v2253_v50, %v2249_v42  ;;  %vm2453_vm12 = vmor %vm2451_vm11, %vm2452_vm10  ;;  %v2472_v4 = vand.u32 2147483648, %v2444_v54  ;;  %v2470_v63 = vand.u32 2147483647, %v2444_v54 }
 0x73d   :  { %2263 = vrot.lane.b32.xlu0 %v2254_v40, %s3127_s20  ;;  %v2448_v47 = vsub.f32 1.0, %v2447_v57  ;;  %vm2466_vm15 = vweird.f32 %v2444_v54 }
 0x73e   :  { %v2473_v6 = vor.u32 1.1754944e-38, %v2472_v4  ;;  %vm2471_vm1 = vcmp.eq.f32.partialorder %v2470_v63, 8.507059e+37  ;;  %v2919_v4 = vld [vmem:[%s4286_s12 + $0x30] sm:$0xff] }
 0x73f   :  { %v2449_v15 = vmul.f32 %v3092_v49, %v2448_v47 }
 0x741   :  { %v3094_v7 = vpop.eup %3093  ;;  %v2450_v8 = vadd.f32 %v3092_v49, %v2449_v15  ;;  %v2898_v15 = vld [vmem:[%s4286_s12 + $0x28] sm:$0xff] }
 0x742   :  { %v3096_v59 = vpop.eup %3095  ;;  %v2445_v22 = vadd.f32 1.0, %v3094_v7 }
 0x743   :  { %v2454_v11 = vsel %vm2453_vm12, %v3092_v49, %v2450_v8  ;;  %v2462_v14 = vmul.f32 %v3096_v59, %v2444_v54  ;;  %vm2467_vm14 = vweird.f32 %v3096_v59  ;;  %v2897_v8 = vld [vmem:[%s4286_s12 + $0x20] sm:$0xff] }
 0x744   :  { %3097 = vrcp.f32 %v2445_v22  ;;  %v2459_v16 = vsel %vm2456_vm13, %v2458_v61, %v2454_v11  ;;  %vm2468_vm0 = vmor %vm2466_vm15, %vm2467_vm14  ;;  %v2487_v55 = vand.u32 2147483648, %v2445_v22  ;;  %v2485_v30 = vand.u32 2147483647, %v2445_v22 }
 0x745   :  { %2494 = vrot.lane.b32.xlu2 %v2459_v16, %s3127_s20  ;;  %v2463_v17 = vsub.f32 1.0, %v2462_v14  ;;  %vm2481_vm5 = vweird.f32 %v2445_v22  ;;  %v2920_v14 = vld [vmem:[%s4286_s12 + $0x38] sm:$0xff] }
 0x746   :  { %v2488_v10 = vor.u32 1.1754944e-38, %v2487_v55  ;;  %vm2486_vm7 = vcmp.eq.f32.partialorder %v2485_v30, 8.507059e+37 }
 0x747   :  { %v2464_v43 = vmul.f32 %v3096_v59, %v2463_v17 }
 0x749   :  { %v2465_v2 = vadd.f32 %v3096_v59, %v2464_v43 }
 0x74a   :  { %v3098_v5 = vpop.eup %3097 }
 0x74b   :  { %v2469_v31 = vsel %vm2468_vm0, %v3096_v59, %v2465_v2  ;;  %v2477_v13 = vmul.f32 %v3098_v5, %v2445_v22  ;;  %vm2482_vm4 = vweird.f32 %v3098_v5 }
 0x74c   :  { %v2474_v35 = vsel %vm2471_vm1, %v2473_v6, %v2469_v31  ;;  %vm2483_vm6 = vmor %vm2481_vm5, %vm2482_vm4 }
 0x74d   :  { %2496 = vrot.lane.b32.xlu1 %v2474_v35, %s3127_s20  ;;  %v2478_v21 = vsub.f32 1.0, %v2477_v13 }
 0x74f   :  { %v2479_v12 = vmul.f32 %v3098_v5, %v2478_v21 }
 0x751   :  { %v2480_v18 = vadd.f32 %v3098_v5, %v2479_v12 }
 0x753   :  { %v2484_v48 = vsel %vm2483_vm6, %v3098_v5, %v2480_v18 }
 0x754   :  { %v2489_v34 = vsel %vm2486_vm7, %v2488_v10, %v2484_v48 }
 0x755   :  { %2498 = vrot.lane.b32.xlu0 %v2489_v34, %s3127_s20  ;;  %v2949_v34 = vld [vmem:[%s4287_s13] ss:$0 sm:$0xff] }
 0x757   :  { %v1792_v36 = vpop.permute.xlu2 %1791 }
 0x758   :  { %v1800_v44 = vmul.f32 %v1792_v36, %v4033_v33 }
 0x76f   :  { %v2025_v42 = vpop.permute.xlu2 %2024 }
 0x770   :  { %v2033_v33 = vmul.f32 %v2025_v42, %v4045_v58 }
 0x777   :  { %v1794_v0 = vpop.permute.xlu1 %1793 }
 0x778   :  { %v4093_v54 = vmul.f32 %v1794_v0, %v4036_v39 }
 0x77f   :  { %v1796_v32 = vpop.permute.xlu0 %1795 }
 0x780   :  { %v1802_v49 = vmul.f32 %v1796_v32, %v4039_v51 }
 0x782   :  { %1817 = vmatpush.msrb.mxu2 %v1802_v49  ;;  %v1803_v50 = vadd.f32 %v1802_v49, %v1800_v44 }
 0x784   :  { %1818 = vmatpush.msrb.mxu2 %v4093_v54 }
 0x786   :  { %1819 = vmatpush.msrb.mxu2 %v1800_v44  ;;  %v2950_v44 = vld [vmem:[%s4287_s13 + $0x1] ss:$0 sm:$0xff] }
 0x787   :  { %2853 = vmatmul.msk.f32.vlgmr.msrb.gmra.mxu2 %vm170_vm2, %v3867_v46  ;;  %v2260_v46 = vpop.permute.xlu2 %2259 }
 0x788   :  { %v2268_v58 = vmul.f32 %v2260_v46, %v4060_v20 }
 0x78f   :  { %2854 = vmatmul.msk.f32.gmra.mxu2 %vm170_vm2, %v3874_v38  ;;  %v2027_v57 = vpop.permute.xlu1 %2026 }
 0x790   :  { %v4105_v51 = vmul.f32 %v2027_v57, %v4049_v27 }
 0x797   :  { %v2029_v40 = vpop.permute.xlu0 %2028  ;;  %2855 = vmatmul.msk.f32.gmra.mxu2 %vm170_vm2, %v3886_v9 }
 0x798   :  { %v2035_v39 = vmul.f32 %v2029_v40, %v4053_v19 }
 0x79a   :  { %2050 = vmatpush.msra.mxu2 %v2035_v39  ;;  %v2036_v47 = vadd.f32 %v2035_v39, %v2033_v33 }
 0x79c   :  { %2051 = vmatpush.msra.mxu2 %v4105_v51 }
 0x79e   :  { %2052 = vmatpush.msra.mxu2 %v2033_v33 }
 0x79f   :  { %2872 = vmatmul.msk.f32.vlgmr.msra.gmra.mxu2 %vm170_vm2, %v3898_v53  ;;  %v1831_v53 = vld [vmem:[%s4286_s12 + $0x8] sm:$0xff] }
 0x7a0   :  { %1859 = vmatpush.msrb.mxu1 %v1831_v53 }
 0x7a7   :  { %2873 = vmatmul.msk.f32.gmra.mxu2 %vm170_vm2, %v3905_v29  ;;  %v2262_v38 = vpop.permute.xlu1 %2261  ;;  %v2495_v29 = vpop.permute.xlu2 %2494 }
 0x7a8   :  { %v4117_v19 = vmul.f32 %v2262_v38, %v4064_v23  ;;  %v2503_v23 = vmul.f32 %v2495_v29, %v4075_v1  ;;  %v2876_v1 = vld [vmem:[%s4286_s12 + $0x18] sm:$0xff] }
 0x7af   :  { %v2264_v9 = vpop.permute.xlu0 %2263  ;;  %2874 = vmatmul.msk.f32.gmra.mxu2 %vm170_vm2, %v3918_v41 }
 0x7b0   :  { %v2270_v27 = vmul.f32 %v2264_v9, %v4068_v37 }
 0x7b2   :  { %2285 = vmatpush.msrb.mxu2 %v2270_v27  ;;  %v2271_v3 = vadd.f32 %v2270_v27, %v2268_v58  ;;  %v2951_v27 = vld [vmem:[%s4287_s13 + $0x2] ss:$0 sm:$0xff] }
 0x7b4   :  { %2286 = vmatpush.msrb.mxu2 %v4117_v19 }
 0x7b6   :  { %2287 = vmatpush.msrb.mxu2 %v2268_v58 }
 0x7b7   :  { %2894 = vmatmul.msk.f32.vlgmr.msrb.gmra.mxu2 %vm170_vm2, %v3936_v56 }
 0x7bf   :  { %2895 = vmatmul.msk.f32.gmra.mxu2 %vm170_vm2, %v3946_v45  ;;  %v2497_v41 = vpop.permute.xlu1 %2496 }
 0x7c0   :  { %v4132_v56 = vmul.f32 %v2497_v41, %v4079_v62 }
 0x7c7   :  { %v2499_v20 = vpop.permute.xlu0 %2498  ;;  %2896 = vmatmul.msk.f32.gmra.mxu2 %vm170_vm2, %v3956_v52  ;;  %v1830_v52 = vld [vmem:[%s4286_s12] sm:$0xff] }
 0x7c8   :  { %v2505_v37 = vmul.f32 %v2499_v20, %v4083_v25  ;;  %1860 = vmatpush.msrb.mxu1 %v1830_v52 }
 0x7ca   :  { %2520 = vmatpush.msra.mxu2 %v2505_v37  ;;  %v2506_v45 = vadd.f32 %v2505_v37, %v2503_v23  ;;  %2094 = vmatpush.msra.mxu1 %v2876_v1 }
 0x7cc   :  { %2521 = vmatpush.msra.mxu2 %v4132_v56 }
 0x7ce   :  { %2522 = vmatpush.msra.mxu2 %v2503_v23 }
 0x7cf   :  { %2916 = vmatmul.msk.f32.vlgmr.msra.gmra.mxu2 %vm170_vm2, %v3963_v24  ;;  %v2875_v24 = vld [vmem:[%s4286_s12 + $0x10] sm:$0xff] }
 0x7d0   :  { %2095 = vmatpush.msra.mxu1 %v2875_v24 }
 0x7d7   :  { %2917 = vmatmul.msk.f32.gmra.mxu2 %vm170_vm2, %v3970_v26 }
 0x7df   :  { %2918 = vmatmul.msk.f32.gmra.mxu2 %vm170_vm2, %v3977_v28 }
 0x80a   :  { %v1821_v62 = vpop.f32.mrf.mxu2 }
 0x80b   :  { %v1822_v26 = vadd.f32 %v1821_v62, %v4093_v54 }
 0x80d   :  { %2856 = vmatmul.msk.f32.vlgmr.msrb.gmra.mxu1 %vm212_vm3, %v1822_v26 }
 0x80e   :  { %2329 = vmatpush.msrb.mxu1 %v2898_v15 }
 0x810   :  { %2330 = vmatpush.msrb.mxu1 %v2897_v8 }
 0x812   :  { %v1824_v28 = vpop.f32.mrf.mxu2 }
 0x813   :  { %v1825_v25 = vadd.f32 %v1824_v28, %v1803_v50 }
 0x815   :  { %2857 = vmatmul.msk.f32.gmra.mxu1 %vm212_vm3, %v1825_v25 }
 0x81a   :  { %v1827_v60 = vpop.f32.mrf.mxu2 }
 0x81b   :  { %v1828_v7 = vadd.f32 %v1827_v60, %v4093_v54 }
 0x81d   :  { %2858 = vmatmul.msk.f32.gmra.mxu1 %vm212_vm3, %v1828_v7 }
 0x822   :  { %v2054_v59 = vpop.f32.mrf.mxu2 }
 0x823   :  { %v2055_v22 = vadd.f32 %v2054_v59, %v4105_v51 }
 0x825   :  { %2878 = vmatmul.msk.f32.vlgmr.msra.gmra.mxu1 %vm212_vm3, %v2055_v22 }
 0x826   :  { %2564 = vmatpush.msra.mxu1 %v2920_v14 }
 0x828   :  { %2565 = vmatpush.msra.mxu1 %v2919_v4 }
 0x82a   :  { %v2057_v61 = vpop.f32.mrf.mxu2 }
 0x82b   :  { %v2058_v11 = vadd.f32 %v2057_v61, %v2036_v47 }
 0x82d   :  { %2879 = vmatmul.msk.f32.gmra.mxu1 %vm212_vm3, %v2058_v11 }
 0x832   :  { %v2060_v16 = vpop.f32.mrf.mxu2 }
 0x833   :  { %v2061_v17 = vadd.f32 %v2060_v16, %v4105_v51 }
 0x835   :  { %2880 = vmatmul.msk.f32.gmra.mxu1 %vm212_vm3, %v2061_v17  ;;  %v2952_v17 = vld [vmem:[%s4287_s13 + $0x3] ss:$0 sm:$0xff]  ;;  %s3128_s13 = smov 16  }
 0x83a   :  { %v2289_v43 = vpop.f32.mrf.mxu2 }
 0x83b   :  { %v2290_v63 = vadd.f32 %v2289_v43, %v4117_v19 }
 0x83d   :  { %2900 = vmatmul.msk.f32.vlgmr.msrb.gmra.mxu1 %vm212_vm3, %v2290_v63 }
 0x842   :  { %v2292_v2 = vpop.f32.mrf.mxu2 }
 0x843   :  { %v2293_v5 = vadd.f32 %v2292_v2, %v2271_v3 }
 0x845   :  { %2901 = vmatmul.msk.f32.gmra.mxu1 %vm212_vm3, %v2293_v5 }
 0x84a   :  { %v2295_v6 = vpop.f32.mrf.mxu2 }
 0x84b   :  { %v2296_v31 = vadd.f32 %v2295_v6, %v4117_v19 }
 0x84d   :  { %2902 = vmatmul.msk.f32.gmra.mxu1 %vm212_vm3, %v2296_v31 }
 0x852   :  { %v2524_v13 = vpop.f32.mrf.mxu2 }
 0x853   :  { %v2525_v35 = vadd.f32 %v2524_v13, %v4132_v56 }
 0x855   :  { %2922 = vmatmul.msk.f32.vlgmr.msra.gmra.mxu1 %vm212_vm3, %v2525_v35 }
 0x85a   :  { %v2527_v21 = vpop.f32.mrf.mxu2 }
 0x85b   :  { %v2528_v55 = vadd.f32 %v2527_v21, %v2506_v45 }
 0x85d   :  { %2923 = vmatmul.msk.f32.gmra.mxu1 %vm212_vm3, %v2528_v55 }
 0x862   :  { %v2530_v12 = vpop.f32.mrf.mxu2 }
 0x863   :  { %v2531_v30 = vadd.f32 %v2530_v12, %v4132_v56 }
 0x865   :  { %2924 = vmatmul.msk.f32.gmra.mxu1 %vm212_vm3, %v2531_v30 }
 0x88a   :  { %v1862_v18 = vpop.f32.mrf.mxu1 }
 0x892   :  { %v1864_v10 = vpop.f32.mrf.mxu1 }
 0x893   :  { %v4185_v36 = vadd.f32 %v2949_v34, %v1864_v10 }
 0x895   :  { %v2859_v32 = vmul.f32 -1.442695, %v4185_v36 }
 0x897   :  { %3099 = vpow2.f32 %v2859_v32 }
 0x89a   :  { %v1867_v48 = vpop.f32.mrf.mxu1 }
 0x89d   :  { %v3100_v42 = vpop.eup %3099 }
 0x89e   :  { %v1872_v40 = vadd.f32 1.0, %v3100_v42 }
 0x8a0   :  { %v1884_v60 = vand.u32 2147483648, %v1872_v40  ;;  %vm1878_vm12 = vweird.f32 %v1872_v40  ;;  %v1882_v7 = vand.u32 2147483647, %v1872_v40 }
 0x8a2   :  { %v2097_v0 = vpop.f32.mrf.mxu1  ;;  %v1885_v61 = vor.u32 1.1754944e-38, %v1884_v60  ;;  %vm1883_vm14 = vcmp.eq.f32.partialorder %v1882_v7, 8.507059e+37 }
 0x8aa   :  { %v2099_v49 = vpop.f32.mrf.mxu1 }
 0x8ab   :  { %v4191_v50 = vadd.f32 %v2950_v44, %v2099_v49 }
 0x8ad   :  { %v2881_v57 = vmul.f32 -1.442695, %v4191_v50 }
 0x8af   :  { %3101 = vpow2.f32 %v2881_v57 }
 0x8b0   :  { %3103 = vrcp.f32 %v1872_v40 }
 0x8b2   :  { %v2102_v33 = vpop.f32.mrf.mxu1 }
 0x8b5   :  { %v3102_v39 = vpop.eup %3101 }
 0x8b6   :  { %v2107_v47 = vadd.f32 1.0, %v3102_v39  ;;  %v3104_v46 = vpop.eup %3103 }
 0x8b7   :  { %v1874_v9 = vmul.f32 %v3104_v46, %v1872_v40  ;;  %vm1879_vm11 = vweird.f32 %v3104_v46 }
 0x8b8   :  { %3105 = vrcp.f32 %v2107_v47  ;;  %v2119_v20 = vand.u32 2147483648, %v2107_v47  ;;  %v2117_v45 = vand.u32 2147483647, %v2107_v47  ;;  %vm2113_vm8 = vweird.f32 %v2107_v47  ;;  %vm1880_vm13 = vmor %vm1878_vm12, %vm1879_vm11 }
 0x8b9   :  { %v1875_v29 = vsub.f32 1.0, %v1874_v9 }
 0x8ba   :  { %v2332_v38 = vpop.f32.mrf.mxu1  ;;  %v2120_v62 = vor.u32 1.1754944e-38, %v2119_v20  ;;  %vm2118_vm10 = vcmp.eq.f32.partialorder %v2117_v45, 8.507059e+37  ;;  %v2617_v20 = vld [vmem:[%s4289_s14 + $0x8] sm:$0xff]  ;;  %v2659_v45 = vld [vmem:[%s4290_s16 + $0x30] sm:$0xff] }
 0x8bb   :  { %v1876_v24 = vmul.f32 %v3104_v46, %v1875_v29  ;;  %v2621_v29 = vld [vmem:[%s4289_s14 + $0x28] sm:$0xff] }
 0x8bd   :  { %v1877_v25 = vadd.f32 %v3104_v46, %v1876_v24  ;;  %v2656_v24 = vld [vmem:[%s4290_s16 + $0x18] sm:$0xff] }
 0x8be   :  { %v3106_v58 = vpop.eup %3105 }
 0x8bf   :  { %v2109_v3 = vmul.f32 %v3106_v58, %v2107_v47  ;;  %vm2114_vm2 = vweird.f32 %v3106_v58  ;;  %v1881_v59 = vsel %vm1880_vm13, %v3104_v46, %v1877_v25 }
 0x8c0   :  { %vm2115_vm9 = vmor %vm2113_vm8, %vm2114_vm2  ;;  %v1886_v11 = vsel %vm1883_vm14, %v1885_v61, %v1881_v59  ;;  %vm2612_vm8 = vcmask 261120   ;;  %v2953_v61 = vld [vmem:[%s4288_s15] ss:$0 sm:$0xff] }
 0x8c1   :  { %v2110_v53 = vsub.f32 1.0, %v2109_v3 }
 0x8c2   :  { %v2334_v41 = vpop.f32.mrf.mxu1 }
 0x8c3   :  { %v4197_v23 = vadd.f32 %v2951_v27, %v2334_v41  ;;  %v2111_v37 = vmul.f32 %v3106_v58, %v2110_v53  ;;  %v2618_v41 = vld [vmem:[%s4289_s14 + $0x10] sm:$0xff] }
 0x8c5   :  { %v2903_v52 = vmul.f32 -1.442695, %v4197_v23  ;;  %v2112_v1 = vadd.f32 %v3106_v58, %v2111_v37  ;;  %v2660_v37 = vld [vmem:[%s4290_s16 + $0x38] sm:$0xff] }
 0x8c6   :  { %2676 = vmatpush.msrb.mxu0 %v2660_v37 }
 0x8c7   :  { %3107 = vpow2.f32 %v2903_v52  ;;  %v2116_v26 = vsel %vm2115_vm9, %v3106_v58, %v2112_v1  ;;  %v2658_v52 = vld [vmem:[%s4290_s16 + $0x28] sm:$0xff]  ;;  %v2657_v1 = vld [vmem:[%s4290_s16 + $0x20] sm:$0xff]  ;;  %vm2614_vm9 = vcmask 392192  }
 0x8c8   :  { %v2121_v28 = vsel %vm2118_vm10, %v2120_v62, %v2116_v26  ;;  %2677 = vmatpush.msrb.mxu0 %v2659_v45  ;;  %vm2628_vm10 = vcmask 523264  }
 0x8c9   :  { %2124 = vrot.lane.b32.xlu0 %v2121_v28, %s3127_s20 }
 0x8ca   :  { %v2337_v15 = vpop.f32.mrf.mxu1  ;;  %2678 = vmatpush.msrb.mxu0 %v2658_v52 }
 0x8cc   :  { %2679 = vmatpush.msrb.mxu0 %v2657_v1 }
 0x8cd   :  { %v3108_v8 = vpop.eup %3107 }
 0x8ce   :  { %v2342_v22 = vadd.f32 1.0, %v3108_v8  ;;  %2680 = vmatpush.msrb.mxu0 %v2656_v24 }
 0x8d0   :  { %3109 = vrcp.f32 %v2342_v22  ;;  %v2354_v2 = vand.u32 2147483648, %v2342_v22  ;;  %v2352_v31 = vand.u32 2147483647, %v2342_v22  ;;  %vm2348_vm0 = vweird.f32 %v2342_v22 }
 0x8d1   :  { %1889 = vrot.lane.b32.xlu0 %v1886_v11, %s3127_s20 }
 0x8d2   :  { %v2567_v14 = vpop.f32.mrf.mxu1  ;;  %v2355_v21 = vor.u32 1.1754944e-38, %v2354_v2  ;;  %vm2353_vm4 = vcmp.eq.f32.partialorder %v2352_v31, 8.507059e+37 }
 0x8d6   :  { %v3110_v16 = vpop.eup %3109 }
 0x8d7   :  { %v2344_v4 = vmul.f32 %v3110_v16, %v2342_v22  ;;  %vm2349_vm15 = vweird.f32 %v3110_v16  ;;  %v2655_v22 = vld [vmem:[%s4290_s16 + $0x10] sm:$0xff] }
 0x8d8   :  { %vm2350_vm1 = vmor %vm2348_vm0, %vm2349_vm15  ;;  %2681 = vmatpush.msrb.mxu0 %v2655_v22 }
 0x8d9   :  { %v2345_v43 = vsub.f32 1.0, %v2344_v4 }
 0x8da   :  { %v2569_v63 = vpop.f32.mrf.mxu1 }
 0x8db   :  { %v2570_v5 = vadd.f32 %v2952_v17, %v2569_v63  ;;  %v2346_v6 = vmul.f32 %v3110_v16, %v2345_v43  ;;  %v2954_v17 = vld [vmem:[%s4291_s17] ss:$0 sm:$0xff] }
 0x8dd   :  { %v2925_v13 = vmul.f32 -1.442695, %v2570_v5  ;;  %v2347_v35 = vadd.f32 %v3110_v16, %v2346_v6 }
 0x8df   :  { %3111 = vpow2.f32 %v2925_v13  ;;  %v2351_v55 = vsel %vm2350_vm1, %v3110_v16, %v2347_v35 }
 0x8e0   :  { %v2356_v12 = vsel %vm2353_vm4, %v2355_v21, %v2351_v55 }
 0x8e1   :  { %2359 = vrot.lane.b32.xlu1 %v2356_v12, %s3127_s20 }
 0x8e2   :  { %v2572_v30 = vpop.f32.mrf.mxu1 }
 0x8e5   :  { %v3112_v18 = vpop.eup %3111 }
 0x8e6   :  { %v2577_v10 = vadd.f32 1.0, %v3112_v18 }
 0x8e8   :  { %3113 = vrcp.f32 %v2577_v10  ;;  %v2589_v32 = vand.u32 2147483648, %v2577_v10  ;;  %v2587_v49 = vand.u32 2147483647, %v2577_v10  ;;  %vm2583_vm6 = vweird.f32 %v2577_v10 }
 0x8ea   :  { %v2590_v57 = vor.u32 1.1754944e-38, %v2589_v32  ;;  %vm2588_vm2 = vcmp.eq.f32.partialorder %v2587_v49, 8.507059e+37 }
 0x8ee   :  { %v3114_v48 = vpop.eup %3113 }
 0x8ef   :  { %v2579_v34 = vmul.f32 %v3114_v48, %v2577_v10  ;;  %vm2584_vm5 = vweird.f32 %v3114_v48 }
 0x8f0   :  { %vm2585_vm7 = vmor %vm2583_vm6, %vm2584_vm5 }
 0x8f1   :  { %v2580_v0 = vsub.f32 1.0, %v2579_v34 }
 0x8f3   :  { %v2581_v44 = vmul.f32 %v3114_v48, %v2580_v0 }
 0x8f5   :  { %v2582_v42 = vadd.f32 %v3114_v48, %v2581_v44 }
 0x8f7   :  { %v2586_v40 = vsel %vm2585_vm7, %v3114_v48, %v2582_v42 }
 0x8f8   :  { %v2591_v33 = vsel %vm2588_vm2, %v2590_v57, %v2586_v40 }
 0x8f9   :  { %2594 = vrot.lane.b32.xlu2 %v2591_v33, %s3127_s20 }
 0x93b   :  { %v2125_v39 = vpop.permute.xlu0 %2124 }
 0x93c   :  { %v2127_v47 = vmul.f32 %v2125_v39, %v4191_v50  ;;  %v2623_v50 = vld [vmem:[%s4289_s14 + $0x38] sm:$0xff] }
 0x93d   :  { %2640 = vmatpush.msra.mxu3 %v2623_v50 }
 0x93e   :  { %v2128_v46 = vmax.f32 %v4105_v51, %v2127_v47  ;;  %v2622_v51 = vld [vmem:[%s4289_s14 + $0x30] sm:$0xff] }
 0x93f   :  { %2641 = vmatpush.msra.mxu3 %v2622_v51 }
 0x940   :  { %2600 = vrot.lane.b32.xlu1 %v2128_v46, %s3128_s13 }
 0x941   :  { %2642 = vmatpush.msra.mxu3 %v2621_v29 }
 0x943   :  { %v1890_v62 = vpop.permute.xlu0 %1889 }
 0x944   :  { %v1892_v26 = vmul.f32 %v1890_v62, %v4185_v36  ;;  %v2653_v36 = vld [vmem:[%s4290_s16] sm:$0xff] }
 0x946   :  { %v1893_v25 = vmax.f32 %v4093_v54, %v1892_v26  ;;  %v2654_v54 = vld [vmem:[%s4290_s16 + $0x8] sm:$0xff] }
 0x947   :  { %2682 = vmatpush.msrb.mxu0 %v2654_v54 }
 0x949   :  { %2683 = vmatpush.msrb.mxu0 %v2653_v36 }
 0x953   :  { %v2360_v38 = vpop.permute.xlu1 %2359  ;;  %v2595_v9 = vpop.permute.xlu2 %2594 }
 0x954   :  { %v2362_v58 = vmul.f32 %v2360_v38, %v4197_v23  ;;  %v2597_v27 = vmul.f32 %v2595_v9, %v2570_v5  ;;  %v2616_v23 = vld [vmem:[%s4289_s14] sm:$0xff] }
 0x956   :  { %v2363_v3 = vmax.f32 %v4117_v19, %v2362_v58  ;;  %v2598_v53 = vmax.f32 %v4132_v56, %v2597_v27  ;;  %v2620_v19 = vld [vmem:[%s4289_s14 + $0x20] sm:$0xff]  ;;  %v2619_v56 = vld [vmem:[%s4289_s14 + $0x18] sm:$0xff] }
 0x957   :  { %2643 = vmatpush.msra.mxu3 %v2620_v19 }
 0x958   :  { %2604 = vrot.lane.b32.xlu2 %v2363_v3, %s3129_s11  ;;  %2608 = vrot.lane.b32.xlu0 %v2598_v53, %s3130_s22 }
 0x959   :  { %2644 = vmatpush.msra.mxu3 %v2619_v56 }
 0x95b   :  { %2645 = vmatpush.msra.mxu3 %v2618_v41 }
 0x95d   :  { %2646 = vmatpush.msra.mxu3 %v2617_v20 }
 0x95f   :  { %2647 = vmatpush.msra.mxu3 %v2616_v23 }
 0x9b2   :  { %v2601_v28 = vpop.permute.xlu1 %2600  ;;  %v2605_v60 = vpop.permute.xlu2 %2604 }
 0x9b3   :  { %v2611_v15 = vsel %vm212_vm3, %v1893_v25, %v2601_v28  ;;  %vm2688_vm3 = vcmask 48128  }
 0x9b4   :  { %v2613_v7 = vsel %vm2612_vm8, %v2611_v15, %v2605_v60 }
 0x9ca   :  { %v2609_v8 = vpop.permute.xlu0 %2608 }
 0x9cb   :  { %v2615_v59 = vsel %vm2614_vm9, %v2613_v7, %v2609_v8 }
 0x9cc   :  { %2926 = vmatmul.msk.f32.vlgmr.msra.gmra.mxu3 %vm2628_vm10, %v2615_v59 }
 0xa4f   :  { %v2649_v11 = vpop.f32.mrf.mxu3 }
 0xa50   :  { %v2650_v14 = vadd.f32 %v2953_v61, %v2649_v11 }
 0xa52   :  { %v2652_v16 = vmax.f32 %v2650_v14, 0.0 }
 0xa54   :  { %2927 = vmatmul.msk.f32.vlgmr.msrb.gmra.mxu0 %vm2628_vm10, %v2652_v16 }
 0xad1   :  { %v2685_v4 = vpop.f32.mrf.mxu0 }
 0xad2   :  { %v2686_v43 = vadd.f32 %v2954_v17, %v2685_v4 }
 0xad4   :  { %2689 = vst.msk [vmem:[%s4292_s18] sm:$0xff] %vm2688_vm3, %v2686_v43 }

</bundles_post_ra>
